<compile_context>
chip_gen: v6e
topology: v6e:2x2x1
jax: 0.10.0
libtpu: 0.0.40
codegen_flags: <defaults>
</compile_context>

<pallas_src>
import functools

import jax
import jax.numpy as jnp
from jax.experimental import pallas as pl
from jax.experimental.pallas import tpu as pltpu

K = 5          # conv kernel size
PAD = K // 2   # "same" padding


def _pick_batch_block(batch):
    """Merge a few batch planes into the lane axis (widens matmul N), keep >=2 grid steps."""
    for cand in (4, 3, 2):
        if batch % cand == 0 and batch // cand >= 2:
            return cand
    return 1


def _fusion_kernel(x_ref, pp_ref, mask_ref, w1_ref, b1_ref, w2_ref, b2_ref, out_ref,
                   *, Wp, lpad, bblk):
    """One grid step fuses `bblk` batch planes merged along the lane axis (L = bblk*lpad)."""
    L = bblk * lpad
    shift = PAD * Wp + PAD                      # flattened (+PAD,+PAD) spatial shift
    mm_dtype = w1_ref.dtype                     # bf16 MXU operands, f32 accumulation

    x_bev = x_ref[0]                            # (C, L) f32: bev at output-lane positions
    C = x_bev.shape[0]
    mask_out = mask_ref[...]                    # (1, L) valid-output-lane mask (per segment)
    mask_in = pltpu.roll(mask_out, shift, axis=1)   # valid padded-input-lane mask

    # ---- rebuild conv1's zero-padded input plane fully in-register ----
    # bev half: shift the (already zero outside the image) plane to padded coordinates;
    # wrapped lanes read the zero tail of the previous segment (invariant asserted in wrapper).
    bev_pad = pltpu.roll(x_bev, shift, axis=1)                            # (C, L)
    # pp half: per-batch embedding lane-broadcast, zeroed outside the image.
    ppv = pp_ref[0]                                                       # (C, bblk, 1)
    pp_cols = [jnp.broadcast_to(ppv[:, b, :], (C, lpad)) for b in range(bblk)]
    pp_plane = pp_cols[0] if bblk == 1 else jnp.concatenate(pp_cols, axis=1)
    pp_pad = pp_plane * mask_in                                           # (C, L)
    x_pad = jnp.concatenate([bev_pad, pp_pad], axis=0)                    # (2C, L) f32

    def conv_bn_relu(plane_pad, w_ref, b_ref):
        # 5x5 "same" conv as K accumulated MXU matmuls: for each kh gather only that row's
        # K kw-taps with XLU lane rolls -> (K*Cin, L) slab -> one (Cout, K*Cin) matmul.
        acc = None
        for kh in range(K):
            taps = []
            for kw in range(K):
                off = kh * Wp + kw
                taps.append(plane_pad if off == 0
                            else pltpu.roll(plane_pad, (L - off) % L, axis=1))
            xcol = jnp.concatenate(taps, axis=0).astype(mm_dtype)         # (K*Cin, L)
            part = jnp.dot(w_ref[kh], xcol, preferred_element_type=jnp.float32)
            acc = part if acc is None else acc + part
        return jnp.maximum(acc + b_ref[...], 0.0)                         # BN bias + ReLU (f32)

    h1 = conv_bn_relu(x_pad, w1_ref, b1_ref)                              # (c_mid, L)
    # conv2's zero-padded input: zero all non-valid lanes, shift to padded coordinates.
    p2 = pltpu.roll(h1 * mask_out, shift, axis=1)
    h2 = conv_bn_relu(p2, w2_ref, b2_ref)                                 # (c_out, L)

    # residual add with the exact f32 bev plane (same output-lane layout); lane-dense store.
    out_ref[0] = (h2 + x_bev).astype(out_ref.dtype)


def feature_fusion_forward(bev_feature, aim_parking_plot_id, params, map_hw,
                           compute_dtype=jnp.bfloat16, batch_block=None):
    H, W = map_hw
    B, N, C = bev_feature.shape
    assert N == H * W
    Hp, Wp = H + 2 * PAD, W + 2 * PAD
    lpad = ((Hp * Wp + 127) // 128) * 128      # lane-dense per-batch segment length
    shift = PAD * Wp + PAD

    # Roll-wraparound invariants the kernel relies on (whole-plane-per-segment layout):
    #  * wrapped lanes of the +shift padding-rebuild rolls must land in a zero tail,
    #  * im2col reads from valid output lanes must stay inside the segment.
    # These silently break if a row-stripe grid axis is added -> use real halos then.
    assert lpad - H * Wp >= shift
    assert (H - 1 + K - 1) * Wp + (W - 1 + K - 1) < lpad

    bblk = _pick_batch_block(B) if batch_block is None else batch_block
    assert B % bblk == 0
    nb = B // bblk
    L = bblk * lpad

    # ---- wrapper glue (XLA): channels-first, W->Wp padded, lane-dense bev planes ----
    # TODO(synk): at production sizes fuse this layout/pad into the kernel DMA (index_map over
    # H-row stripes with PAD-row halos) and size stripes + vmem_limit_bytes for v7x's 64 MiB VMEM.
    x = bev_feature.astype(jnp.float32).reshape(nb, bblk, H, W, C)
    x = x.transpose(0, 4, 1, 2, 3)                                       # (nb, C, bblk, H, W)
    x = jnp.pad(x, ((0, 0),) * 4 + ((0, Wp - W),))                       # zero cols W..Wp-1
    x = x.reshape(nb, C, bblk, H * Wp)
    x = jnp.pad(x, ((0, 0),) * 3 + ((0, lpad - H * Wp),))                # zero tail lanes
    x = x.reshape(nb, C, L)

    # per-batch parking-plot embedding, tiny (nb, C, bblk, 1); broadcast happens in-kernel.
    ids = aim_parking_plot_id.astype(jnp.int32).reshape(B)
    pp = params["pp_query"][ids].astype(jnp.float32)                     # (B, C)
    pp = pp.T.reshape(C, nb, bblk).transpose(1, 0, 2)[..., None]         # (nb, C, bblk, 1)

    # valid-output-lane mask (h < H and w < W), per segment, tiled to the merged lane axis.
    lane = jnp.arange(lpad, dtype=jnp.int32)
    mask_seg = ((lane < H * Wp) & (lane % Wp < W)).astype(jnp.float32)
    mask = jnp.tile(mask_seg, bblk)[None, :]                             # (1, L)

    # conv weights: torch (Cout, Cin, KH, KW) -> (KH, Cout, KW*Cin) with BN scale folded in.
    # TODO(synk): BatchNorm is eval-mode only (running stats folded to scale/bias);
    # training-mode batch statistics are not reproduced.
    def fold(w_oihw, bn, eps=1e-5):
        gamma, beta, mean, var = bn
        scale = gamma / jnp.sqrt(var + eps)
        bias = beta - mean * scale
        cout = w_oihw.shape[0]
        wf = jnp.transpose(w_oihw, (2, 0, 3, 1)).reshape(K, cout, -1)    # (K, Cout, K*Cin)
        wf = (wf * scale[None, :, None]).astype(compute_dtype)
        return wf, bias.reshape(-1, 1).astype(jnp.float32)

    w1f, b1 = fold(params["w1"], params["bn1"])
    w2f, b2 = fold(params["w2"], params["bn2"])
    c_mid, c_out = w1f.shape[1], w2f.shape[1]
    assert c_out == C, "oup_channel must equal inp_channel for the residual add"

    kernel = functools.partial(_fusion_kernel, Wp=Wp, lpad=lpad, bblk=bblk)

    out_flat = pl.pallas_call(
        kernel,
        out_shape=jax.ShapeDtypeStruct((nb, c_out, L), jnp.float32),
        grid=(nb,),
        in_specs=[
            pl.BlockSpec((1, C, L), lambda b: (b, 0, 0)),                # bev plane (f32)
            pl.BlockSpec((1, C, bblk, 1), lambda b: (b, 0, 0, 0)),       # pp embedding
            pl.BlockSpec((1, L), lambda b: (0, 0)),                      # valid-lane mask
            pl.BlockSpec((K, c_mid, K * 2 * C), lambda b: (0, 0, 0)),    # conv1 weights (bf16)
            pl.BlockSpec((c_mid, 1), lambda b: (0, 0)),                  # conv1 BN bias
            pl.BlockSpec((K, c_out, K * c_mid), lambda b: (0, 0, 0)),    # conv2 weights (bf16)
            pl.BlockSpec((c_out, 1), lambda b: (0, 0)),                  # conv2 BN bias
        ],
        out_specs=pl.BlockSpec((1, c_out, L), lambda b: (b, 0, 0)),
        compiler_params=pltpu.CompilerParams(dimension_semantics=("parallel",)),
    )(x, pp, mask, w1f, b1, w2f, b2)

    # drop pad lanes -> (B, N, C), matching torch's flatten(2).permute(0, 2, 1) (+ residual done in-kernel)
    out = out_flat.reshape(nb, c_out, bblk, lpad)[:, :, :, :H * Wp]
    out = out.reshape(nb, c_out, bblk, H, Wp)[:, :, :, :, :W]
    out = out.reshape(nb, c_out, bblk, N).transpose(0, 2, 3, 1).reshape(B, N, c_out)
    return out.astype(bev_feature.dtype)


def feature_fusion_reference(bev_feature, aim_parking_plot_id, params, map_hw,
                             compute_dtype=jnp.float32):
    """Plain-JAX reference (XLA convolutions).

    With compute_dtype=float32 it reproduces the original module; with bfloat16 it uses the
    same operand-quantization policy as the Pallas kernel (bf16 conv operands, BN scale folded
    into weights, f32 accumulation) for a tight comparison.
    """
    H, W = map_hw
    B, N, C = bev_feature.shape
    pp = params["pp_query"][aim_parking_plot_id.astype(jnp.int32)]
    pp = jnp.broadcast_to(pp, (B, N, C))
    feat = jnp.concatenate([bev_feature, pp], axis=-1).reshape(B, H, W, 2 * C)

    def conv_bn_relu(x, w_oihw, bn, eps=1e-5):
        gamma, beta, mean, var = bn
        scale = gamma / jnp.sqrt(var + eps)
        bias = beta - mean * scale
        w = jnp.transpose(w_oihw, (2, 3, 1, 0)) * scale                  # HWIO, scale folded on O
        y = jax.lax.conv_general_dilated(
            x.astype(compute_dtype), w.astype(compute_dtype), (1, 1),
            [(PAD, PAD), (PAD, PAD)],
            dimension_numbers=("NHWC", "HWIO", "NHWC"),
            preferred_element_type=jnp.float32)
        return jnp.maximum(y + bias, 0.0)

    y = conv_bn_relu(feat, params["w1"], params["bn1"])
    y = conv_bn_relu(y, params["w2"], params["bn2"])
    return y.reshape(B, N, -1) + bev_feature


if __name__ == "__main__":
    # inp_channel = oup_channel = 4, mid_channel = 8, map_down_sample = (16, 16)
    B, C, MID, H, W = 4, 4, 8, 16, 16
    N = H * W

    key = jax.random.PRNGKey(0)
    ks = jax.random.split(key, 12)
    params = {
        "pp_query": jax.random.normal(ks[0], (3, C), jnp.float32),
        "w1": jax.random.normal(ks[1], (MID, 2 * C, K, K), jnp.float32) * 0.1,
        "bn1": (jax.random.uniform(ks[2], (MID,), jnp.float32, 0.5, 1.5),
                jax.random.normal(ks[3], (MID,), jnp.float32) * 0.1,
                jax.random.normal(ks[4], (MID,), jnp.float32) * 0.1,
                jax.random.uniform(ks[5], (MID,), jnp.float32, 0.5, 1.5)),
        "w2": jax.random.normal(ks[6], (C, MID, K, K), jnp.float32) * 0.1,
        "bn2": (jax.random.uniform(ks[7], (C,), jnp.float32, 0.5, 1.5),
                jax.random.normal(ks[8], (C,), jnp.float32) * 0.1,
                jax.random.normal(ks[9], (C,), jnp.float32) * 0.1,
                jax.random.uniform(ks[10], (C,), jnp.float32, 0.5, 1.5)),
    }
    bev = jax.random.normal(ks[11], (B, N, C), jnp.float32)
    plot_id = jnp.array([[0], [2], [1], [0]], dtype=jnp.int32)           # (B, 1)

    out = feature_fusion_forward(bev, plot_id, params, (H, W))
    out = jax.block_until_ready(out)
    assert out.shape == (B, N, C)

    # tight check: reference using the same bf16-operand policy as the kernel
    ref_bf16 = feature_fusion_reference(bev, plot_id, params, (H, W),
                                        compute_dtype=jnp.bfloat16)
    err = float(jnp.max(jnp.abs(out - ref_bf16)))
    assert err < 2.5e-2, f"max abs error vs bf16-matched reference: {err}"

    # loose check: pure-f32 reference (expected drift = bf16 MXU operand quantization)
    ref_f32 = feature_fusion_reference(bev, plot_id, params, (H, W),
                                       compute_dtype=jnp.float32)
    err32 = float(jnp.max(jnp.abs(out - ref_f32)))
    assert err32 < 2e-1, f"max abs error vs f32 reference: {err32}"

    print("KERNEL_OK")
</pallas_src>

<mosaic_0001>
module attributes {stable_mosaic.version = 11 : i64} {
  func.func @_fusion_kernel(%arg0: i32, %arg1: memref<1x4x1024xf32, #tpu.memory_space<vmem>>, %arg2: memref<1x4x2x1xf32, #tpu.memory_space<vmem>>, %arg3: memref<1x1024xf32, #tpu.memory_space<vmem>>, %arg4: memref<5x8x40xbf16, #tpu.memory_space<vmem>>, %arg5: memref<8x1xf32, #tpu.memory_space<vmem>>, %arg6: memref<5x4x40xbf16, #tpu.memory_space<vmem>>, %arg7: memref<4x1xf32, #tpu.memory_space<vmem>>, %arg8: memref<1x4x1024xf32, #tpu.memory_space<vmem>>) attributes {dimension_semantics = [#tpu.dimension_semantics<parallel>], iteration_bounds = array<i64: 2>, scalar_prefetch = 0 : i64, scratch_operands = 0 : i64, tpu.core_type = #tpu.core_type<tc>, window_params = [{transform_indices = @transform_0, window_bounds = array<i64: 1, 4, 1024>}, {transform_indices = @transform_1, window_bounds = array<i64: 1, 4, 2, 1>}, {pipeline_mode = #tpu.pipeline_mode<synchronous>, transform_indices = @transform_2, window_bounds = array<i64: 1, 1024>}, {pipeline_mode = #tpu.pipeline_mode<synchronous>, transform_indices = @transform_3, window_bounds = array<i64: 5, 8, 40>}, {pipeline_mode = #tpu.pipeline_mode<synchronous>, transform_indices = @transform_4, window_bounds = array<i64: 8, 1>}, {pipeline_mode = #tpu.pipeline_mode<synchronous>, transform_indices = @transform_5, window_bounds = array<i64: 5, 4, 40>}, {pipeline_mode = #tpu.pipeline_mode<synchronous>, transform_indices = @transform_6, window_bounds = array<i64: 4, 1>}, {transform_indices = @transform_7, window_bounds = array<i64: 1, 4, 1024>}]} {
    %c0 = arith.constant 0 : index
    %c0_0 = arith.constant 0 : index
    %c0_1 = arith.constant 0 : index
    %0 = vector.load %arg1[%c0, %c0_0, %c0_1] : memref<1x4x1024xf32, #tpu.memory_space<vmem>>, vector<1x4x1024xf32>
    %1 = vector.shape_cast %0 : vector<1x4x1024xf32> to vector<4x1024xf32>
    %c0_2 = arith.constant 0 : index
    %c0_3 = arith.constant 0 : index
    %2 = vector.load %arg3[%c0_2, %c0_3] : memref<1x1024xf32, #tpu.memory_space<vmem>>, vector<1x1024xf32>
    %c42_i32 = arith.constant 42 : i32
    %3 = tpu.dynamic_rotate %2 by %c42_i32 dim 1 : vector<1x1024xf32>, i32 -> vector<1x1024xf32>
    %c42_i32_4 = arith.constant 42 : i32
    %4 = tpu.dynamic_rotate %1 by %c42_i32_4 dim 1 : vector<4x1024xf32>, i32 -> vector<4x1024xf32>
    %c0_5 = arith.constant 0 : index
    %c0_6 = arith.constant 0 : index
    %c0_7 = arith.constant 0 : index
    %c0_8 = arith.constant 0 : index
    %5 = vector.load %arg2[%c0_5, %c0_6, %c0_7, %c0_8] : memref<1x4x2x1xf32, #tpu.memory_space<vmem>>, vector<1x4x2x1xf32>
    %6 = vector.shape_cast %5 : vector<1x4x2x1xf32> to vector<4x2x1xf32>
    %7 = vector.extract_strided_slice %6 {offsets = [0, 0, 0], sizes = [4, 1, 1], strides = [1, 1, 1]} : vector<4x2x1xf32> to vector<4x1x1xf32>
    %8 = vector.shape_cast %7 : vector<4x1x1xf32> to vector<4x1xf32>
    %9 = vector.shape_cast %8 : vector<4x1xf32> to vector<4x1xf32>
    %10 = vector.broadcast %9 : vector<4x1xf32> to vector<4x512xf32>
    %11 = vector.extract_strided_slice %6 {offsets = [0, 1, 0], sizes = [4, 1, 1], strides = [1, 1, 1]} : vector<4x2x1xf32> to vector<4x1x1xf32>
    %12 = vector.shape_cast %11 : vector<4x1x1xf32> to vector<4x1xf32>
    %13 = vector.shape_cast %12 : vector<4x1xf32> to vector<4x1xf32>
    %14 = vector.broadcast %13 : vector<4x1xf32> to vector<4x512xf32>
    %15 = tpu.concatenate %10, %14 in 1 : vector<4x512xf32>, vector<4x512xf32> -> vector<4x1024xf32>
    %16 = vector.broadcast %3 : vector<1x1024xf32> to vector<4x1024xf32>
    %17 = arith.mulf %15, %16 : vector<4x1024xf32>
    %18 = tpu.concatenate %4, %17 in 0 : vector<4x1024xf32>, vector<4x1024xf32> -> vector<8x1024xf32>
    %c1023_i32 = arith.constant 1023 : i32
    %19 = tpu.dynamic_rotate %18 by %c1023_i32 dim 1 : vector<8x1024xf32>, i32 -> vector<8x1024xf32>
    %c1022_i32 = arith.constant 1022 : i32
    %20 = tpu.dynamic_rotate %18 by %c1022_i32 dim 1 : vector<8x1024xf32>, i32 -> vector<8x1024xf32>
    %c1021_i32 = arith.constant 1021 : i32
    %21 = tpu.dynamic_rotate %18 by %c1021_i32 dim 1 : vector<8x1024xf32>, i32 -> vector<8x1024xf32>
    %c1020_i32 = arith.constant 1020 : i32
    %22 = tpu.dynamic_rotate %18 by %c1020_i32 dim 1 : vector<8x1024xf32>, i32 -> vector<8x1024xf32>
    %23 = tpu.concatenate %18, %19, %20, %21, %22 in 0 : vector<8x1024xf32>, vector<8x1024xf32>, vector<8x1024xf32>, vector<8x1024xf32>, vector<8x1024xf32> -> vector<40x1024xf32>
    %24 = arith.truncf %23 : vector<40x1024xf32> to vector<40x1024xbf16>
    %c0_9 = arith.constant 0 : index
    %c0_10 = arith.constant 0 : index
    %c0_11 = arith.constant 0 : index
    %25 = vector.load %arg4[%c0_9, %c0_10, %c0_11] : memref<5x8x40xbf16, #tpu.memory_space<vmem>>, vector<1x8x40xbf16>
    %26 = vector.shape_cast %25 : vector<1x8x40xbf16> to vector<8x40xbf16>
    %cst = arith.constant dense<0.000000e+00> : vector<8x1024xf32>
    %27 = tpu.matmul %26, %24, %cst {dimension_numbers = #tpu.dot_dimension_numbers<[1], [0], [0], [1], [0, 0, 1, 1], [], []>} : vector<8x40xbf16>, vector<40x1024xbf16>, vector<8x1024xf32> -> vector<8x1024xf32>
    %c1004_i32 = arith.constant 1004 : i32
    %28 = tpu.dynamic_rotate %18 by %c1004_i32 dim 1 : vector<8x1024xf32>, i32 -> vector<8x1024xf32>
    %c1003_i32 = arith.constant 1003 : i32
    %29 = tpu.dynamic_rotate %18 by %c1003_i32 dim 1 : vector<8x1024xf32>, i32 -> vector<8x1024xf32>
    %c1002_i32 = arith.constant 1002 : i32
    %30 = tpu.dynamic_rotate %18 by %c1002_i32 dim 1 : vector<8x1024xf32>, i32 -> vector<8x1024xf32>
    %c1001_i32 = arith.constant 1001 : i32
    %31 = tpu.dynamic_rotate %18 by %c1001_i32 dim 1 : vector<8x1024xf32>, i32 -> vector<8x1024xf32>
    %c1000_i32 = arith.constant 1000 : i32
    %32 = tpu.dynamic_rotate %18 by %c1000_i32 dim 1 : vector<8x1024xf32>, i32 -> vector<8x1024xf32>
    %33 = tpu.concatenate %28, %29, %30, %31, %32 in 0 : vector<8x1024xf32>, vector<8x1024xf32>, vector<8x1024xf32>, vector<8x1024xf32>, vector<8x1024xf32> -> vector<40x1024xf32>
    %34 = arith.truncf %33 : vector<40x1024xf32> to vector<40x1024xbf16>
    %c1 = arith.constant 1 : index
    %c0_12 = arith.constant 0 : index
    %c0_13 = arith.constant 0 : index
    %35 = vector.load %arg4[%c1, %c0_12, %c0_13] : memref<5x8x40xbf16, #tpu.memory_space<vmem>>, vector<1x8x40xbf16>
    %36 = vector.shape_cast %35 : vector<1x8x40xbf16> to vector<8x40xbf16>
    %cst_14 = arith.constant dense<0.000000e+00> : vector<8x1024xf32>
    %37 = tpu.matmul %36, %34, %cst_14 {dimension_numbers = #tpu.dot_dimension_numbers<[1], [0], [0], [1], [0, 0, 1, 1], [], []>} : vector<8x40xbf16>, vector<40x1024xbf16>, vector<8x1024xf32> -> vector<8x1024xf32>
    %38 = arith.addf %27, %37 : vector<8x1024xf32>
    %c984_i32 = arith.constant 984 : i32
    %39 = tpu.dynamic_rotate %18 by %c984_i32 dim 1 : vector<8x1024xf32>, i32 -> vector<8x1024xf32>
    %c983_i32 = arith.constant 983 : i32
    %40 = tpu.dynamic_rotate %18 by %c983_i32 dim 1 : vector<8x1024xf32>, i32 -> vector<8x1024xf32>
    %c982_i32 = arith.constant 982 : i32
    %41 = tpu.dynamic_rotate %18 by %c982_i32 dim 1 : vector<8x1024xf32>, i32 -> vector<8x1024xf32>
    %c981_i32 = arith.constant 981 : i32
    %42 = tpu.dynamic_rotate %18 by %c981_i32 dim 1 : vector<8x1024xf32>, i32 -> vector<8x1024xf32>
    %c980_i32 = arith.constant 980 : i32
    %43 = tpu.dynamic_rotate %18 by %c980_i32 dim 1 : vector<8x1024xf32>, i32 -> vector<8x1024xf32>
    %44 = tpu.concatenate %39, %40, %41, %42, %43 in 0 : vector<8x1024xf32>, vector<8x1024xf32>, vector<8x1024xf32>, vector<8x1024xf32>, vector<8x1024xf32> -> vector<40x1024xf32>
    %45 = arith.truncf %44 : vector<40x1024xf32> to vector<40x1024xbf16>
    %c2 = arith.constant 2 : index
    %c0_15 = arith.constant 0 : index
    %c0_16 = arith.constant 0 : index
    %46 = vector.load %arg4[%c2, %c0_15, %c0_16] : memref<5x8x40xbf16, #tpu.memory_space<vmem>>, vector<1x8x40xbf16>
    %47 = vector.shape_cast %46 : vector<1x8x40xbf16> to vector<8x40xbf16>
    %cst_17 = arith.constant dense<0.000000e+00> : vector<8x1024xf32>
    %48 = tpu.matmul %47, %45, %cst_17 {dimension_numbers = #tpu.dot_dimension_numbers<[1], [0], [0], [1], [0, 0, 1, 1], [], []>} : vector<8x40xbf16>, vector<40x1024xbf16>, vector<8x1024xf32> -> vector<8x1024xf32>
    %49 = arith.addf %38, %48 : vector<8x1024xf32>
    %c964_i32 = arith.constant 964 : i32
    %50 = tpu.dynamic_rotate %18 by %c964_i32 dim 1 : vector<8x1024xf32>, i32 -> vector<8x1024xf32>
    %c963_i32 = arith.constant 963 : i32
    %51 = tpu.dynamic_rotate %18 by %c963_i32 dim 1 : vector<8x1024xf32>, i32 -> vector<8x1024xf32>
    %c962_i32 = arith.constant 962 : i32
    %52 = tpu.dynamic_rotate %18 by %c962_i32 dim 1 : vector<8x1024xf32>, i32 -> vector<8x1024xf32>
    %c961_i32 = arith.constant 961 : i32
    %53 = tpu.dynamic_rotate %18 by %c961_i32 dim 1 : vector<8x1024xf32>, i32 -> vector<8x1024xf32>
    %c960_i32 = arith.constant 960 : i32
    %54 = tpu.dynamic_rotate %18 by %c960_i32 dim 1 : vector<8x1024xf32>, i32 -> vector<8x1024xf32>
    %55 = tpu.concatenate %50, %51, %52, %53, %54 in 0 : vector<8x1024xf32>, vector<8x1024xf32>, vector<8x1024xf32>, vector<8x1024xf32>, vector<8x1024xf32> -> vector<40x1024xf32>
    %56 = arith.truncf %55 : vector<40x1024xf32> to vector<40x1024xbf16>
    %c3 = arith.constant 3 : index
    %c0_18 = arith.constant 0 : index
    %c0_19 = arith.constant 0 : index
    %57 = vector.load %arg4[%c3, %c0_18, %c0_19] : memref<5x8x40xbf16, #tpu.memory_space<vmem>>, vector<1x8x40xbf16>
    %58 = vector.shape_cast %57 : vector<1x8x40xbf16> to vector<8x40xbf16>
    %cst_20 = arith.constant dense<0.000000e+00> : vector<8x1024xf32>
    %59 = tpu.matmul %58, %56, %cst_20 {dimension_numbers = #tpu.dot_dimension_numbers<[1], [0], [0], [1], [0, 0, 1, 1], [], []>} : vector<8x40xbf16>, vector<40x1024xbf16>, vector<8x1024xf32> -> vector<8x1024xf32>
    %60 = arith.addf %49, %59 : vector<8x1024xf32>
    %c944_i32 = arith.constant 944 : i32
    %61 = tpu.dynamic_rotate %18 by %c944_i32 dim 1 : vector<8x1024xf32>, i32 -> vector<8x1024xf32>
    %c943_i32 = arith.constant 943 : i32
    %62 = tpu.dynamic_rotate %18 by %c943_i32 dim 1 : vector<8x1024xf32>, i32 -> vector<8x1024xf32>
    %c942_i32 = arith.constant 942 : i32
    %63 = tpu.dynamic_rotate %18 by %c942_i32 dim 1 : vector<8x1024xf32>, i32 -> vector<8x1024xf32>
    %c941_i32 = arith.constant 941 : i32
    %64 = tpu.dynamic_rotate %18 by %c941_i32 dim 1 : vector<8x1024xf32>, i32 -> vector<8x1024xf32>
    %c940_i32 = arith.constant 940 : i32
    %65 = tpu.dynamic_rotate %18 by %c940_i32 dim 1 : vector<8x1024xf32>, i32 -> vector<8x1024xf32>
    %66 = tpu.concatenate %61, %62, %63, %64, %65 in 0 : vector<8x1024xf32>, vector<8x1024xf32>, vector<8x1024xf32>, vector<8x1024xf32>, vector<8x1024xf32> -> vector<40x1024xf32>
    %67 = arith.truncf %66 : vector<40x1024xf32> to vector<40x1024xbf16>
    %c4 = arith.constant 4 : index
    %c0_21 = arith.constant 0 : index
    %c0_22 = arith.constant 0 : index
    %68 = vector.load %arg4[%c4, %c0_21, %c0_22] : memref<5x8x40xbf16, #tpu.memory_space<vmem>>, vector<1x8x40xbf16>
    %69 = vector.shape_cast %68 : vector<1x8x40xbf16> to vector<8x40xbf16>
    %cst_23 = arith.constant dense<0.000000e+00> : vector<8x1024xf32>
    %70 = tpu.matmul %69, %67, %cst_23 {dimension_numbers = #tpu.dot_dimension_numbers<[1], [0], [0], [1], [0, 0, 1, 1], [], []>} : vector<8x40xbf16>, vector<40x1024xbf16>, vector<8x1024xf32> -> vector<8x1024xf32>
    %71 = arith.addf %60, %70 : vector<8x1024xf32>
    %c0_24 = arith.constant 0 : index
    %c0_25 = arith.constant 0 : index
    %72 = vector.load %arg5[%c0_24, %c0_25] : memref<8x1xf32, #tpu.memory_space<vmem>>, vector<8x1xf32>
    %73 = vector.broadcast %72 : vector<8x1xf32> to vector<8x1024xf32>
    %74 = arith.addf %71, %73 : vector<8x1024xf32>
    %cst_26 = arith.constant 0.000000e+00 : f32
    %75 = vector.broadcast %cst_26 : f32 to vector<8x1024xf32>
    %76 = arith.maximumf %74, %75 : vector<8x1024xf32>
    %77 = vector.broadcast %2 : vector<1x1024xf32> to vector<8x1024xf32>
    %78 = arith.mulf %76, %77 : vector<8x1024xf32>
    %c42_i32_27 = arith.constant 42 : i32
    %79 = tpu.dynamic_rotate %78 by %c42_i32_27 dim 1 : vector<8x1024xf32>, i32 -> vector<8x1024xf32>
    %c1023_i32_28 = arith.constant 1023 : i32
    %80 = tpu.dynamic_rotate %79 by %c1023_i32_28 dim 1 : vector<8x1024xf32>, i32 -> vector<8x1024xf32>
    %c1022_i32_29 = arith.constant 1022 : i32
    %81 = tpu.dynamic_rotate %79 by %c1022_i32_29 dim 1 : vector<8x1024xf32>, i32 -> vector<8x1024xf32>
    %c1021_i32_30 = arith.constant 1021 : i32
    %82 = tpu.dynamic_rotate %79 by %c1021_i32_30 dim 1 : vector<8x1024xf32>, i32 -> vector<8x1024xf32>
    %c1020_i32_31 = arith.constant 1020 : i32
    %83 = tpu.dynamic_rotate %79 by %c1020_i32_31 dim 1 : vector<8x1024xf32>, i32 -> vector<8x1024xf32>
    %84 = tpu.concatenate %79, %80, %81, %82, %83 in 0 : vector<8x1024xf32>, vector<8x1024xf32>, vector<8x1024xf32>, vector<8x1024xf32>, vector<8x1024xf32> -> vector<40x1024xf32>
    %85 = arith.truncf %84 : vector<40x1024xf32> to vector<40x1024xbf16>
    %c0_32 = arith.constant 0 : index
    %c0_33 = arith.constant 0 : index
    %c0_34 = arith.constant 0 : index
    %86 = vector.load %arg6[%c0_32, %c0_33, %c0_34] : memref<5x4x40xbf16, #tpu.memory_space<vmem>>, vector<1x4x40xbf16>
    %87 = vector.shape_cast %86 : vector<1x4x40xbf16> to vector<4x40xbf16>
    %cst_35 = arith.constant dense<0.000000e+00> : vector<4x1024xf32>
    %88 = tpu.matmul %87, %85, %cst_35 {dimension_numbers = #tpu.dot_dimension_numbers<[1], [0], [0], [1], [0, 0, 1, 1], [], []>} : vector<4x40xbf16>, vector<40x1024xbf16>, vector<4x1024xf32> -> vector<4x1024xf32>
    %c1004_i32_36 = arith.constant 1004 : i32
    %89 = tpu.dynamic_rotate %79 by %c1004_i32_36 dim 1 : vector<8x1024xf32>, i32 -> vector<8x1024xf32>
    %c1003_i32_37 = arith.constant 1003 : i32
    %90 = tpu.dynamic_rotate %79 by %c1003_i32_37 dim 1 : vector<8x1024xf32>, i32 -> vector<8x1024xf32>
    %c1002_i32_38 = arith.constant 1002 : i32
    %91 = tpu.dynamic_rotate %79 by %c1002_i32_38 dim 1 : vector<8x1024xf32>, i32 -> vector<8x1024xf32>
    %c1001_i32_39 = arith.constant 1001 : i32
    %92 = tpu.dynamic_rotate %79 by %c1001_i32_39 dim 1 : vector<8x1024xf32>, i32 -> vector<8x1024xf32>
    %c1000_i32_40 = arith.constant 1000 : i32
    %93 = tpu.dynamic_rotate %79 by %c1000_i32_40 dim 1 : vector<8x1024xf32>, i32 -> vector<8x1024xf32>
    %94 = tpu.concatenate %89, %90, %91, %92, %93 in 0 : vector<8x1024xf32>, vector<8x1024xf32>, vector<8x1024xf32>, vector<8x1024xf32>, vector<8x1024xf32> -> vector<40x1024xf32>
    %95 = arith.truncf %94 : vector<40x1024xf32> to vector<40x1024xbf16>
    %c1_41 = arith.constant 1 : index
    %c0_42 = arith.constant 0 : index
    %c0_43 = arith.constant 0 : index
    %96 = vector.load %arg6[%c1_41, %c0_42, %c0_43] : memref<5x4x40xbf16, #tpu.memory_space<vmem>>, vector<1x4x40xbf16>
    %97 = vector.shape_cast %96 : vector<1x4x40xbf16> to vector<4x40xbf16>
    %cst_44 = arith.constant dense<0.000000e+00> : vector<4x1024xf32>
    %98 = tpu.matmul %97, %95, %cst_44 {dimension_numbers = #tpu.dot_dimension_numbers<[1], [0], [0], [1], [0, 0, 1, 1], [], []>} : vector<4x40xbf16>, vector<40x1024xbf16>, vector<4x1024xf32> -> vector<4x1024xf32>
    %99 = arith.addf %88, %98 : vector<4x1024xf32>
    %c984_i32_45 = arith.constant 984 : i32
    %100 = tpu.dynamic_rotate %79 by %c984_i32_45 dim 1 : vector<8x1024xf32>, i32 -> vector<8x1024xf32>
    %c983_i32_46 = arith.constant 983 : i32
    %101 = tpu.dynamic_rotate %79 by %c983_i32_46 dim 1 : vector<8x1024xf32>, i32 -> vector<8x1024xf32>
    %c982_i32_47 = arith.constant 982 : i32
    %102 = tpu.dynamic_rotate %79 by %c982_i32_47 dim 1 : vector<8x1024xf32>, i32 -> vector<8x1024xf32>
    %c981_i32_48 = arith.constant 981 : i32
    %103 = tpu.dynamic_rotate %79 by %c981_i32_48 dim 1 : vector<8x1024xf32>, i32 -> vector<8x1024xf32>
    %c980_i32_49 = arith.constant 980 : i32
    %104 = tpu.dynamic_rotate %79 by %c980_i32_49 dim 1 : vector<8x1024xf32>, i32 -> vector<8x1024xf32>
    %105 = tpu.concatenate %100, %101, %102, %103, %104 in 0 : vector<8x1024xf32>, vector<8x1024xf32>, vector<8x1024xf32>, vector<8x1024xf32>, vector<8x1024xf32> -> vector<40x1024xf32>
    %106 = arith.truncf %105 : vector<40x1024xf32> to vector<40x1024xbf16>
    %c2_50 = arith.constant 2 : index
    %c0_51 = arith.constant 0 : index
    %c0_52 = arith.constant 0 : index
    %107 = vector.load %arg6[%c2_50, %c0_51, %c0_52] : memref<5x4x40xbf16, #tpu.memory_space<vmem>>, vector<1x4x40xbf16>
    %108 = vector.shape_cast %107 : vector<1x4x40xbf16> to vector<4x40xbf16>
    %cst_53 = arith.constant dense<0.000000e+00> : vector<4x1024xf32>
    %109 = tpu.matmul %108, %106, %cst_53 {dimension_numbers = #tpu.dot_dimension_numbers<[1], [0], [0], [1], [0, 0, 1, 1], [], []>} : vector<4x40xbf16>, vector<40x1024xbf16>, vector<4x1024xf32> -> vector<4x1024xf32>
    %110 = arith.addf %99, %109 : vector<4x1024xf32>
    %c964_i32_54 = arith.constant 964 : i32
    %111 = tpu.dynamic_rotate %79 by %c964_i32_54 dim 1 : vector<8x1024xf32>, i32 -> vector<8x1024xf32>
    %c963_i32_55 = arith.constant 963 : i32
    %112 = tpu.dynamic_rotate %79 by %c963_i32_55 dim 1 : vector<8x1024xf32>, i32 -> vector<8x1024xf32>
    %c962_i32_56 = arith.constant 962 : i32
    %113 = tpu.dynamic_rotate %79 by %c962_i32_56 dim 1 : vector<8x1024xf32>, i32 -> vector<8x1024xf32>
    %c961_i32_57 = arith.constant 961 : i32
    %114 = tpu.dynamic_rotate %79 by %c961_i32_57 dim 1 : vector<8x1024xf32>, i32 -> vector<8x1024xf32>
    %c960_i32_58 = arith.constant 960 : i32
    %115 = tpu.dynamic_rotate %79 by %c960_i32_58 dim 1 : vector<8x1024xf32>, i32 -> vector<8x1024xf32>
    %116 = tpu.concatenate %111, %112, %113, %114, %115 in 0 : vector<8x1024xf32>, vector<8x1024xf32>, vector<8x1024xf32>, vector<8x1024xf32>, vector<8x1024xf32> -> vector<40x1024xf32>
    %117 = arith.truncf %116 : vector<40x1024xf32> to vector<40x1024xbf16>
    %c3_59 = arith.constant 3 : index
    %c0_60 = arith.constant 0 : index
    %c0_61 = arith.constant 0 : index
    %118 = vector.load %arg6[%c3_59, %c0_60, %c0_61] : memref<5x4x40xbf16, #tpu.memory_space<vmem>>, vector<1x4x40xbf16>
    %119 = vector.shape_cast %118 : vector<1x4x40xbf16> to vector<4x40xbf16>
    %cst_62 = arith.constant dense<0.000000e+00> : vector<4x1024xf32>
    %120 = tpu.matmul %119, %117, %cst_62 {dimension_numbers = #tpu.dot_dimension_numbers<[1], [0], [0], [1], [0, 0, 1, 1], [], []>} : vector<4x40xbf16>, vector<40x1024xbf16>, vector<4x1024xf32> -> vector<4x1024xf32>
    %121 = arith.addf %110, %120 : vector<4x1024xf32>
    %c944_i32_63 = arith.constant 944 : i32
    %122 = tpu.dynamic_rotate %79 by %c944_i32_63 dim 1 : vector<8x1024xf32>, i32 -> vector<8x1024xf32>
    %c943_i32_64 = arith.constant 943 : i32
    %123 = tpu.dynamic_rotate %79 by %c943_i32_64 dim 1 : vector<8x1024xf32>, i32 -> vector<8x1024xf32>
    %c942_i32_65 = arith.constant 942 : i32
    %124 = tpu.dynamic_rotate %79 by %c942_i32_65 dim 1 : vector<8x1024xf32>, i32 -> vector<8x1024xf32>
    %c941_i32_66 = arith.constant 941 : i32
    %125 = tpu.dynamic_rotate %79 by %c941_i32_66 dim 1 : vector<8x1024xf32>, i32 -> vector<8x1024xf32>
    %c940_i32_67 = arith.constant 940 : i32
    %126 = tpu.dynamic_rotate %79 by %c940_i32_67 dim 1 : vector<8x1024xf32>, i32 -> vector<8x1024xf32>
    %127 = tpu.concatenate %122, %123, %124, %125, %126 in 0 : vector<8x1024xf32>, vector<8x1024xf32>, vector<8x1024xf32>, vector<8x1024xf32>, vector<8x1024xf32> -> vector<40x1024xf32>
    %128 = arith.truncf %127 : vector<40x1024xf32> to vector<40x1024xbf16>
    %c4_68 = arith.constant 4 : index
    %c0_69 = arith.constant 0 : index
    %c0_70 = arith.constant 0 : index
    %129 = vector.load %arg6[%c4_68, %c0_69, %c0_70] : memref<5x4x40xbf16, #tpu.memory_space<vmem>>, vector<1x4x40xbf16>
    %130 = vector.shape_cast %129 : vector<1x4x40xbf16> to vector<4x40xbf16>
    %cst_71 = arith.constant dense<0.000000e+00> : vector<4x1024xf32>
    %131 = tpu.matmul %130, %128, %cst_71 {dimension_numbers = #tpu.dot_dimension_numbers<[1], [0], [0], [1], [0, 0, 1, 1], [], []>} : vector<4x40xbf16>, vector<40x1024xbf16>, vector<4x1024xf32> -> vector<4x1024xf32>
    %132 = arith.addf %121, %131 : vector<4x1024xf32>
    %c0_72 = arith.constant 0 : index
    %c0_73 = arith.constant 0 : index
    %133 = vector.load %arg7[%c0_72, %c0_73] : memref<4x1xf32, #tpu.memory_space<vmem>>, vector<4x1xf32>
    %134 = vector.broadcast %133 : vector<4x1xf32> to vector<4x1024xf32>
    %135 = arith.addf %132, %134 : vector<4x1024xf32>
    %cst_74 = arith.constant 0.000000e+00 : f32
    %136 = vector.broadcast %cst_74 : f32 to vector<4x1024xf32>
    %137 = arith.maximumf %135, %136 : vector<4x1024xf32>
    %138 = arith.addf %137, %1 : vector<4x1024xf32>
    %c0_75 = arith.constant 0 : index
    %c0_76 = arith.constant 0 : index
    %c0_77 = arith.constant 0 : index
    %139 = vector.load %arg8[%c0_75, %c0_76, %c0_77] : memref<1x4x1024xf32, #tpu.memory_space<vmem>>, vector<1x4x1024xf32>
    %140 = vector.shape_cast %139 : vector<1x4x1024xf32> to vector<4x1024xf32>
    %141 = vector.shape_cast %138 : vector<4x1024xf32> to vector<1x4x1024xf32>
    tpu.vector_store %arg8[%c0_75, %c0_76, %c0_77], %141 {strides = array<i32>} : memref<1x4x1024xf32, #tpu.memory_space<vmem>>, vector<1x4x1024xf32>,
    return
  }
  func.func @transform_0(%arg0: i32) -> (i32, i32, i32) {
    %c0_i32 = arith.constant 0 : i32
    %c0_i32_0 = arith.constant 0 : i32
    %c0_i32_1 = arith.constant 0 : i32
    return %arg0, %c0_i32, %c0_i32_0 : i32, i32, i32
  }
  func.func @transform_1(%arg0: i32) -> (i32, i32, i32, i32) {
    %c0_i32 = arith.constant 0 : i32
    %c0_i32_0 = arith.constant 0 : i32
    %c0_i32_1 = arith.constant 0 : i32
    %c0_i32_2 = arith.constant 0 : i32
    return %arg0, %c0_i32, %c0_i32_0, %c0_i32_1 : i32, i32, i32, i32
  }
  func.func @transform_2(%arg0: i32) -> (i32, i32) {
    %c0_i32 = arith.constant 0 : i32
    %c0_i32_0 = arith.constant 0 : i32
    %c0_i32_1 = arith.constant 0 : i32
    return %c0_i32, %c0_i32_0 : i32, i32
  }
  func.func @transform_3(%arg0: i32) -> (i32, i32, i32) {
    %c0_i32 = arith.constant 0 : i32
    %c0_i32_0 = arith.constant 0 : i32
    %c0_i32_1 = arith.constant 0 : i32
    %c0_i32_2 = arith.constant 0 : i32
    return %c0_i32, %c0_i32_0, %c0_i32_1 : i32, i32, i32
  }
  func.func @transform_4(%arg0: i32) -> (i32, i32) {
    %c0_i32 = arith.constant 0 : i32
    %c0_i32_0 = arith.constant 0 : i32
    %c0_i32_1 = arith.constant 0 : i32
    return %c0_i32, %c0_i32_0 : i32, i32
  }
  func.func @transform_5(%arg0: i32) -> (i32, i32, i32) {
    %c0_i32 = arith.constant 0 : i32
    %c0_i32_0 = arith.constant 0 : i32
    %c0_i32_1 = arith.constant 0 : i32
    %c0_i32_2 = arith.constant 0 : i32
    return %c0_i32, %c0_i32_0, %c0_i32_1 : i32, i32, i32
  }
  func.func @transform_6(%arg0: i32) -> (i32, i32) {
    %c0_i32 = arith.constant 0 : i32
    %c0_i32_0 = arith.constant 0 : i32
    %c0_i32_1 = arith.constant 0 : i32
    return %c0_i32, %c0_i32_0 : i32, i32
  }
  func.func @transform_7(%arg0: i32) -> (i32, i32, i32) {
    %c0_i32 = arith.constant 0 : i32
    %c0_i32_0 = arith.constant 0 : i32
    %c0_i32_1 = arith.constant 0 : i32
    return %arg0, %c0_i32, %c0_i32_0 : i32, i32, i32
  }
}

</mosaic_0001>

<bundles_post_ra>
// kernel: tpu_custom_call.1
= control target key start
LH: loop header
LB: loop body
LE: loop exit
PB: predicated region body
PF: predicated region fallthrough
CT: control target
= control target key end

     0   :  { %s8480_s0 = inlined_call_operand.hbm [shape: f32[2,4,1024], index: 0, kind: input, shape index: {}]   ;;  %s8481_s1 = inlined_call_operand.vmem [shape: f32[2,4,2,1], index: 1, kind: input, shape index: {}]   ;;  %s8482_s2 = inlined_call_operand.vmem [shape: f32[1,1024], index: 2, kind: input, shape index: {}]   ;;  %s8483_s3 = inlined_call_operand.vmem [shape: bf16[5,8,40], index: 3, kind: input, shape index: {}]   ;;  %s8484_s4 = inlined_call_operand.vmem [shape: f32[8,1], index: 4, kind: input, shape index: {}]   ;;  %s8485_s5 = inlined_call_operand.vmem [shape: bf16[5,4,40], index: 5, kind: input, shape index: {}]   ;;  %s8486_s6 = inlined_call_operand.vmem [shape: f32[4,1], index: 6, kind: input, shape index: {}]   ;;  %s8487_s7 = inlined_call_operand.hbm [shape: f32[2,4,1024], index: 7, kind: output, shape index: {}]  }
   0x1   :  { %8625 = sst [smem:[#allocation50_spill]] %s8480_s0 }
   0x2   :  { %8626 = sst [smem:[#allocation51_spill]] %s8481_s1 }
   0x3   :  { %8627 = sst [smem:[#allocation52_spill]] %s8482_s2 }
   0x4   :  { %8628 = sst [smem:[#allocation53_spill]] %s8483_s3 }
   0x5   :  { %8629 = sst [smem:[#allocation54_spill]] %s8484_s4 }
   0x6   :  { %12 = vsyncpa [#allocation3], 0 }
   0x7   :  { %14 = vsyncpa [#allocation3 + $0x1], 0 }
   0x8   :  { %15 = vsyncpa [#allocation4], 0 }
   0x9   :  { %17 = vsyncpa [#allocation4 + $0x1], 0  ;;  %s5470_s24 = smov 0   ;;  %s5472_s25 = smov 0  }
   0xa   :  { %s5474_s26 = smov 0   ;;  %s5476_s27 = smov 0  }
   0xb LB: > { %8630 = sst [smem:[#allocation8_spill]] %s5396_s26  ;;  %s5491_s28 = sadd.s32 4294967295, %s5400_s27   ;;  %s5400_s27 = sphi %s5476_s27, %s8935_s27   ;;  %s5396_s26 = sphi %s5474_s26, %s8932_s26   ;;  %s5392_s25 = sphi %s5472_s25, %s8934_s25   ;;  %s5388_s24 = sphi %s5470_s24, %s8933_s24  }
   0xc   : > { %s4129_s29 = sadd.s32 4294967294, %s5400_s27   ;;  %s5495_s30 = sadd.s32 1, %s5400_s27  }
   0xd   : > { %s30_s8 = sadd.s32 1, %s5396_s26  ;;  %s27_s9 = ssub.s32 %s5400_s27, %s5495_s30 }
   0xe   : > { %p37_p0 = scmp.ne.s32.totalorder %s5396_s26, %s5392_s25  ;;  %p28_p1 = scmp.eq.s32.totalorder %s27_s9, 0 }
   0xf   : > { %p38_p2 = scmp.eq.s32.totalorder %s5400_s27, 0  ;;  %p43_p3 = scmp.ne.s32.totalorder %s5392_s25, %s5388_s24 }
  0x10   : > { %p44_p4 = scmp.eq.s32.totalorder %s5491_s28, 0  ;;  %p198_p7 = scmp.eq.s32.totalorder %s5491_s28, 1 }
  0x11   : > { %s5507_s10 = scalar_select %p28_p1, %s5396_s26, %s30_s8  }
  0x12   : > { %p5509_p5 = por %p38_p2, %p37_p0  ;;  %p5513_p6 = por %p44_p4, %p43_p3 }
  0x13   : > { %8631 = sst [smem:[#allocation9_spill]] %s5507_s10  ;;  %p204_p8 = scmp.eq.s32.totalorder %s4129_s29, 1 }
  0x14   : > { %s8633_s12 = scalar_select %p5513_p6, 1, 0 }
  0x15   : > { %p4248_p10 = scmp.lt.s32.totalorder %s5400_s27, 2  ;;  %p5520_p11 = por %p198_p7, %p37_p0 }
  0x16   : > { %p5524_p12 = por %p204_p8, %p43_p3  ;;  %s239_s15 = sand.u32 1, %s5396_s26  }
  0x17   : > { %s8634_s13 = scalar_select %p5520_p11, 1, 0 }
  0x18   : > { %s8635_s14 = scalar_select %p5524_p12, 1, 0 }
  0x19   : > { %s4233_s16 = sshll.u32 %s5400_s27, 9  ;;  %s4132_s17 = sshll.u32 %s239_s15, 5 }
  0x1a   : > { %s8636_s0 = sld [smem:[#allocation50_spill]]  ;;  %s243_s21 = scalar_lea.vmem [#allocation2], %s4132_s17 }
  0x1b   : > { %s251_s22 = sshll.u32 %s243_s21, 4  ;;  %p5537_p13 = pnand %p4248_p10, %p5509_p5  ;;  %s5541_s22 = int_to_ptr.vmem [resolvable:$true] %s251_s22 }
  0x1c   : > { %s240_s29 = scalar_lea.sflag [#allocation3], %s239_s15 }
  0x1d   : > { %p5310_p3 = pneg %p5537_p13 }
  0x20   : > { %s5533_s20 = scalar_lea.hbm %s8636_s0, %s4233_s16  ;;  %s5313_s11 = scalar_lea.hbm %s8636_s0, 1024 }
  0x21   : > { %s5308_s8 = scalar_lea.hbm %s5533_s20, 512  ;;  %p5314_p5 = scmp.lt.s32.totalorder %s5533_s20, %s8636_s0 }
  0x22   : > { %p5309_p2 = scmp.ne.s32.totalorder %s5533_s20, %s5308_s8  ;;  %p5315_p8 = scmp.lt.s32.totalorder %s5313_s11, %s5308_s8 }
  0x24   : > { %p5311_p4 = pnand %p5310_p3, %p5309_p2  ;;  %p5316_p10 = por %p5315_p8, %p5314_p5 }
  0x26   : > { %p5312_p7 = pneg %p5311_p4 }
  0x28   : > { %p5317_p9 = pnand %p5316_p10, %p5312_p7 }
  0x2a   : > { %5320 = shalt.err (!%p5317_p9)
}
  0x2b   : > { %s5321_s15 = scalar_lea.vmem %s5541_s22, 512  ;;  %s5402_s19 = smov [#allocation2]  }
  0x2c   : > { %p5322_p0 = scmp.ne.s32.totalorder %s5541_s22, %s5321_s15  ;;  %s5326_s21 = sshll.u32 %s5402_s19, 4  ;;  %s5327_s21 = int_to_ptr.vmem [resolvable:$false] %s5326_s21 }
  0x2d   : > { %s5328_s9 = scalar_lea.vmem %s5327_s21, 1024  ;;  %p5329_p4 = scmp.lt.s32.totalorder %s5541_s22, %s5327_s21 }
  0x2e   : > { %p5324_p1 = pnand %p5322_p0, %p5310_p3  ;;  %p5330_p12 = scmp.lt.s32.totalorder %s5328_s9, %s5321_s15 }
  0x30   : > { %p5325_p2 = pneg %p5324_p1  ;;  %p5331_p11 = por %p5330_p12, %p5329_p4 }
  0x32   : > { %p5332_p6 = pnand %p5331_p11, %p5325_p2 }
  0x34   : > { %5335 = shalt.err (!%p5332_p6)
}
  0x35   : > { %4243 = dma.hbm_to_vmem [thread:$0]  (!%p5537_p13), %s5533_s20, 512, %s5541_s22, %s240_s29  }
  0x36   : > { %p8638_p9 = scmp.lt.s32.totalorder %s5400_s27, 3  ;;  %p8639_p7 = scmp.ge.s32.totalorder %s5400_s27, 1 }
  0x38   : > { %p265_p0 = pnand %p8639_p7, %p8638_p9 }
  0x3a   : > { %268 = sbr.rel (%p265_p0) target bundleno = 1400 (0x578), region = 48 }
  0x3f   : > { %s5568_s8 = sand.u32 1, %s5392_s25   ;;  %p8640_p6 = scmp.ne.s32.totalorder %s8633_s12, 0 }
  0x40   : > { %s8490_s16 = sshll.u32 %s5568_s8, 5  ;;  %s271_s11 = scalar_lea.sflag [#allocation3], %s5568_s8 }
  0x41   : > { %s5574_s23 = scalar_lea.vmem [#allocation2], %s8490_s16 }
  0x42   : > { %5379 = dma.done.wait (%p8640_p6), %s271_s11, 512  }
  0x43   : > { %5381 = vsyncadd (%p8640_p6), %s271_s11, 4294966784  ;;  %p310_p11 = scmp.lt.s32.totalorder %s5491_s28, 1  ;;  %v322_v0 = vlaneseq  ;;  %v8509_v1 = vmov 0   ;;  %s8641_s1 = sld [smem:[#allocation51_spill]]  ;;  %v317_v18 = vld [vmem:[%s5574_s23 + $0x8] sm:$0xff]  ;;  %v316_v19 = vld [vmem:[%s5574_s23] sm:$0xff] }
  0x44   : > { %4309 = vset.pattern.permute.xlu1 %v8509_v1  ;;  %4308 = vset.pattern.permute.xlu0 %v8509_v1  ;;  %s8642_s2 = sld [smem:[#allocation52_spill]]  ;;  %s5404_s19 = smov 42   ;;  %v5617_v22 = vcombine.high %v317_v18, %v317_v18  ;;  %v5619_v23 = vcombine.high %v316_v19, %v316_v19  ;;  %v318_v24 = vld [vmem:[%s5574_s23 + $0x10] sm:$0xff]  ;;  %v319_v25 = vld [vmem:[%s5574_s23 + $0x18] sm:$0xff]  ;;  %vm446_vm1 = vcmask 1041409   ;;  %vm449_vm2 = vcmask 1042434  }
  0x45   : > { %s311_s20 = scalar_select %p310_p11, %s5491_s28, 1  ;;  %912 = vmatprep.mubr.bf16.mxu1 %v8509_v1  ;;  %871 = vmatprep.mubr.bf16.mxu0 %v8509_v1  ;;  %v323_v2 = vshrl.u32 %v322_v0, 7  ;;  %v5629_v29 = vcombine.high %v319_v25, %v319_v25  ;;  %v5636_v32 = vcombine.high %v318_v24, %v318_v24  ;;  %v5647_v38 = vand.u32 127, %v322_v0 }
  0x46   : > { %8643 = vst [vmem:[#allocation10_spill] sm:$0xff] %v5617_v22  ;;  %8644 = vst [vmem:[#allocation11_spill] sm:$0xff] %v5619_v23  ;;  %v4315_v26 = vpack.i.bf16 %v318_v24, %v5617_v22  ;;  %v4310_v27 = vpack.i.bf16 %v317_v18, %v5619_v23  ;;  %vm452_vm3 = vcmask 1043459   ;;  %vm526_vm4 = vcmask 1043456   ;;  %s8545_s21 = smov 104   ;;  %s8549_s9 = smov 106  }
  0x47   : > { %s4234_s22 = sshll.u32 %s311_s20, 3  ;;  %v332_v5 = vsub.s32 2, %v323_v2  ;;  %v328_v6 = vsub.s32 1, %v323_v2  ;;  %v340_v12 = vsub.s32 4, %v323_v2  ;;  %v336_v13 = vsub.s32 3, %v323_v2  ;;  %8645 = vst [vmem:[#allocation12_spill] sm:$0xff] %v5629_v29 }
  0x48   : > { %v352_v14 = vsub.s32 7, %v323_v2  ;;  %v5604_v17 = vsub.s32 0, %v323_v2  ;;  %v344_v28 = vsub.s32 5, %v323_v2  ;;  %v4320_v31 = vpack.i.bf16 %v5629_v29, %v316_v19  ;;  %8646 = vst [vmem:[#allocation13_spill] sm:$0xff] %v5636_v32  ;;  %s8547_s11 = smov 105   ;;  %s8503_s20 = smov 108  }
  0x49   : > { %s314_s12 = scalar_lea.vmem %s8641_s1, %s4234_s22  ;;  %v348_v33 = vsub.s32 6, %v323_v2  ;;  %v4325_v34 = vpack.i.bf16 %v319_v25, %v5636_v32  ;;  %vm380_vm0 = vcmp.lt.s32.totalorder %v5647_v38, 42  ;;  %s8499_s22 = smov 107   ;;  %vm8534_vm5 = vcmp.lt.s32.totalorder %v5647_v38, 104 }
  0x4a   : > { %v427_v3 = vld [vmem:[%s314_s12 + $0x4] sm:$0x3]  ;;  %v425_v4 = vld [vmem:[%s314_s12] sm:$0x3]  ;;  %v428_v7 = vld [vmem:[%s314_s12 + $0x6] sm:$0x3] }
  0x4b   : > { %439 = vperm.xlu1 %4309, %v427_v3   ;;  %431 = vperm.xlu0 %4308, %v425_v4   ;;  %v426_v8 = vld [vmem:[%s314_s12 + $0x2] sm:$0x3]  ;;  %s8497_s29 = smov 124   ;;  %s8495_s17 = smov 126   ;;  %vm8531_vm6 = vcmp.lt.s32.totalorder %v5647_v38, 106  ;;  %vm8533_vm7 = vcmp.lt.s32.totalorder %v5647_v38, 105 }
  0x4c   : > { %v320_v9 = vld [vmem:[%s8642_s2] sm:$0xff]  ;;  %s8493_s12 = smov 125   ;;  %s8491_s18 = smov 127   ;;  %vm8529_vm8 = vcmp.lt.s32.totalorder %v5647_v38, 108  ;;  %vm8530_vm9 = vcmp.lt.s32.totalorder %v5647_v38, 107  ;;  %vm811_vm10 = vcmask 326656  }
  0x4d   : > { %v5592_v10 = vrot.slane %v320_v9, %v332_v5  ;;  %v5594_v11 = vrot.slane %v320_v9, %v328_v6  ;;  %v5600_v15 = vrot.slane %v320_v9, %v340_v12  ;;  %v5602_v16 = vrot.slane %v320_v9, %v336_v13  ;;  %s8541_s15 = smov 84   ;;  %s8553_s16 = smov 86  }
  0x4e   : > { %v5608_v20 = vrot.slane %v320_v9, %v352_v14  ;;  %v5615_v21 = vrot.slane %v320_v9, %v5604_v17  ;;  %v5633_v30 = vrot.slane %v320_v9, %v344_v28  ;;  %v5642_v35 = vrot.slane %v320_v9, %v348_v33  ;;  %s8647_s3 = sld [smem:[#allocation53_spill]]  ;;  %s8665_s0 = smov 67  }
  0x4f   : > { %443 = vperm.xlu1 %4309, %v428_v7   ;;  %435 = vperm.xlu0 %4308, %v426_v8   ;;  %vm8528_vm11 = vcmp.lt.s32.totalorder %v5647_v38, 124  ;;  %vm576_vm12 = vcmp.lt.s32.totalorder %v5647_v38, 126  ;;  %vm601_vm13 = vcmp.lt.s32.totalorder %v5647_v38, 125  ;;  %vm8526_vm14 = vcmp.lt.s32.totalorder %v5647_v38, 127  ;;  %s8652_s4 = sld [smem:[#allocation54_spill]]  ;;  %s8666_s1 = smov 86  }
  0x50   : > { %vm8527_vm15 = vcmp.lt.s32.totalorder %v5647_v38, 84  ;;  %s8667_s2 = smov 44   ;;  %s8670_s10 = smov 105  }
  0x51   : > { %s8671_s26 = smov 104   ;;  %p8928_p13 = scmp.ne.s32.totalorder %s8634_s13, 0 }
  0x53   : > { %366 = vrot.lane.b32.xlu1 %v5592_v10, %s5404_s19  ;;  %364 = vrot.lane.b32.xlu0 %v5594_v11, %s5404_s19 }
  0x57   : > { %370 = vrot.lane.b32.xlu1 %v5600_v15, %s5404_s19  ;;  %368 = vrot.lane.b32.xlu0 %v5602_v16, %s5404_s19 }
  0x5b   : > { %376 = vrot.lane.b32.xlu1 %v5608_v20, %s5404_s19  ;;  %362 = vrot.lane.b32.xlu0 %v5615_v21, %s5404_s19 }
  0x5f   : > { %4316 = vrot.lane.b32.xlu1 %v4315_v26, %s5404_s19  ;;  %4311 = vrot.lane.b32.xlu0 %v4310_v27, %s5404_s19 }
  0x63   : > { %372 = vrot.lane.b32.xlu1 %v5633_v30, %s5404_s19  ;;  %4321 = vrot.lane.b32.xlu0 %v4320_v31, %s5404_s19 }
  0x67   : > { %4326 = vrot.lane.b32.xlu1 %v4325_v34, %s5404_s19  ;;  %374 = vrot.lane.b32.xlu0 %v5642_v35, %s5404_s19 }
  0xc6   : > { %v440_v36 = vpop.permute.xlu1 %439  ;;  %v432_v37 = vpop.permute.xlu0 %431 }
  0xc7   : > { %v448_v44 = vrot.slane %v440_v36, 6  ;;  %v455_v47 = vrot.slane %v432_v37, 1  ;;  %v457_v50 = vrot.slane %v440_v36, 7 }
  0xca   : > { %v444_v39 = vpop.permute.xlu1 %443  ;;  %v436_v40 = vpop.permute.xlu0 %435 }
  0xcb   : > { %v445_v41 = vrot.slane %v436_v40, 7  ;;  %v451_v54 = vrot.slane %v444_v39, 5  ;;  %v456_v55 = vsel %vm446_vm1, %v436_v40, %v455_v47  ;;  %v459_v57 = vrot.slane %v444_v39, 6 }
  0xcc   : > { %v458_v62 = vsel %vm449_vm2, %v457_v50, %v456_v55 }
  0xcd   : > { %v447_v45 = vsel %vm446_vm1, %v445_v41, %v432_v37  ;;  %v5667_v5 = vsel %vm452_vm3, %v459_v57, %v458_v62  ;;  %vm1260_vm1 = vcmp.lt.s32.totalorder %v5647_v38, 86 }
  0xce   : > { %v367_v42 = vpop.permute.xlu1 %366  ;;  %v365_v43 = vpop.permute.xlu0 %364  ;;  %v450_v51 = vsel %vm449_vm2, %v448_v44, %v447_v45  ;;  %vm1285_vm2 = vcmp.lt.s32.totalorder %v5647_v38, 85 }
  0xcf   : > { %v386_v46 = vsel %vm380_vm0, %v365_v43, %v367_v42  ;;  %v453_v58 = vsel %vm452_vm3, %v451_v54, %v450_v51  ;;  %vm1210_vm3 = vcmp.lt.s32.totalorder %v5647_v38, 88 }
  0xd0   : > { %v473_v52 = vrot.slane %v386_v46, %v5604_v17 }
  0xd2   : > { %v5652_v48 = vpop.permute.xlu1 %370  ;;  %v369_v49 = vpop.permute.xlu0 %368  ;;  %v496_v63 = vmul.f32 %v473_v52, %v453_v58 }
  0xd3   : > { %v385_v53 = vsel %vm380_vm0, %v367_v42, %v369_v49  ;;  %v384_v59 = vsel %vm380_vm0, %v369_v49, %v5652_v48 }
  0xd4   : > { %v477_v56 = vrot.slane %v385_v53, %v5604_v17  ;;  %v481_v4 = vrot.slane %v384_v59, %v5604_v17  ;;  %v512_v8 = vrot.slane %v496_v63, 4 }
  0xd6   : > { %v377_v60 = vpop.permute.xlu1 %376  ;;  %v363_v61 = vpop.permute.xlu0 %362  ;;  %v497_v2 = vmul.f32 %v477_v56, %v453_v58  ;;  %v498_v25 = vmul.f32 %v481_v4, %v5667_v5 }
  0xd7   : > { %v388_v0 = vsel %vm380_vm0, %v377_v60, %v363_v61  ;;  %v387_v18 = vsel %vm380_vm0, %v363_v61, %v365_v43 }
  0xd8   : > { %v465_v3 = vrot.slane %v388_v0, %v5604_v17  ;;  %v513_v14 = vrot.slane %v497_v2, 4  ;;  %v469_v36 = vrot.slane %v387_v18, %v5604_v17  ;;  %v514_v43 = vrot.slane %v498_v25, 4 }
  0xda   : > { %v5669_v6 = vpop.permute.xlu1 %4316  ;;  %v4312_v7 = vpop.permute.xlu0 %4311  ;;  %v494_v19 = vmul.f32 %v465_v3, %v453_v58  ;;  %v495_v49 = vmul.f32 %v469_v36, %v453_v58 }
  0xdb   : > { %v4318_v9 = vunpack.i.l.bf16 %v5669_v6  ;;  %v4314_v12 = vunpack.i.h.bf16 %v4312_v7  ;;  %v4313_v13 = vunpack.i.l.bf16 %v4312_v7  ;;  %v4319_v24 = vunpack.i.h.bf16 %v5669_v6 }
  0xdc   : > { %v510_v41 = vrot.slane %v494_v19, 4  ;;  %v511_v61 = vrot.slane %v495_v49, 4 }
  0xdd   : > { %v421_v26 = vsel %vm380_vm0, %v4314_v12, %v4318_v9  ;;  %v422_v27 = vsel %vm380_vm0, %v4313_v13, %v4314_v12  ;;  %v420_v42 = vsel %vm380_vm0, %v4318_v9, %v4319_v24 }
  0xde   : > { %v5681_v28 = vsel %vm526_vm4, %v421_v26, %v513_v14  ;;  %v5684_v31 = vsel %vm526_vm4, %v422_v27, %v512_v8  ;;  %v373_v33 = vpop.permute.xlu1 %372  ;;  %v4322_v34 = vpop.permute.xlu0 %4321  ;;  %v5703_v50 = vsel %vm526_vm4, %v420_v42, %v514_v43 }
  0xdf   : > { %v4324_v37 = vunpack.i.h.bf16 %v4322_v34  ;;  %v4323_v39 = vunpack.i.l.bf16 %v4322_v34  ;;  %v5689_v40 = vpack.i.bf16 %v5681_v28, %v5684_v31  ;;  %v5725_v0 = vpack.i.bf16 %v5703_v50, %v5681_v28 }
  0xe1   : > { %v424_v44 = vsel %vm380_vm0, %v4324_v37, %v4323_v39  ;;  %4331 = vrot.lane.b32.xlu0 %v5689_v40, %s8545_s21  ;;  %v423_v58 = vsel %vm380_vm0, %v4323_v39, %v4313_v13  ;;  %v383_v13 = vsel %vm380_vm0, %v5652_v48, %v373_v33 }
  0xe2   : > { %v5700_v45 = vsel %vm526_vm4, %v424_v44, %v510_v41  ;;  %v4327_v46 = vpop.permute.xlu1 %4326  ;;  %v375_v47 = vpop.permute.xlu0 %374  ;;  %v5728_v2 = vsel %vm526_vm4, %v423_v58, %v511_v61  ;;  %v485_v18 = vrot.slane %v383_v13, %v5604_v17 }
  0xe3   : > { %v381_v51 = vsel %vm380_vm0, %v375_v47, %v377_v60  ;;  %v382_v52 = vsel %vm380_vm0, %v373_v33, %v375_v47  ;;  %v5713_v55 = vpack.i.bf16 %v5700_v45, %v5703_v50  ;;  %v4329_v56 = vunpack.i.h.bf16 %v4327_v46 }
  0xe4   : > { %v489_v53 = vrot.slane %v382_v52, %v5604_v17  ;;  %v493_v54 = vrot.slane %v381_v51, %v5604_v17  ;;  %v4328_v57 = vunpack.i.l.bf16 %v4327_v46  ;;  %v5743_v9 = vpack.i.bf16 %v5728_v2, %v5684_v31 }
  0xe5   : > { %4336 = vrot.lane.b32.xlu1 %v5713_v55, %s8545_s21  ;;  %v417_v8 = vsel %vm380_vm0, %v4329_v56, %v4324_v37  ;;  %v499_v48 = vmul.f32 %v485_v18, %v5667_v5 }
  0xe6   : > { %v500_v59 = vmul.f32 %v489_v53, %v5667_v5  ;;  %v501_v60 = vmul.f32 %v493_v54, %v5667_v5  ;;  %v418_v62 = vsel %vm380_vm0, %v4328_v57, %v4329_v56  ;;  %v419_v17 = vsel %vm380_vm0, %v4319_v24, %v4328_v57 }
  0xe7   : > { %v515_v19 = vrot.slane %v499_v48, 4 }
  0xe8   : > { %v516_v63 = vrot.slane %v500_v59, 4  ;;  %v517_v3 = vrot.slane %v501_v60, 4 }
  0xe9   : > { %4346 = vrot.lane.b32.xlu1 %v5725_v0, %s8549_s9  ;;  %v5782_v5 = vsel %vm526_vm4, %v419_v17, %v515_v19 }
  0xea   : > { %v5731_v4 = vsel %vm526_vm4, %v418_v62, %v516_v63  ;;  %v5746_v12 = vsel %vm526_vm4, %v417_v8, %v517_v3 }
  0xeb   : > { %v5737_v7 = vpack.i.bf16 %v5731_v4, %v5728_v2  ;;  %v5757_v14 = vpack.i.bf16 %v5746_v12, %v5700_v45  ;;  %v5786_v25 = vpack.i.bf16 %v5782_v5, %v5746_v12  ;;  %v5794_v6 = vpack.i.bf16 %v5782_v5, %v5731_v4 }
  0xed   : > { %4341 = vrot.lane.b32.xlu0 %v5737_v7, %s8545_s21  ;;  %4356 = vrot.lane.b32.xlu1 %v5743_v9, %s8549_s9 }
  0xf1   : > { %4351 = vrot.lane.b32.xlu0 %v5725_v0, %s8547_s11  ;;  %4366 = vrot.lane.b32.xlu1 %v5757_v14, %s8549_s9 }
  0xf5   : > { %4361 = vrot.lane.b32.xlu0 %v5743_v9, %s8547_s11  ;;  %4376 = vrot.lane.b32.xlu1 %v5725_v0, %s8503_s20 }
  0xf9   : > { %4371 = vrot.lane.b32.xlu0 %v5757_v14, %s8547_s11  ;;  %4386 = vrot.lane.b32.xlu1 %v5743_v9, %s8503_s20 }
  0xfd   : > { %4381 = vrot.lane.b32.xlu0 %v5725_v0, %s8499_s22  ;;  %4396 = vrot.lane.b32.xlu1 %v5757_v14, %s8503_s20 }
 0x101   : > { %4391 = vrot.lane.b32.xlu0 %v5743_v9, %s8499_s22  ;;  %4406 = vrot.lane.b32.xlu1 %v5786_v25, %s8545_s21 }
 0x105   : > { %4401 = vrot.lane.b32.xlu0 %v5757_v14, %s8499_s22  ;;  %4416 = vrot.lane.b32.xlu1 %v5794_v6, %s8547_s11 }
 0x109   : > { %4411 = vrot.lane.b32.xlu0 %v5794_v6, %s8549_s9  ;;  %4426 = vrot.lane.b32.xlu1 %v5794_v6, %s8499_s22  ;;  %s8514_s22 = smov 66  }
 0x10d   : > { %4421 = vrot.lane.b32.xlu0 %v5794_v6, %s8503_s20  ;;  %4436 = vrot.lane.b32.xlu1 %v5713_v55, %s8497_s29  ;;  %s8518_s20 = smov 68  }
 0x111   : > { %4431 = vrot.lane.b32.xlu0 %v5689_v40, %s8497_s29  ;;  %4446 = vrot.lane.b32.xlu1 %v5725_v0, %s8495_s17 }
 0x115   : > { %4441 = vrot.lane.b32.xlu0 %v5737_v7, %s8497_s29  ;;  %4456 = vrot.lane.b32.xlu1 %v5743_v9, %s8495_s17 }
 0x119   : > { %4451 = vrot.lane.b32.xlu0 %v5725_v0, %s8493_s12  ;;  %4466 = vrot.lane.b32.xlu1 %v5757_v14, %s8495_s17 }
 0x11d   : > { %4461 = vrot.lane.b32.xlu0 %v5743_v9, %s8493_s12  ;;  %4476 = vrot.lane.b32.xlu1 %v5725_v0, %s8491_s18 }
 0x121   : > { %4471 = vrot.lane.b32.xlu0 %v5757_v14, %s8493_s12  ;;  %4486 = vrot.lane.b32.xlu1 %v5757_v14, %s8491_s18 }
 0x125   : > { %4481 = vrot.lane.b32.xlu0 %v5743_v9, %s8491_s18  ;;  %4496 = vrot.lane.b32.xlu1 %v5794_v6, %s8495_s17  ;;  %s8501_s17 = smov 87  }
 0x129   : > { %4491 = vrot.lane.b32.xlu0 %v5786_v25, %s8497_s29  ;;  %4506 = vrot.lane.b32.xlu1 %v5794_v6, %s8491_s18  ;;  %s8551_s18 = smov 85   ;;  %s8520_s29 = smov 64  }
 0x12d   : > { %4501 = vrot.lane.b32.xlu0 %v5794_v6, %s8493_s12  ;;  %4516 = vrot.lane.b32.xlu1 %v5713_v55, %s8541_s15  ;;  %s8505_s12 = smov 88  }
 0x131   : > { %4511 = vrot.lane.b32.xlu0 %v5689_v40, %s8541_s15  ;;  %4526 = vrot.lane.b32.xlu1 %v5725_v0, %s8553_s16 }
 0x135   : > { %4521 = vrot.lane.b32.xlu0 %v5737_v7, %s8541_s15  ;;  %4536 = vrot.lane.b32.xlu1 %v5743_v9, %s8553_s16 }
 0x139   : > { %4531 = vrot.lane.b32.xlu0 %v5725_v0, %s8551_s18  ;;  %4546 = vrot.lane.b32.xlu1 %v5757_v14, %s8553_s16 }
 0x13d   : > { %4541 = vrot.lane.b32.xlu0 %v5743_v9, %s8551_s18  ;;  %4556 = vrot.lane.b32.xlu1 %v5725_v0, %s8505_s12 }
 0x141   : > { %4551 = vrot.lane.b32.xlu0 %v5757_v14, %s8551_s18  ;;  %4566 = vrot.lane.b32.xlu1 %v5743_v9, %s8505_s12 }
 0x145   : > { %4561 = vrot.lane.b32.xlu0 %v5725_v0, %s8501_s17  ;;  %4576 = vrot.lane.b32.xlu1 %v5757_v14, %s8505_s12 }
 0x149   : > { %4571 = vrot.lane.b32.xlu0 %v5743_v9, %s8501_s17  ;;  %4586 = vrot.lane.b32.xlu1 %v5786_v25, %s8541_s15 }
 0x14d   : > { %4581 = vrot.lane.b32.xlu0 %v5757_v14, %s8501_s17  ;;  %4596 = vrot.lane.b32.xlu1 %v5794_v6, %s8551_s18 }
 0x151   : > { %4591 = vrot.lane.b32.xlu0 %v5794_v6, %s8553_s16  ;;  %4606 = vrot.lane.b32.xlu1 %v5794_v6, %s8501_s17  ;;  %s8512_s17 = smov 65  }
 0x153   : > { %v4332_v24 = vpop.permute.xlu0 %4331 }
 0x154   : > { %v4334_v26 = vunpack.i.h.bf16 %v4332_v24  ;;  %v4333_v27 = vunpack.i.l.bf16 %v4332_v24 }
 0x155   : > { %4601 = vrot.lane.b32.xlu0 %v5794_v6, %s8505_s12  ;;  %4616 = vrot.lane.b32.xlu1 %v5713_v55, %s8520_s29  ;;  %s8516_s12 = smov 67  }
 0x156   : > { %v781_v33 = vsel %vm8534_vm5, %v4333_v27, %v4334_v26 }
 0x157   : > { %v5883_v34 = vpop.permute.xlu1 %4336  ;;  %v803_v37 = vpack.c.bf16 %v781_v33, %v781_v33 }
 0x158   : > { %v4338_v36 = vunpack.i.l.bf16 %v5883_v34  ;;  %v4339_v46 = vunpack.i.h.bf16 %v5883_v34 }
 0x159   : > { %4611 = vrot.lane.b32.xlu0 %v5689_v40, %s8520_s29  ;;  %4626 = vrot.lane.b32.xlu1 %v5725_v0, %s8514_s22  ;;  %v822_v43 = vsel %vm526_vm4, %v803_v37, 0 }
 0x15a   : > { %v780_v39 = vsel %vm8534_vm5, %v4334_v26, %v4338_v36 }
 0x15b   : > { %v5894_v41 = vpop.permute.xlu1 %4346  ;;  %v804_v42 = vpack.c.bf16 %v780_v39, %v780_v39 }
 0x15c   : > { %v4349_v51 = vunpack.i.h.bf16 %v5894_v41  ;;  %v4348_v52 = vunpack.i.l.bf16 %v5894_v41 }
 0x15d   : > { %4621 = vrot.lane.b32.xlu0 %v5737_v7, %s8520_s29  ;;  %4636 = vrot.lane.b32.xlu1 %v5743_v9, %s8514_s22 }
 0x15e   : > { %4143 = vmatprep.subr.msk.bf16.mxu1 %vm526_vm4, %v804_v42  ;;  %v730_v8 = vsel %vm8531_vm6, %v4348_v52, %v4349_v51 }
 0x15f   : > { %891 = vmatpush1.bf16.msra.mxu1 %v822_v43  ;;  %v5902_v44 = vpop.permute.xlu0 %4341  ;;  %v4357_v47 = vpop.permute.xlu1 %4356 }
 0x160   : > { %v4343_v49 = vunpack.i.l.bf16 %v5902_v44  ;;  %v4359_v62 = vunpack.i.h.bf16 %v4357_v47  ;;  %v4358_v63 = vunpack.i.l.bf16 %v4357_v47 }
 0x161   : > { %4631 = vrot.lane.b32.xlu0 %v5725_v0, %s8512_s17  ;;  %4646 = vrot.lane.b32.xlu1 %v5757_v14, %s8514_s22 }
 0x162   : > { %v782_v53 = vsel %vm8534_vm5, %v4343_v49, %v4333_v27  ;;  %v783_v54 = vsel %vm8534_vm5, %v4339_v46, %v4343_v49  ;;  %v732_v26 = vsel %vm8531_vm6, %v4359_v62, %v4358_v63  ;;  %v731_v37 = vsel %vm8531_vm6, %v4358_v63, %v4348_v52 }
 0x163   : > { %v5918_v56 = vpop.permute.xlu0 %4351  ;;  %v802_v57 = vpack.c.bf16 %v782_v53, %v782_v53  ;;  %v801_v58 = vpack.c.bf16 %v783_v54, %v783_v54  ;;  %v5922_v59 = vpop.permute.xlu1 %4366 }
 0x164   : > { %v8511_v60 = vunpack.i.h.bf16 %v5918_v56  ;;  %v4353_v61 = vunpack.i.l.bf16 %v5918_v56  ;;  %v4368_v27 = vunpack.i.l.bf16 %v5922_v59 }
 0x165   : > { %4641 = vrot.lane.b32.xlu0 %v5743_v9, %s8512_s17  ;;  %4141 = vmatprep.subr.msk.bf16.mxu0 %vm526_vm4, %v802_v57  ;;  %v816_v3 = vsel %vm526_vm4, %v801_v58, 0 }
 0x166   : > { %4656 = vrot.lane.b32.xlu1 %v5725_v0, %s8518_s20  ;;  %850 = vmatpush1.bf16.msra.mxu0 %v816_v3  ;;  %v755_v13 = vsel %vm8533_vm7, %v4353_v61, %v8511_v60  ;;  %v733_v57 = vsel %vm8531_vm6, %v4368_v27, %v4359_v62 }
 0x167   : > { %v4362_v18 = vpop.permute.xlu0 %4361  ;;  %v796_v48 = vpack.c.bf16 %v755_v13, %v730_v8  ;;  %v5940_v19 = vpop.permute.xlu1 %4376 }
 0x168   : > { %v4364_v17 = vunpack.i.h.bf16 %v4362_v18  ;;  %v4363_v24 = vunpack.i.l.bf16 %v4362_v18  ;;  %v8508_v54 = vunpack.i.h.bf16 %v5940_v19  ;;  %v4378_v52 = vunpack.i.l.bf16 %v5940_v19 }
 0x169   : > { %4651 = vrot.lane.b32.xlu0 %v5757_v14, %s8512_s17  ;;  %892 = vmatprep.subr.bf16.mxu1 %v796_v48 }
 0x16a   : > { %4666 = vrot.lane.b32.xlu1 %v5743_v9, %s8518_s20  ;;  %v757_v33 = vsel %vm8533_vm7, %v4364_v17, %v4363_v24  ;;  %v756_v39 = vsel %vm8533_vm7, %v4363_v24, %v4353_v61  ;;  %v680_v48 = vsel %vm8529_vm8, %v4378_v52, %v8508_v54 }
 0x16b   : > { %v5955_v42 = vpop.permute.xlu0 %4371  ;;  %v794_v43 = vpack.c.bf16 %v757_v33, %v732_v26  ;;  %v795_v47 = vpack.c.bf16 %v756_v39, %v731_v37  ;;  %v5957_v49 = vpop.permute.xlu1 %4386  ;;  %v4344_v33 = vunpack.i.h.bf16 %v5902_v44  ;;  %v4369_v37 = vunpack.i.h.bf16 %v5922_v59 }
 0x16c   : > { %v4373_v53 = vunpack.i.l.bf16 %v5955_v42  ;;  %v4389_v18 = vunpack.i.h.bf16 %v5957_v49  ;;  %v4388_v62 = vunpack.i.l.bf16 %v5957_v49  ;;  %v4374_v49 = vunpack.i.h.bf16 %v5955_v42 }
 0x16d   : > { %4661 = vrot.lane.b32.xlu0 %v5725_v0, %s8516_s12  ;;  %851 = vmatprep.subr.bf16.mxu0 %v794_v43 }
 0x16e   : > { %4676 = vrot.lane.b32.xlu1 %v5757_v14, %s8518_s20  ;;  %893 = vmatpush1.bf16.msra.mxu1 %v795_v47  ;;  %v758_v58 = vsel %vm8533_vm7, %v4373_v53, %v4364_v17  ;;  %v681_v59 = vsel %vm8529_vm8, %v4388_v62, %v4378_v52  ;;  %v734_v52 = vsel %vm8531_vm6, %v4369_v37, %v4368_v27 }
 0x16f   : > { %v5970_v61 = vpop.permute.xlu0 %4381  ;;  %v793_v63 = vpack.c.bf16 %v758_v58, %v733_v57  ;;  %v5974_v3 = vpop.permute.xlu1 %4396 }
 0x170   : > { %v8507_v8 = vunpack.i.h.bf16 %v5970_v61  ;;  %v4383_v13 = vunpack.i.l.bf16 %v5970_v61  ;;  %v4399_v34 = vunpack.i.h.bf16 %v5974_v3 }
 0x171   : > { %4671 = vrot.lane.b32.xlu0 %v5743_v9, %s8516_s12  ;;  %852 = vmatpush1.bf16.msra.mxu0 %v793_v63  ;;  %v682_v63 = vsel %vm8529_vm8, %v4389_v18, %v4388_v62 }
 0x172   : > { %4686 = vrot.lane.b32.xlu1 %v5786_v25, %s8520_s29  ;;  %v705_v17 = vsel %vm8530_vm9, %v4383_v13, %v8507_v8  ;;  %s8537_s29 = smov 47  }
 0x173   : > { %v4392_v24 = vpop.permute.xlu0 %4391  ;;  %v788_v26 = vpack.c.bf16 %v705_v17, %v680_v48  ;;  %v4407_v39 = vpop.permute.xlu1 %4406  ;;  %v4398_v48 = vunpack.i.l.bf16 %v5974_v3 }
 0x174   : > { %v4394_v43 = vunpack.i.h.bf16 %v4392_v24  ;;  %v4393_v47 = vunpack.i.l.bf16 %v4392_v24  ;;  %v4409_v57 = vunpack.i.h.bf16 %v4407_v39  ;;  %v4408_v58 = vunpack.i.l.bf16 %v4407_v39 }
 0x175   : > { %4681 = vrot.lane.b32.xlu0 %v5757_v14, %s8516_s12  ;;  %894 = vmatprep.subr.bf16.mxu1 %v788_v26  ;;  %v683_v27 = vsel %vm8529_vm8, %v4398_v48, %v4389_v18 }
 0x176   : > { %4696 = vrot.lane.b32.xlu1 %v5794_v6, %s8512_s17  ;;  %v707_v44 = vsel %vm8530_vm9, %v4394_v43, %v4393_v47  ;;  %v706_v42 = vsel %vm8530_vm9, %v4393_v47, %v4383_v13  ;;  %v784_v39 = vsel %vm8534_vm5, %v4408_v58, %v4339_v46  ;;  %v777_v8 = vsel %vm8534_vm5, %v4344_v33, %v4408_v58  ;;  %s8543_s17 = smov 46  }
 0x177   : > { %v6008_v17 = vpop.permute.xlu0 %4401  ;;  %v786_v24 = vpack.c.bf16 %v707_v44, %v682_v63  ;;  %v787_v26 = vpack.c.bf16 %v706_v42, %v681_v59  ;;  %v4417_v54 = vpop.permute.xlu1 %4416  ;;  %v808_v60 = vpack.c.bf16 %v784_v39, %v784_v39  ;;  %v807_v62 = vpack.c.bf16 %v777_v8, %v777_v8  ;;  %v6041_v59 = vld [vmem:[%s8647_s3 + $0x4] sm:$0xf] }
 0x178   : > { %v4403_v1 = vunpack.i.l.bf16 %v6008_v17  ;;  %v4418_v13 = vunpack.i.l.bf16 %v4417_v54  ;;  %v759_v46 = vsel %vm8533_vm7, %v4374_v49, %v4373_v53  ;;  %v779_v47 = vsel %vm8534_vm5, %v4338_v36, %v4409_v57 }
 0x179   : > { %4691 = vrot.lane.b32.xlu0 %v5794_v6, %s8514_s22  ;;  %853 = vmatprep.subr.bf16.mxu0 %v786_v24  ;;  %v4404_v58 = vunpack.i.h.bf16 %v6008_v17  ;;  %v778_v53 = vsel %vm8534_vm5, %v4409_v57, %v4344_v33  ;;  %v4419_v63 = vunpack.i.h.bf16 %v4417_v54  ;;  %v805_v42 = vpack.c.bf16 %v779_v47, %v779_v47  ;;  %s8524_s22 = smov 44  }
 0x17a   : > { %4706 = vrot.lane.b32.xlu1 %v5794_v6, %s8516_s12  ;;  %895 = vmatpush1.bf16.msra.mxu1 %v787_v26  ;;  %v708_v8 = vsel %vm8530_vm9, %v4403_v1, %v4394_v43  ;;  %v800_v43 = vpack.c.bf16 %v759_v46, %v734_v52  ;;  %v752_v33 = vsel %vm8533_vm7, %v4418_v13, %v4374_v49  ;;  %s8522_s12 = smov 45   ;;  %vm1985_vm5 = vcmp.lt.s32.totalorder %v5647_v38, 45 }
 0x17b   : > { %4147 = vmatprep.subr.msk.bf16.mxu1 %vm526_vm4, %v808_v60  ;;  %v4412_v36 = vpop.permute.xlu0 %4411  ;;  %v785_v44 = vpack.c.bf16 %v708_v8, %v683_v27  ;;  %v4427_v18 = vpop.permute.xlu1 %4426  ;;  %v834_v60 = vsel %vm526_vm4, %v807_v62, 0  ;;  %v806_v54 = vpack.c.bf16 %v778_v53, %v778_v53  ;;  %v709_v39 = vsel %vm8530_vm9, %v4404_v58, %v4403_v1 }
 0x17c   : > { %v4414_v17 = vunpack.i.h.bf16 %v4412_v36  ;;  %v4413_v24 = vunpack.i.l.bf16 %v4412_v36  ;;  %v4428_v57 = vunpack.i.l.bf16 %v4427_v18  ;;  %v4429_v3 = vunpack.i.h.bf16 %v4427_v18 }
 0x17d   : > { %4701 = vrot.lane.b32.xlu0 %v5794_v6, %s8518_s20  ;;  %854 = vmatpush1.bf16.msra.mxu0 %v785_v44  ;;  %v828_v62 = vsel %vm526_vm4, %v805_v42, 0  ;;  %v753_v46 = vsel %vm8533_vm7, %v4419_v63, %v4418_v13  ;;  %v8648_v36 = vunpack.i.h.bf16 %v5918_v56  ;;  %v8649_v18 = vmov 0   ;;  %s8539_s20 = smov 48  }
 0x17e   : > { %v727_v26 = vsel %vm8531_vm6, %v4413_v24, %v4369_v37  ;;  %4716 = vrot.lane.b32.xlu1 %v5713_v55, %s8524_s22  ;;  %4144 = vmatmul.mubr.msk.bf16.vlgmr.msra.gmra.mxu1 %vm811_vm10, %v6041_v59  ;;  %v728_v49 = vsel %vm8531_vm6, %v4414_v17, %v4413_v24  ;;  %v684_v55 = vsel %vm8529_vm8, %v4399_v34, %v4398_v48 }
 0x17f   : > { %973 = vmatpush1.bf16.msra.mxu1 %v834_v60  ;;  %4145 = vmatprep.subr.msk.bf16.mxu0 %vm526_vm4, %v806_v54  ;;  %v4422_v52 = vpop.permute.xlu0 %4421  ;;  %v799_v37 = vpack.c.bf16 %v752_v33, %v727_v26  ;;  %v729_v47 = vsel %vm8531_vm6, %v4349_v51, %v4414_v17  ;;  %v6068_v1 = vpop.permute.xlu1 %4436  ;;  %v798_v53 = vpack.c.bf16 %v753_v46, %v728_v49  ;;  %v8650_v17 = vunpack.i.h.bf16 %v5940_v19 }
 0x180   : > { %974 = vmatprep.subr.bf16.mxu1 %v800_v43  ;;  %v4424_v27 = vunpack.i.h.bf16 %v4422_v52  ;;  %v4423_v8 = vunpack.i.l.bf16 %v4422_v52  ;;  %4142 = vmatmul.mubr.msk.bf16.vlgmr.msra.gmra.mxu0 %vm811_vm10, %v6041_v59  ;;  %v754_v13 = vsel %vm8533_vm7, %v8648_v36, %v4419_v63  ;;  %v702_v41 = vsel %vm8530_vm9, %v4428_v57, %v4404_v58 }
 0x181   : > { %4711 = vrot.lane.b32.xlu0 %v5689_v40, %s8524_s22  ;;  %932 = vmatpush1.bf16.msra.mxu0 %v828_v62  ;;  %v792_v51 = vpack.c.bf16 %v709_v39, %v684_v55  ;;  %v703_v63 = vsel %vm8530_vm9, %v4429_v3, %v4428_v57  ;;  %v797_v44 = vpack.c.bf16 %v754_v13, %v729_v47  ;;  %v8651_v60 = vunpack.i.h.bf16 %v5970_v61 }
 0x182   : > { %v677_v48 = vsel %vm8529_vm8, %v4423_v8, %v4399_v34  ;;  %4726 = vrot.lane.b32.xlu1 %v5725_v0, %s8543_s17  ;;  %933 = vmatprep.subr.bf16.mxu0 %v798_v53  ;;  %v678_v56 = vsel %vm8529_vm8, %v4424_v27, %v4423_v8  ;;  %v4438_v34 = vunpack.i.l.bf16 %v6068_v1  ;;  %v679_v24 = vsel %vm8529_vm8, %v8650_v17, %v4424_v27 }
 0x183   : > { %975 = vmatpush1.bf16.msra.mxu1 %v799_v37  ;;  %v4432_v58 = vpop.permute.xlu0 %4431  ;;  %v791_v40 = vpack.c.bf16 %v702_v41, %v677_v48  ;;  %v790_v42 = vpack.c.bf16 %v703_v63, %v678_v56  ;;  %994 = vmatprep.mubr.bf16.mxu1 %v8649_v18  ;;  %v6095_v43 = vpop.permute.xlu1 %4446  ;;  %v704_v54 = vsel %vm8530_vm9, %v8651_v60, %v4429_v3  ;;  %v4439_v3 = vunpack.i.h.bf16 %v6068_v1 }
 0x184   : > { %976 = vmatprep.subr.bf16.mxu1 %v792_v51  ;;  %v4434_v33 = vunpack.i.h.bf16 %v4432_v58  ;;  %v4433_v57 = vunpack.i.l.bf16 %v4432_v58  ;;  %953 = vmatprep.mubr.bf16.mxu0 %v8649_v18  ;;  %v789_v49 = vpack.c.bf16 %v704_v54, %v679_v24  ;;  %v4449_v46 = vunpack.i.h.bf16 %v6095_v43 }
 0x185   : > { %4721 = vrot.lane.b32.xlu0 %v5737_v7, %s8524_s22  ;;  %934 = vmatpush1.bf16.msra.mxu0 %v797_v44  ;;  %v4448_v55 = vunpack.i.l.bf16 %v6095_v43  ;;  %vm8624_vm8 = vcmp.lt.s32.totalorder %v5647_v38, 65  ;;  %vm8536_vm9 = vcmp.lt.s32.totalorder %v5647_v38, 68  ;;  %vm8535_vm6 = vcmp.lt.s32.totalorder %v5647_v38, 67 }
 0x186   : > { %4736 = vrot.lane.b32.xlu1 %v5743_v9, %s8543_s17  ;;  %935 = vmatprep.subr.bf16.mxu0 %v790_v42  ;;  %v630_v19 = vsel %vm8528_vm11, %v4434_v33, %v4438_v34  ;;  %v631_v26 = vsel %vm8528_vm11, %v4433_v57, %v4434_v33  ;;  %vm1960_vm7 = vcmp.lt.s32.totalorder %v5647_v38, 46 }
 0x187   : > { %977 = vmatpush1.bf16.msra.mxu1 %v791_v40  ;;  %v6112_v7 = vpop.permute.xlu0 %4441  ;;  %v654_v61 = vpack.c.bf16 %v630_v19, %v630_v19  ;;  %v653_v39 = vpack.c.bf16 %v631_v26, %v631_v26  ;;  %v6115_v52 = vpop.permute.xlu1 %4456 }
 0x188   : > { %v4443_v62 = vunpack.i.l.bf16 %v6112_v7  ;;  %v4458_v48 = vunpack.i.l.bf16 %v6115_v52  ;;  %v4459_v63 = vunpack.i.h.bf16 %v6115_v52 }
 0x189   : > { %4731 = vrot.lane.b32.xlu0 %v5725_v0, %s8522_s12  ;;  %936 = vmatpush1.bf16.msra.mxu0 %v789_v49  ;;  %v1013_v37 = vsel %vm526_vm4, %v653_v39, 0 }
 0x18a   : > { %4746 = vrot.lane.b32.xlu1 %v5757_v14, %s8543_s17  ;;  %4151 = vmatprep.subr.msk.bf16.mxu1 %vm526_vm4, %v654_v61  ;;  %v632_v47 = vsel %vm8528_vm11, %v4443_v62, %v4433_v57  ;;  %v633_v27 = vsel %vm8528_vm11, %v4439_v3, %v4443_v62  ;;  %v581_v33 = vsel %vm576_vm12, %v4458_v48, %v4448_v55 }
 0x18b   : > { %4148 = vmatmul.mubr.msk.bf16.vlgmr.msra.gmra.mxu1 %vm811_vm10, %v6041_v59  ;;  %v6135_v8 = vpop.permute.xlu0 %4451  ;;  %v652_v53 = vpack.c.bf16 %v632_v47, %v632_v47  ;;  %v651_v36 = vpack.c.bf16 %v633_v27, %v633_v27  ;;  %v6138_v13 = vpop.permute.xlu1 %4466  ;;  %v582_v26 = vsel %vm576_vm12, %v4459_v63, %v4458_v48 }
 0x18c   : > { %1082 = vmatpush1.bf16.msra.mxu1 %v1013_v37  ;;  %v4454_v41 = vunpack.i.h.bf16 %v6135_v8  ;;  %v4453_v51 = vunpack.i.l.bf16 %v6135_v8  ;;  %4146 = vmatmul.mubr.msk.bf16.vlgmr.msra.gmra.mxu0 %vm811_vm10, %v6041_v59  ;;  %v580_v59 = vsel %vm576_vm12, %v4448_v55, %v4449_v46  ;;  %v4468_v54 = vunpack.i.l.bf16 %v6138_v13 }
 0x18d   : > { %4741 = vrot.lane.b32.xlu0 %v5743_v9, %s8522_s12  ;;  %4149 = vmatprep.subr.msk.bf16.mxu0 %vm526_vm4, %v652_v53  ;;  %v1007_v56 = vsel %vm526_vm4, %v651_v36, 0  ;;  %v4469_v48 = vunpack.i.h.bf16 %v6138_v13 }
 0x18e   : > { %4756 = vrot.lane.b32.xlu1 %v5725_v0, %s8539_s20  ;;  %1041 = vmatpush1.bf16.msra.mxu0 %v1007_v56  ;;  %v605_v58 = vsel %vm601_vm13, %v4453_v51, %v4454_v41  ;;  %v583_v27 = vsel %vm576_vm12, %v4468_v54, %v4459_v63 }
 0x18f   : > { %v4462_v44 = vpop.permute.xlu0 %4461  ;;  %v646_v40 = vpack.c.bf16 %v605_v58, %v580_v59  ;;  %1062 = vmatprep.mubr.bf16.mxu0 %v8649_v18  ;;  %1103 = vmatprep.mubr.bf16.mxu1 %v8649_v18  ;;  %v6162_v42 = vpop.permute.xlu1 %4476 }
 0x190   : > { %v4464_v17 = vunpack.i.h.bf16 %v4462_v44  ;;  %v4463_v24 = vunpack.i.l.bf16 %v4462_v44  ;;  %v4479_v57 = vunpack.i.h.bf16 %v6162_v42  ;;  %v4478_v60 = vunpack.i.l.bf16 %v6162_v42 }
 0x191   : > { %4751 = vrot.lane.b32.xlu0 %v5757_v14, %s8522_s12  ;;  %1083 = vmatprep.subr.bf16.mxu1 %v646_v40 }
 0x192   : > { %v606_v19 = vsel %vm601_vm13, %v4463_v24, %v4453_v51  ;;  %4766 = vrot.lane.b32.xlu1 %v5743_v9, %s8539_s20  ;;  %v607_v49 = vsel %vm601_vm13, %v4464_v17, %v4463_v24  ;;  %v555_v62 = vsel %vm8526_vm14, %v4478_v60, %v4479_v57 }
 0x193   : > { %v6180_v61 = vpop.permute.xlu0 %4471  ;;  %v644_v39 = vpack.c.bf16 %v607_v49, %v582_v26  ;;  %v645_v52 = vpack.c.bf16 %v606_v19, %v581_v33  ;;  %v6186_v37 = vpop.permute.xlu1 %4486  ;;  %v638_v47 = vpack.c.bf16 %v555_v62, %v5681_v28  ;;  %v4795_v19 = vpack.i.bf16 %v5731_v4, %v5746_v12 }
 0x194   : > { %v4473_v55 = vunpack.i.l.bf16 %v6180_v61  ;;  %v4474_v53 = vunpack.i.h.bf16 %v6180_v61  ;;  %v4489_v63 = vunpack.i.h.bf16 %v6186_v37  ;;  %v584_v61 = vsel %vm576_vm12, %v4469_v48, %v4468_v54 }
 0x195   : > { %4761 = vrot.lane.b32.xlu0 %v5725_v0, %s8537_s29  ;;  %1042 = vmatprep.subr.bf16.mxu0 %v644_v39  ;;  %v4488_v0 = vunpack.i.l.bf16 %v6186_v37 }
 0x196   : > { %v608_v36 = vsel %vm601_vm13, %v4473_v55, %v4464_v17  ;;  %4776 = vrot.lane.b32.xlu1 %v5757_v14, %s8539_s20  ;;  %1084 = vmatpush1.bf16.msra.mxu1 %v645_v52  ;;  %v609_v40 = vsel %vm601_vm13, %v4474_v53, %v4473_v55  ;;  %v4444_v17 = vunpack.i.h.bf16 %v6112_v7 }
 0x197   : > { %1085 = vmatprep.subr.bf16.mxu1 %v638_v47  ;;  %v4482_v51 = vpop.permute.xlu0 %4481  ;;  %v643_v28 = vpack.c.bf16 %v608_v36, %v583_v27  ;;  %v4497_v56 = vpop.permute.xlu1 %4496 }
 0x198   : > { %v4484_v59 = vunpack.i.h.bf16 %v4482_v51  ;;  %v4483_v58 = vunpack.i.l.bf16 %v4482_v51  ;;  %v4499_v39 = vunpack.i.h.bf16 %v4497_v56  ;;  %v4498_v52 = vunpack.i.l.bf16 %v4497_v56 }
 0x199   : > { %4771 = vrot.lane.b32.xlu0 %v5743_v9, %s8537_s29  ;;  %1043 = vmatpush1.bf16.msra.mxu0 %v643_v28 }
 0x19a   : > { %v558_v14 = vsel %vm8526_vm14, %v4488_v0, %v4484_v59  ;;  %v556_v44 = vsel %vm8526_vm14, %v4483_v58, %v4478_v60  ;;  %4781 = vrot.lane.b32.xlu1 %v5786_v25, %s8524_s22  ;;  %v557_v13 = vsel %vm8526_vm14, %v4484_v59, %v4483_v58  ;;  %v577_v56 = vsel %vm576_vm12, %v4498_v52, %v4469_v48  ;;  %s8655_s22 = smov 87  }
 0x19b   : > { %v4492_v24 = vpop.permute.xlu0 %4491  ;;  %v636_v9 = vpack.c.bf16 %v557_v13, %v5728_v2  ;;  %v637_v33 = vpack.c.bf16 %v556_v44, %v5684_v31  ;;  %v6219_v60 = vpop.permute.xlu1 %4506  ;;  %v635_v49 = vpack.c.bf16 %v558_v14, %v5700_v45  ;;  %v650_v2 = vpack.c.bf16 %v609_v40, %v584_v61 }
 0x19c   : > { %v4494_v26 = vunpack.i.h.bf16 %v4492_v24  ;;  %v4493_v25 = vunpack.i.l.bf16 %v4492_v24  ;;  %v6230_v31 = vsel %vm8526_vm14, %v4489_v63, %v4488_v0  ;;  %v4509_v62 = vunpack.i.h.bf16 %v6219_v60 }
 0x19d   : > { %1919 = vrot.lane.b32.xlu0 %v5700_v45, %s8537_s29  ;;  %1044 = vmatprep.subr.bf16.mxu0 %v636_v9  ;;  %v4508_v55 = vunpack.i.l.bf16 %v6219_v60  ;;  %v578_v58 = vsel %vm576_vm12, %v4499_v39, %v4498_v52  ;;  %v642_v61 = vpack.c.bf16 %v6230_v31, %v5746_v12 }
 0x19e   : > { %4791 = vrot.lane.b32.xlu1 %v5794_v6, %s8522_s12  ;;  %1086 = vmatpush1.bf16.msra.mxu1 %v637_v33  ;;  %v628_v7 = vsel %vm8528_vm11, %v4494_v26, %v4444_v17  ;;  %v634_v45 = vsel %vm8528_vm11, %v4493_v25, %v4439_v3  ;;  %v629_v54 = vsel %vm8528_vm11, %v4438_v34, %v4494_v26  ;;  %v6251_v3 = vld [vmem:[%s8647_s3] sm:$0xf]  ;;  %s8654_s12 = smov 108  }
 0x19f   : > { %1045 = vmatpush1.bf16.msra.mxu0 %v635_v49  ;;  %v4502_v47 = vpop.permute.xlu0 %4501  ;;  %v656_v27 = vpack.c.bf16 %v628_v7, %v628_v7  ;;  %v658_v36 = vpack.c.bf16 %v634_v45, %v634_v45  ;;  %v6246_v51 = vpop.permute.xlu1 %4516  ;;  %v655_v1 = vpack.c.bf16 %v629_v54, %v629_v54  ;;  %v627_v34 = vsel %vm8528_vm11, %v4444_v17, %v4493_v25 }
 0x1a0   : > { %v4504_v28 = vunpack.i.h.bf16 %v4502_v47  ;;  %v4503_v0 = vunpack.i.l.bf16 %v4502_v47  ;;  %v657_v59 = vpack.c.bf16 %v627_v34, %v627_v34  ;;  %v553_v43 = vsel %vm8526_vm14, %v4509_v62, %v4508_v55 }
 0x1a1   : > { %4786 = vrot.lane.b32.xlu0 %v5794_v6, %s8543_s17  ;;  %4153 = vmatprep.subr.msk.bf16.mxu0 %vm526_vm4, %v656_v27  ;;  %v1019_v48 = vsel %vm526_vm4, %v655_v1, 0  ;;  %v554_v60 = vsel %vm8526_vm14, %v4479_v57, %v4509_v62  ;;  %v4518_v26 = vunpack.i.l.bf16 %v6246_v51  ;;  %v552_v25 = vsel %vm8526_vm14, %v4508_v55, %v4489_v63  ;;  %s8659_s17 = smov 66  }
 0x1a2   : > { %v602_v14 = vsel %vm601_vm13, %v4503_v0, %v4474_v53  ;;  %v604_v44 = vsel %vm601_vm13, %v4454_v41, %v4504_v28  ;;  %4801 = vrot.lane.b32.xlu1 %v5794_v6, %s8539_s20  ;;  %4155 = vmatprep.subr.msk.bf16.mxu1 %vm526_vm4, %v658_v36  ;;  %v603_v13 = vsel %vm601_vm13, %v4504_v28, %v4503_v0  ;;  %v1025_v6 = vsel %vm526_vm4, %v657_v59, 0  ;;  %v2244_v41 = vld [vmem:[%s8652_s4] sm:$0xff]  ;;  %s8657_s20 = smov 64   ;;  %s8669_s4 = smov 106  }
 0x1a3   : > { %v579_v53 = vsel %vm576_vm12, %v4449_v46, %v4499_v39  ;;  %4150 = vmatmul.mubr.msk.bf16.vlgmr.msra.gmra.mxu0 %vm811_vm10, %v6251_v3  ;;  %4152 = vmatmul.mubr.msk.bf16.vlgmr.msra.gmra.mxu1 %vm811_vm10, %v6251_v3  ;;  %v4512_v8 = vpop.permute.xlu0 %4511  ;;  %v648_v40 = vpack.c.bf16 %v603_v13, %v578_v58  ;;  %v6288_v46 = vpop.permute.xlu1 %4526  ;;  %v649_v33 = vpack.c.bf16 %v602_v14, %v577_v56  ;;  %v4519_v42 = vunpack.i.h.bf16 %v6246_v51 }
 0x1a4   : > { %1123 = vmatpush1.bf16.msra.mxu0 %v1019_v48  ;;  %1164 = vmatpush1.bf16.msra.mxu1 %v1025_v6  ;;  %v4514_v17 = vunpack.i.h.bf16 %v4512_v8  ;;  %v4513_v24 = vunpack.i.l.bf16 %v4512_v8  ;;  %v647_v9 = vpack.c.bf16 %v604_v44, %v579_v53  ;;  %v4529_v12 = vunpack.i.h.bf16 %v6288_v46 }
 0x1a5   : > { %1165 = vmatprep.subr.bf16.mxu1 %v650_v2  ;;  %4796 = vrot.lane.b32.xlu0 %v4795_v19, %s8537_s29  ;;  %v640_v19 = vpack.c.bf16 %v553_v43, %v5782_v5  ;;  %v639_v52 = vpack.c.bf16 %v554_v60, %v5703_v50  ;;  %v4528_v2 = vunpack.i.l.bf16 %v6288_v46  ;;  %v641_v31 = vpack.c.bf16 %v552_v25, %v5731_v4 }
 0x1a6   : > { %2247 = vperm.xlu1 %4309, %v2244_v41   ;;  %1124 = vmatprep.subr.bf16.mxu0 %v648_v40  ;;  %v1314_v63 = vsel %vm8527_vm15, %v4514_v17, %v4518_v26  ;;  %v1315_v39 = vsel %vm8527_vm15, %v4513_v24, %v4514_v17  ;;  %vm1235_vm14 = vcmp.lt.s32.totalorder %v5647_v38, 87  ;;  %vm1610_vm11 = vcmp.lt.s32.totalorder %v5647_v38, 66 }
 0x1a7   : > { %v6301_v49 = vpop.permute.xlu0 %4521  ;;  %1144 = vmatprep.mubr.bf16.mxu0 %v8649_v18  ;;  %1185 = vmatprep.mubr.bf16.mxu1 %v8649_v18  ;;  %v4537_v57 = vpop.permute.xlu1 %4536  ;;  %v1338_v50 = vpack.c.bf16 %v1314_v63, %v1314_v63  ;;  %v1337_v47 = vpack.c.bf16 %v1315_v39, %v1315_v39  ;;  %v1264_v1 = vsel %vm1260_vm1, %v4528_v2, %v4529_v12 }
 0x1a8   : > { %1125 = vmatpush1.bf16.msra.mxu0 %v647_v9  ;;  %1166 = vmatpush1.bf16.msra.mxu1 %v649_v33  ;;  %v4523_v37 = vunpack.i.l.bf16 %v6301_v49  ;;  %v4538_v36 = vunpack.i.l.bf16 %v4537_v57  ;;  %v4539_v0 = vunpack.i.h.bf16 %v4537_v57 }
 0x1a9   : > { %1126 = vmatprep.subr.bf16.mxu0 %v640_v19  ;;  %1167 = vmatprep.subr.bf16.mxu1 %v642_v61  ;;  %v1355_v56 = vsel %vm526_vm4, %v1337_v47, 0 }
 0x1aa   : > { %1929 = vrot.lane.b32.xlu0 %v5782_v5, %s8537_s29  ;;  %v1316_v7 = vsel %vm8527_vm15, %v4523_v37, %v4513_v24  ;;  %v1317_v45 = vsel %vm8527_vm15, %v4519_v42, %v4523_v37  ;;  %v1265_v13 = vsel %vm1260_vm1, %v4538_v36, %v4528_v2  ;;  %v1266_v6 = vsel %vm1260_vm1, %v4539_v0, %v4538_v36  ;;  %s8656_s29 = smov 107  }
 0x1ab   : > { %v6330_v54 = vpop.permute.xlu0 %4531  ;;  %v1336_v62 = vpack.c.bf16 %v1316_v7, %v1316_v7  ;;  %v1335_v55 = vpack.c.bf16 %v1317_v45, %v1317_v45  ;;  %v6332_v27 = vpop.permute.xlu1 %4546 }
 0x1ac   : > { %1127 = vmatpush1.bf16.msra.mxu0 %v639_v52  ;;  %1168 = vmatpush1.bf16.msra.mxu1 %v641_v31  ;;  %v4534_v4 = vunpack.i.h.bf16 %v6330_v54  ;;  %v4533_v5 = vunpack.i.l.bf16 %v6330_v54  ;;  %v4548_v53 = vunpack.i.l.bf16 %v6332_v27  ;;  %v4549_v36 = vunpack.i.h.bf16 %v6332_v27 }
 0x1ad   : > { %4160 = vmatprep.subr.msk.bf16.mxu1 %vm526_vm4, %v1338_v50  ;;  %4158 = vmatprep.subr.msk.bf16.mxu0 %vm526_vm4, %v1336_v62  ;;  %v1349_v28 = vsel %vm526_vm4, %v1335_v55, 0  ;;  %v4524_v50 = vunpack.i.h.bf16 %v6301_v49 }
 0x1ae   : > { %v1289_v34 = vsel %vm1285_vm2, %v4533_v5, %v4534_v4  ;;  %v1267_v9 = vsel %vm1260_vm1, %v4548_v53, %v4539_v0 }
 0x1af   : > { %4154 = vmatmul.mubr.msk.bf16.vlgmr.msra.gmra.mxu0 %vm811_vm10, %v6251_v3  ;;  %4156 = vmatmul.mubr.msk.bf16.vlgmr.msra.gmra.mxu1 %vm811_vm10, %v6251_v3  ;;  %v4542_v59 = vpop.permute.xlu0 %4541  ;;  %v1330_v58 = vpack.c.bf16 %v1289_v34, %v1264_v1  ;;  %v6352_v14 = vpop.permute.xlu1 %4556 }
 0x1b0   : > { %1383 = vmatpush1.bf16.msra.mxu0 %v1349_v28  ;;  %1424 = vmatpush1.bf16.msra.mxu1 %v1355_v56  ;;  %v4544_v44 = vunpack.i.h.bf16 %v4542_v59  ;;  %v4543_v48 = vunpack.i.l.bf16 %v4542_v59  ;;  %v4559_v33 = vunpack.i.h.bf16 %v6352_v14  ;;  %v4558_v60 = vunpack.i.l.bf16 %v6352_v14 }
 0x1b1   : > { %1425 = vmatprep.subr.bf16.mxu1 %v1330_v58  ;;  %1445 = vmatprep.mubr.bf16.mxu1 %v8649_v18 }
 0x1b2   : > { %v1290_v3 = vsel %vm1285_vm2, %v4543_v48, %v4533_v5  ;;  %v1291_v8 = vsel %vm1285_vm2, %v4544_v44, %v4543_v48  ;;  %1404 = vmatprep.mubr.bf16.mxu0 %v8649_v18  ;;  %v1214_v2 = vsel %vm1210_vm3, %v4558_v60, %v4559_v33 }
 0x1b3   : > { %v6365_v41 = vpop.permute.xlu0 %4551  ;;  %v1328_v40 = vpack.c.bf16 %v1291_v8, %v1266_v6  ;;  %v1329_v43 = vpack.c.bf16 %v1290_v3, %v1265_v13  ;;  %v4567_v17 = vpop.permute.xlu1 %4566 }
 0x1b4   : > { %v4553_v24 = vunpack.i.l.bf16 %v6365_v41  ;;  %v4568_v39 = vunpack.i.l.bf16 %v4567_v17  ;;  %v4569_v52 = vunpack.i.h.bf16 %v4567_v17  ;;  %v4554_v62 = vunpack.i.h.bf16 %v6365_v41 }
 0x1b5   : > { %1384 = vmatprep.subr.bf16.mxu0 %v1328_v40  ;;  %1426 = vmatpush1.bf16.msra.mxu1 %v1329_v43 }
 0x1b6   : > { %v1292_v25 = vsel %vm1285_vm2, %v4553_v24, %v4544_v44  ;;  %v1215_v28 = vsel %vm1210_vm3, %v4568_v39, %v4558_v60  ;;  %v1216_v49 = vsel %vm1210_vm3, %v4569_v52, %v4568_v39  ;;  %v1293_v43 = vsel %vm1285_vm2, %v4554_v62, %v4553_v24  ;;  %v6415_v60 = vld [vmem:[%s8647_s3 + $0x8] sm:$0xf] }
 0x1b7   : > { %v6377_v19 = vpop.permute.xlu0 %4561  ;;  %v1327_v61 = vpack.c.bf16 %v1292_v25, %v1267_v9  ;;  %v6380_v57 = vpop.permute.xlu1 %4576  ;;  %v1268_v39 = vsel %vm1260_vm1, %v4549_v36, %v4548_v53 }
 0x1b8   : > { %v4564_v37 = vunpack.i.h.bf16 %v6377_v19  ;;  %v4563_v63 = vunpack.i.l.bf16 %v6377_v19  ;;  %v4578_v34 = vunpack.i.l.bf16 %v6380_v57 }
 0x1b9   : > { %1385 = vmatpush1.bf16.msra.mxu0 %v1327_v61 }
 0x1ba   : > { %v1239_v31 = vsel %vm1235_vm14, %v4563_v63, %v4564_v37  ;;  %v1217_v24 = vsel %vm1210_vm3, %v4578_v34, %v4569_v52 }
 0x1bb   : > { %v4572_v7 = vpop.permute.xlu0 %4571  ;;  %v1322_v45 = vpack.c.bf16 %v1239_v31, %v1214_v2  ;;  %v4587_v55 = vpop.permute.xlu1 %4586  ;;  %v4579_v2 = vunpack.i.h.bf16 %v6380_v57 }
 0x1bc   : > { %v4574_v47 = vunpack.i.h.bf16 %v4572_v7  ;;  %v4573_v5 = vunpack.i.l.bf16 %v4572_v7  ;;  %v4589_v0 = vunpack.i.h.bf16 %v4587_v55  ;;  %v4588_v1 = vunpack.i.l.bf16 %v4587_v55 }
 0x1bd   : > { %1427 = vmatprep.subr.bf16.mxu1 %v1322_v45  ;;  %v1334_v7 = vpack.c.bf16 %v1293_v43, %v1268_v39 }
 0x1be   : > { %v1240_v56 = vsel %vm1235_vm14, %v4573_v5, %v4563_v63  ;;  %v1241_v59 = vsel %vm1235_vm14, %v4574_v47, %v4573_v5  ;;  %v1318_v13 = vsel %vm8527_vm15, %v4588_v1, %v4519_v42  ;;  %v1311_v3 = vsel %vm8527_vm15, %v4524_v50, %v4588_v1 }
 0x1bf   : > { %v4582_v58 = vpop.permute.xlu0 %4581  ;;  %v1320_v44 = vpack.c.bf16 %v1241_v59, %v1216_v49  ;;  %v1321_v48 = vpack.c.bf16 %v1240_v56, %v1215_v28  ;;  %v4597_v6 = vpop.permute.xlu1 %4596  ;;  %v1342_v41 = vpack.c.bf16 %v1318_v13, %v1318_v13  ;;  %v1341_v40 = vpack.c.bf16 %v1311_v3, %v1311_v3 }
 0x1c0   : > { %v4583_v8 = vunpack.i.l.bf16 %v4582_v58  ;;  %v4598_v17 = vunpack.i.l.bf16 %v4597_v6  ;;  %v4584_v9 = vunpack.i.h.bf16 %v4582_v58  ;;  %v1312_v42 = vsel %vm8527_vm15, %v4589_v0, %v4524_v50 }
 0x1c1   : > { %1386 = vmatprep.subr.bf16.mxu0 %v1320_v44  ;;  %1428 = vmatpush1.bf16.msra.mxu1 %v1321_v48  ;;  %v1313_v25 = vsel %vm8527_vm15, %v4518_v26, %v4589_v0  ;;  %v4599_v61 = vunpack.i.h.bf16 %v4597_v6  ;;  %v1367_v55 = vsel %vm526_vm4, %v1341_v40, 0  ;;  %v1218_v58 = vsel %vm1210_vm3, %v4579_v2, %v4578_v34 }
 0x1c2   : > { %v1242_v63 = vsel %vm1235_vm14, %v4583_v8, %v4574_v47  ;;  %4164 = vmatprep.subr.msk.bf16.mxu1 %vm526_vm4, %v1342_v41  ;;  %v1339_v26 = vpack.c.bf16 %v1313_v25, %v1313_v25  ;;  %v1340_v47 = vpack.c.bf16 %v1312_v42, %v1312_v42  ;;  %v1286_v27 = vsel %vm1285_vm2, %v4598_v17, %v4554_v62 }
 0x1c3   : > { %v4592_v51 = vpop.permute.xlu0 %4591  ;;  %v1319_v31 = vpack.c.bf16 %v1242_v63, %v1217_v24  ;;  %v4607_v45 = vpop.permute.xlu1 %4606  ;;  %v1243_v53 = vsel %vm1235_vm14, %v4584_v9, %v4583_v8  ;;  %v1287_v1 = vsel %vm1285_vm2, %v4599_v61, %v4598_v17  ;;  %v1288_v34 = vsel %vm1285_vm2, %v4534_v4, %v4599_v61 }
 0x1c4   : > { %v4594_v50 = vunpack.i.h.bf16 %v4592_v51  ;;  %v4593_v52 = vunpack.i.l.bf16 %v4592_v51  ;;  %4161 = vmatmul.mubr.msk.bf16.vlgmr.msra.gmra.mxu1 %vm811_vm10, %v6415_v60  ;;  %v4608_v5 = vunpack.i.l.bf16 %v4607_v45  ;;  %v4609_v57 = vunpack.i.h.bf16 %v4607_v45 }
 0x1c5   : > { %1387 = vmatpush1.bf16.msra.mxu0 %v1319_v31  ;;  %1506 = vmatpush1.bf16.msra.mxu1 %v1367_v55  ;;  %v1361_v56 = vsel %vm526_vm4, %v1339_v26, 0  ;;  %v1326_v3 = vpack.c.bf16 %v1243_v53, %v1218_v58  ;;  %vm8532_vm15 = vcmp.lt.s32.totalorder %v5647_v38, 64 }
 0x1c6   : > { %v1261_v28 = vsel %vm1260_vm1, %v4593_v52, %v4549_v36  ;;  %4162 = vmatprep.subr.msk.bf16.mxu0 %vm526_vm4, %v1340_v47  ;;  %1507 = vmatprep.subr.bf16.mxu1 %v1334_v7  ;;  %v1262_v0 = vsel %vm1260_vm1, %v4594_v50, %v4593_v52  ;;  %v1263_v36 = vsel %vm1260_vm1, %v4529_v12, %v4594_v50 }
 0x1c7   : > { %v4602_v62 = vpop.permute.xlu0 %4601  ;;  %v1333_v49 = vpack.c.bf16 %v1286_v27, %v1261_v28  ;;  %v1332_v59 = vpack.c.bf16 %v1287_v1, %v1262_v0  ;;  %1527 = vmatprep.mubr.bf16.mxu1 %v8649_v18  ;;  %v6455_v44 = vpop.permute.xlu1 %4616  ;;  %v1236_v6 = vsel %vm1235_vm14, %v4608_v5, %v4584_v9  ;;  %v1237_v8 = vsel %vm1235_vm14, %v4609_v57, %v4608_v5 }
 0x1c8   : > { %v4604_v48 = vunpack.i.h.bf16 %v4602_v62  ;;  %v4603_v13 = vunpack.i.l.bf16 %v4602_v62  ;;  %4159 = vmatmul.mubr.msk.bf16.vlgmr.msra.gmra.mxu0 %vm811_vm10, %v6415_v60  ;;  %v1331_v41 = vpack.c.bf16 %v1288_v34, %v1263_v36  ;;  %v4618_v43 = vunpack.i.l.bf16 %v6455_v44 }
 0x1c9   : > { %1465 = vmatpush1.bf16.msra.mxu0 %v1361_v56  ;;  %1508 = vmatpush1.bf16.msra.mxu1 %v1333_v49  ;;  %v1238_v24 = vsel %vm1235_vm14, %v4564_v37, %v4609_v57  ;;  %v4619_v51 = vunpack.i.h.bf16 %v6455_v44 }
 0x1ca   : > { %v1211_v46 = vsel %vm1210_vm3, %v4603_v13, %v4579_v2  ;;  %1466 = vmatprep.subr.bf16.mxu0 %v1332_v59  ;;  %1509 = vmatprep.subr.bf16.mxu1 %v1326_v3  ;;  %v1212_v12 = vsel %vm1210_vm3, %v4604_v48, %v4603_v13  ;;  %v1213_v17 = vsel %vm1210_vm3, %v4559_v33, %v4604_v48 }
 0x1cb   : > { %v4612_v54 = vpop.permute.xlu0 %4611  ;;  %v1325_v40 = vpack.c.bf16 %v1236_v6, %v1211_v46  ;;  %v1324_v4 = vpack.c.bf16 %v1237_v8, %v1212_v12  ;;  %1486 = vmatprep.mubr.bf16.mxu0 %v8649_v18  ;;  %v6478_v9 = vpop.permute.xlu1 %4626  ;;  %v1323_v63 = vpack.c.bf16 %v1238_v24, %v1213_v17 }
 0x1cc   : > { %v4614_v42 = vunpack.i.h.bf16 %v4612_v54  ;;  %v4613_v25 = vunpack.i.l.bf16 %v4612_v54  ;;  %v4629_v7 = vunpack.i.h.bf16 %v6478_v9  ;;  %v4628_v26 = vunpack.i.l.bf16 %v6478_v9 }
 0x1cd   : > { %1467 = vmatpush1.bf16.msra.mxu0 %v1331_v41  ;;  %1510 = vmatpush1.bf16.msra.mxu1 %v1325_v40 }
 0x1ce   : > { %1468 = vmatprep.subr.bf16.mxu0 %v1324_v4  ;;  %v1664_v14 = vsel %vm8532_vm15, %v4614_v42, %v4618_v43  ;;  %v1665_v33 = vsel %vm8532_vm15, %v4613_v25, %v4614_v42  ;;  %v1614_v1 = vsel %vm1610_vm11, %v4628_v26, %v4629_v7 }
 0x1cf   : > { %v6490_v61 = vpop.permute.xlu0 %4621  ;;  %v1688_v39 = vpack.c.bf16 %v1664_v14, %v1664_v14  ;;  %v1687_v2 = vpack.c.bf16 %v1665_v33, %v1665_v33  ;;  %v4637_v19 = vpop.permute.xlu1 %4636 }
 0x1d0   : > { %v4623_v31 = vunpack.i.l.bf16 %v6490_v61  ;;  %4165 = vmatmul.mubr.msk.bf16.vlgmr.msra.gmra.mxu1 %vm811_vm10, %v6415_v60  ;;  %v4638_v57 = vunpack.i.l.bf16 %v4637_v19  ;;  %v4639_v0 = vunpack.i.h.bf16 %v4637_v19 }
 0x1d1   : > { %1469 = vmatpush1.bf16.msra.mxu0 %v1323_v63  ;;  %4169 = vmatprep.subr.msk.bf16.mxu1 %vm526_vm4, %v1688_v39  ;;  %v1705_v37 = vsel %vm526_vm4, %v1687_v2, 0 }
 0x1d2   : > { %1774 = vmatpush1.bf16.msra.mxu1 %v1705_v37  ;;  %v1666_v45 = vsel %vm8532_vm15, %v4623_v31, %v4613_v25  ;;  %v1667_v50 = vsel %vm8532_vm15, %v4619_v51, %v4623_v31  ;;  %1795 = vmatprep.mubr.bf16.mxu1 %v8649_v18  ;;  %v1615_v36 = vsel %vm1610_vm11, %v4638_v57, %v4628_v26  ;;  %v4624_v26 = vunpack.i.h.bf16 %v6490_v61 }
 0x1d3   : > { %v6508_v52 = vpop.permute.xlu0 %4631  ;;  %v1686_v55 = vpack.c.bf16 %v1666_v45, %v1666_v45  ;;  %v1685_v47 = vpack.c.bf16 %v1667_v50, %v1667_v50  ;;  %v6511_v27 = vpop.permute.xlu1 %4646  ;;  %v1616_v3 = vsel %vm1610_vm11, %v4639_v0, %v4638_v57 }
 0x1d4   : > { %v4634_v5 = vunpack.i.h.bf16 %v6508_v52  ;;  %v4633_v53 = vunpack.i.l.bf16 %v6508_v52  ;;  %4163 = vmatmul.mubr.msk.bf16.vlgmr.msra.gmra.mxu0 %vm811_vm10, %v6415_v60  ;;  %v4648_v48 = vunpack.i.l.bf16 %v6511_v27 }
 0x1d5   : > { %4167 = vmatprep.subr.msk.bf16.mxu0 %vm526_vm4, %v1686_v55  ;;  %v1699_v28 = vsel %vm526_vm4, %v1685_v47, 0  ;;  %1754 = vmatprep.mubr.bf16.mxu0 %v8649_v18 }
 0x1d6   : > { %1733 = vmatpush1.bf16.msra.mxu0 %v1699_v28  ;;  %v1639_v62 = vsel %vm8624_vm8, %v4633_v53, %v4634_v5  ;;  %v1617_v41 = vsel %vm1610_vm11, %v4648_v48, %v4639_v0 }
 0x1d7   : > { %v4642_v60 = vpop.permute.xlu0 %4641  ;;  %v1680_v56 = vpack.c.bf16 %v1639_v62, %v1614_v1 }
 0x1d8   : > { %v6528_v49 = vpop.permute.xlu1 %4656  ;;  %v4644_v59 = vunpack.i.h.bf16 %v4642_v60  ;;  %v4643_v58 = vunpack.i.l.bf16 %v4642_v60 }
 0x1d9   : > { %1775 = vmatprep.subr.bf16.mxu1 %v1680_v56  ;;  %v4659_v40 = vunpack.i.h.bf16 %v6528_v49  ;;  %v4658_v4 = vunpack.i.l.bf16 %v6528_v49 }
 0x1da   : > { %v1640_v13 = vsel %vm8624_vm8, %v4643_v58, %v4633_v53  ;;  %v1641_v34 = vsel %vm8624_vm8, %v4644_v59, %v4643_v58  ;;  %v4649_v53 = vunpack.i.h.bf16 %v6511_v27 }
 0x1db   : > { %v6539_v6 = vpop.permute.xlu0 %4651  ;;  %v1678_v46 = vpack.c.bf16 %v1641_v34, %v1616_v3  ;;  %v1679_v12 = vpack.c.bf16 %v1640_v13, %v1615_v36  ;;  %v1564_v2 = vsel %vm8536_vm9, %v4658_v4, %v4659_v40 }
 0x1dc   : > { %v4667_v8 = vpop.permute.xlu1 %4666  ;;  %v4653_v54 = vunpack.i.l.bf16 %v6539_v6  ;;  %v4654_v45 = vunpack.i.h.bf16 %v6539_v6 }
 0x1dd   : > { %1734 = vmatprep.subr.bf16.mxu0 %v1678_v46  ;;  %1776 = vmatpush1.bf16.msra.mxu1 %v1679_v12  ;;  %v4668_v63 = vunpack.i.l.bf16 %v4667_v8  ;;  %v4669_v39 = vunpack.i.h.bf16 %v4667_v8 }
 0x1de   : > { %v1642_v17 = vsel %vm8624_vm8, %v4653_v54, %v4644_v59  ;;  %v1643_v12 = vsel %vm8624_vm8, %v4654_v45, %v4653_v54 }
 0x1df   : > { %v6551_v42 = vpop.permute.xlu0 %4661  ;;  %v1677_v25 = vpack.c.bf16 %v1642_v17, %v1617_v41  ;;  %v1565_v57 = vsel %vm8536_vm9, %v4668_v63, %v4658_v4  ;;  %v1566_v61 = vsel %vm8536_vm9, %v4669_v39, %v4668_v63  ;;  %v6589_v4 = vld [vmem:[%s8647_s3 + $0xc] sm:$0xf]  ;;  %v1618_v63 = vsel %vm1610_vm11, %v4649_v53, %v4648_v48 }
 0x1e0   : > { %v6554_v24 = vpop.permute.xlu1 %4676  ;;  %v4664_v14 = vunpack.i.h.bf16 %v6551_v42  ;;  %v4663_v33 = vunpack.i.l.bf16 %v6551_v42 }
 0x1e1   : > { %1735 = vmatpush1.bf16.msra.mxu0 %v1677_v25  ;;  %v4678_v1 = vunpack.i.l.bf16 %v6554_v24 }
 0x1e2   : > { %v1589_v19 = vsel %vm8535_vm6, %v4663_v33, %v4664_v14 }
 0x1e3   : > { %v4672_v31 = vpop.permute.xlu0 %4671  ;;  %v1672_v37 = vpack.c.bf16 %v1589_v19, %v1564_v2  ;;  %v1567_v54 = vsel %vm8536_vm9, %v4678_v1, %v4669_v39  ;;  %v4679_v2 = vunpack.i.h.bf16 %v6554_v24 }
 0x1e4   : > { %v4687_v50 = vpop.permute.xlu1 %4686  ;;  %v4674_v55 = vunpack.i.h.bf16 %v4672_v31  ;;  %v4673_v47 = vunpack.i.l.bf16 %v4672_v31  ;;  %v1684_v31 = vpack.c.bf16 %v1643_v12, %v1618_v63 }
 0x1e5   : > { %v4689_v28 = vunpack.i.h.bf16 %v4687_v50  ;;  %v4688_v0 = vunpack.i.l.bf16 %v4687_v50  ;;  %1777 = vmatprep.subr.bf16.mxu1 %v1672_v37 }
 0x1e6   : > { %v1590_v62 = vsel %vm8535_vm6, %v4673_v47, %v4663_v33  ;;  %v1591_v60 = vsel %vm8535_vm6, %v4674_v55, %v4673_v47 }
 0x1e7   : > { %v4682_v56 = vpop.permute.xlu0 %4681  ;;  %v1670_v59 = vpack.c.bf16 %v1591_v60, %v1566_v61  ;;  %v1671_v58 = vpack.c.bf16 %v1590_v62, %v1565_v57  ;;  %v1668_v36 = vsel %vm8532_vm15, %v4688_v0, %v4619_v51  ;;  %v1661_v13 = vsel %vm8532_vm15, %v4624_v26, %v4688_v0 }
 0x1e8   : > { %v4697_v3 = vpop.permute.xlu1 %4696  ;;  %v4683_v34 = vunpack.i.l.bf16 %v4682_v56  ;;  %v1692_v6 = vpack.c.bf16 %v1668_v36, %v1668_v36  ;;  %v1691_v46 = vpack.c.bf16 %v1661_v13, %v1661_v13  ;;  %v4684_v41 = vunpack.i.h.bf16 %v4682_v56 }
 0x1e9   : > { %v4698_v8 = vunpack.i.l.bf16 %v4697_v3  ;;  %1736 = vmatprep.subr.bf16.mxu0 %v1670_v59  ;;  %1778 = vmatpush1.bf16.msra.mxu1 %v1671_v58  ;;  %v1662_v51 = vsel %vm8532_vm15, %v4689_v28, %v4624_v26  ;;  %v1663_v17 = vsel %vm8532_vm15, %v4618_v43, %v4689_v28  ;;  %v4699_v25 = vunpack.i.h.bf16 %v4697_v3 }
 0x1ea   : > { %v1592_v33 = vsel %vm8535_vm6, %v4683_v34, %v4674_v55  ;;  %4173 = vmatprep.subr.msk.bf16.mxu1 %vm526_vm4, %v1692_v6  ;;  %v1689_v43 = vpack.c.bf16 %v1663_v17, %v1663_v17  ;;  %v1717_v50 = vsel %vm526_vm4, %v1691_v46, 0  ;;  %v1690_v55 = vpack.c.bf16 %v1662_v51, %v1662_v51 }
 0x1eb   : > { %v4692_v44 = vpop.permute.xlu0 %4691  ;;  %v1669_v19 = vpack.c.bf16 %v1592_v33, %v1567_v54  ;;  %v1636_v27 = vsel %vm8624_vm8, %v4698_v8, %v4654_v45  ;;  %v1593_v48 = vsel %vm8535_vm6, %v4684_v41, %v4683_v34  ;;  %v1637_v0 = vsel %vm8624_vm8, %v4699_v25, %v4698_v8 }
 0x1ec   : > { %v4707_v37 = vpop.permute.xlu1 %4706  ;;  %v4694_v26 = vunpack.i.h.bf16 %v4692_v44  ;;  %v4693_v39 = vunpack.i.l.bf16 %v4692_v44  ;;  %4170 = vmatmul.mubr.msk.bf16.vlgmr.msra.gmra.mxu1 %vm811_vm10, %v6589_v4  ;;  %v1711_v62 = vsel %vm526_vm4, %v1689_v43, 0  ;;  %v1568_v56 = vsel %vm8536_vm9, %v4679_v2, %v4678_v1 }
 0x1ed   : > { %v4708_v47 = vunpack.i.l.bf16 %v4707_v37  ;;  %1737 = vmatpush1.bf16.msra.mxu0 %v1669_v19  ;;  %1856 = vmatpush1.bf16.msra.mxu1 %v1717_v50  ;;  %v4709_v24 = vunpack.i.h.bf16 %v4707_v37  ;;  %v1676_v13 = vpack.c.bf16 %v1593_v48, %v1568_v56  ;;  %v1638_v1 = vsel %vm8624_vm8, %v4634_v5, %v4699_v25 }
 0x1ee   : > { %v1611_v57 = vsel %vm1610_vm11, %v4693_v39, %v4649_v53  ;;  %4171 = vmatprep.subr.msk.bf16.mxu0 %vm526_vm4, %v1690_v55  ;;  %1857 = vmatprep.subr.bf16.mxu1 %v1684_v31  ;;  %v1612_v28 = vsel %vm1610_vm11, %v4694_v26, %v4693_v39  ;;  %v1613_v53 = vsel %vm1610_vm11, %v4629_v7, %v4694_v26  ;;  %vm8623_vm15 = vcmp.lt.s32.totalorder %v5647_v38, 44 }
 0x1ef   : > { %v4702_v45 = vpop.permute.xlu0 %4701  ;;  %v1683_v61 = vpack.c.bf16 %v1636_v27, %v1611_v57  ;;  %v1682_v60 = vpack.c.bf16 %v1637_v0, %v1612_v28  ;;  %1877 = vmatprep.mubr.bf16.mxu1 %v8649_v18  ;;  %v1586_v3 = vsel %vm8535_vm6, %v4708_v47, %v4684_v41  ;;  %v1587_v34 = vsel %vm8535_vm6, %v4709_v24, %v4708_v47 }
 0x1f0   : > { %v6629_v59 = vpop.permute.xlu1 %4716  ;;  %v4704_v58 = vunpack.i.h.bf16 %v4702_v45  ;;  %v4703_v36 = vunpack.i.l.bf16 %v4702_v45  ;;  %4168 = vmatmul.mubr.msk.bf16.vlgmr.msra.gmra.mxu0 %vm811_vm10, %v6589_v4  ;;  %v1681_v6 = vpack.c.bf16 %v1638_v1, %v1613_v53  ;;  %v1588_v54 = vsel %vm8535_vm6, %v4664_v14, %v4709_v24 }
 0x1f1   : > { %1815 = vmatpush1.bf16.msra.mxu0 %v1711_v62  ;;  %1858 = vmatpush1.bf16.msra.mxu1 %v1683_v61  ;;  %v4718_v12 = vunpack.i.l.bf16 %v6629_v59  ;;  %v4719_v44 = vunpack.i.h.bf16 %v6629_v59  ;;  %vm8601_vm6 = vcmp.lt.s32.totalorder %v5647_v38, 48 }
 0x1f2   : > { %v1561_v9 = vsel %vm8536_vm9, %v4703_v36, %v4679_v2  ;;  %1816 = vmatprep.subr.bf16.mxu0 %v1682_v60  ;;  %1859 = vmatprep.subr.bf16.mxu1 %v1676_v13  ;;  %v1562_v7 = vsel %vm8536_vm9, %v4704_v58, %v4703_v36  ;;  %v1563_v8 = vsel %vm8536_vm9, %v4659_v40, %v4704_v58  ;;  %vm8564_vm9 = vcmp.lt.s32.totalorder %v5647_v38, 47 }
 0x1f3   : > { %v4712_v52 = vpop.permute.xlu0 %4711  ;;  %v1675_v46 = vpack.c.bf16 %v1586_v3, %v1561_v9  ;;  %v1674_v5 = vpack.c.bf16 %v1587_v34, %v1562_v7  ;;  %1836 = vmatprep.mubr.bf16.mxu0 %v8649_v18  ;;  %v1673_v33 = vpack.c.bf16 %v1588_v54, %v1563_v8 }
 0x1f4   : > { %v6652_v41 = vpop.permute.xlu1 %4726  ;;  %v4714_v51 = vunpack.i.h.bf16 %v4712_v52  ;;  %v4713_v17 = vunpack.i.l.bf16 %v4712_v52 }
 0x1f5   : > { %1817 = vmatpush1.bf16.msra.mxu0 %v1681_v6  ;;  %1860 = vmatpush1.bf16.msra.mxu1 %v1675_v46  ;;  %v4729_v31 = vunpack.i.h.bf16 %v6652_v41  ;;  %v4728_v43 = vunpack.i.l.bf16 %v6652_v41 }
 0x1f6   : > { %1818 = vmatprep.subr.bf16.mxu0 %v1674_v5  ;;  %v2014_v49 = vsel %vm8623_vm15, %v4714_v51, %v4718_v12  ;;  %v2015_v40 = vsel %vm8623_vm15, %v4713_v17, %v4714_v51 }
 0x1f7   : > { %v6664_v25 = vpop.permute.xlu0 %4721  ;;  %v2038_v63 = vpack.c.bf16 %v2014_v49, %v2014_v49  ;;  %v2037_v2 = vpack.c.bf16 %v2015_v40, %v2015_v40  ;;  %v1964_v0 = vsel %vm1960_vm7, %v4728_v43, %v4729_v31 }
 0x1f8   : > { %v4737_v42 = vpop.permute.xlu1 %4736  ;;  %v4723_v19 = vunpack.i.l.bf16 %v6664_v25  ;;  %4174 = vmatmul.mubr.msk.bf16.vlgmr.msra.gmra.mxu1 %vm811_vm10, %v6589_v4 }
 0x1f9   : > { %1819 = vmatpush1.bf16.msra.mxu0 %v1673_v33  ;;  %4178 = vmatprep.subr.msk.bf16.mxu1 %vm526_vm4, %v2038_v63  ;;  %v2055_v14 = vsel %vm526_vm4, %v2037_v2, 0  ;;  %v4738_v24 = vunpack.i.l.bf16 %v4737_v42  ;;  %v4739_v28 = vunpack.i.h.bf16 %v4737_v42 }
 0x1fa   : > { %2124 = vmatpush1.bf16.msra.mxu1 %v2055_v14  ;;  %v2016_v37 = vsel %vm8623_vm15, %v4723_v19, %v4713_v17  ;;  %v2017_v26 = vsel %vm8623_vm15, %v4719_v44, %v4723_v19  ;;  %2145 = vmatprep.mubr.bf16.mxu1 %v8649_v18 }
 0x1fb   : > { %v6682_v39 = vpop.permute.xlu0 %4731  ;;  %v2036_v50 = vpack.c.bf16 %v2016_v37, %v2016_v37  ;;  %v2035_v55 = vpack.c.bf16 %v2017_v26, %v2017_v26  ;;  %v1965_v53 = vsel %vm1960_vm7, %v4738_v24, %v4728_v43  ;;  %v1966_v13 = vsel %vm1960_vm7, %v4739_v28, %v4738_v24 }
 0x1fc   : > { %v6685_v27 = vpop.permute.xlu1 %4746  ;;  %v4734_v47 = vunpack.i.h.bf16 %v6682_v39  ;;  %v4733_v48 = vunpack.i.l.bf16 %v6682_v39  ;;  %4172 = vmatmul.mubr.msk.bf16.vlgmr.msra.gmra.mxu0 %vm811_vm10, %v6589_v4  ;;  %v4724_v37 = vunpack.i.h.bf16 %v6664_v25 }
 0x1fd   : > { %4176 = vmatprep.subr.msk.bf16.mxu0 %vm526_vm4, %v2036_v50  ;;  %v2049_v57 = vsel %vm526_vm4, %v2035_v55, 0  ;;  %2104 = vmatprep.mubr.bf16.mxu0 %v8649_v18  ;;  %v4748_v58 = vunpack.i.l.bf16 %v6685_v27  ;;  %v4749_v24 = vunpack.i.h.bf16 %v6685_v27 }
 0x1fe   : > { %2083 = vmatpush1.bf16.msra.mxu0 %v2049_v57  ;;  %v1989_v45 = vsel %vm1985_vm5, %v4733_v48, %v4734_v47 }
 0x1ff   : > { %v4742_v4 = vpop.permute.xlu0 %4741  ;;  %v2030_v62 = vpack.c.bf16 %v1989_v45, %v1964_v0  ;;  %v1967_v6 = vsel %vm1960_vm7, %v4748_v58, %v4739_v28 }
 0x200   : > { %v6702_v61 = vpop.permute.xlu1 %4756  ;;  %v4744_v60 = vunpack.i.h.bf16 %v4742_v4  ;;  %v4743_v56 = vunpack.i.l.bf16 %v4742_v4 }
 0x201   : > { %2125 = vmatprep.subr.bf16.mxu1 %v2030_v62  ;;  %v4759_v46 = vunpack.i.h.bf16 %v6702_v61  ;;  %v4758_v5 = vunpack.i.l.bf16 %v6702_v61 }
 0x202   : > { %v1990_v36 = vsel %vm1985_vm5, %v4743_v56, %v4733_v48  ;;  %v1991_v1 = vsel %vm1985_vm5, %v4744_v60, %v4743_v56 }
 0x203   : > { %v6713_v3 = vpop.permute.xlu0 %4751  ;;  %v2028_v9 = vpack.c.bf16 %v1991_v1, %v1966_v13  ;;  %v2029_v7 = vpack.c.bf16 %v1990_v36, %v1965_v53  ;;  %v1914_v42 = vsel %vm8601_vm6, %v4758_v5, %v4759_v46 }
 0x204   : > { %v4767_v34 = vpop.permute.xlu1 %4766  ;;  %v4753_v52 = vunpack.i.l.bf16 %v6713_v3  ;;  %v4754_v33 = vunpack.i.h.bf16 %v6713_v3 }
 0x205   : > { %2084 = vmatprep.subr.bf16.mxu0 %v2028_v9  ;;  %2126 = vmatpush1.bf16.msra.mxu1 %v2029_v7  ;;  %v4769_v63 = vunpack.i.h.bf16 %v4767_v34  ;;  %v4768_v2 = vunpack.i.l.bf16 %v4767_v34 }
 0x206   : > { %v1992_v8 = vsel %vm1985_vm5, %v4753_v52, %v4744_v60  ;;  %v1993_v0 = vsel %vm1985_vm5, %v4754_v33, %v4753_v52 }
 0x207   : > { %v6725_v51 = vpop.permute.xlu0 %4761  ;;  %v2027_v17 = vpack.c.bf16 %v1992_v8, %v1967_v6  ;;  %v1915_v45 = vsel %vm8601_vm6, %v4768_v2, %v4758_v5  ;;  %v1916_v25 = vsel %vm8601_vm6, %v4769_v63, %v4768_v2  ;;  %v1968_v2 = vsel %vm1960_vm7, %v4749_v24, %v4748_v58 }
 0x208   : > { %v6728_v54 = vpop.permute.xlu1 %4776  ;;  %v4764_v49 = vunpack.i.h.bf16 %v6725_v51  ;;  %v4763_v40 = vunpack.i.l.bf16 %v6725_v51 }
 0x209   : > { %2085 = vmatpush1.bf16.msra.mxu0 %v2027_v17  ;;  %v4778_v26 = vunpack.i.l.bf16 %v6728_v54 }
 0x20a   : > { %v1939_v19 = vsel %vm8564_vm9, %v4763_v40, %v4764_v49 }
 0x20b   : > { %v4772_v14 = vpop.permute.xlu0 %4771  ;;  %v2022_v43 = vpack.c.bf16 %v1939_v19, %v1914_v42  ;;  %v1917_v3 = vsel %vm8601_vm6, %v4778_v26, %v4769_v63 }
 0x20c   : > { %v4782_v50 = vpop.permute.xlu1 %4781  ;;  %v4774_v55 = vunpack.i.h.bf16 %v4772_v14  ;;  %v4773_v48 = vunpack.i.l.bf16 %v4772_v14 }
 0x20d   : > { %v4784_v57 = vunpack.i.h.bf16 %v4782_v50  ;;  %v4783_v28 = vunpack.i.l.bf16 %v4782_v50  ;;  %2127 = vmatprep.subr.bf16.mxu1 %v2022_v43 }
 0x20e   : > { %v1940_v4 = vsel %vm8564_vm9, %v4773_v48, %v4763_v40  ;;  %v1941_v62 = vsel %vm8564_vm9, %v4774_v55, %v4773_v48 }
 0x20f   : > { %v1920_v60 = vpop.permute.xlu0 %1919  ;;  %v2020_v56 = vpack.c.bf16 %v1941_v62, %v1916_v25  ;;  %v2021_v53 = vpack.c.bf16 %v1940_v4, %v1915_v45  ;;  %v2018_v36 = vsel %vm8623_vm15, %v4783_v28, %v4719_v44  ;;  %v2012_v13 = vsel %vm8623_vm15, %v4784_v57, %v4724_v37  ;;  %v4175_v44 = vld [vmem:[%s8647_s3 + $0x10] sm:$0xf]  ;;  %s8668_s3 = smov 85  }
 0x210   : > { %v4792_v1 = vpop.permute.xlu1 %4791  ;;  %v1942_v9 = vsel %vm8564_vm9, %v1920_v60, %v4774_v55  ;;  %v2042_v7 = vpack.c.bf16 %v2018_v36, %v2018_v36  ;;  %v2011_v34 = vsel %vm8623_vm15, %v4724_v37, %v4783_v28  ;;  %v2040_v17 = vpack.c.bf16 %v2012_v13, %v2012_v13 }
 0x211   : > { %v4794_v52 = vunpack.i.h.bf16 %v4792_v1  ;;  %v4793_v6 = vunpack.i.l.bf16 %v4792_v1  ;;  %v2019_v5 = vpack.c.bf16 %v1942_v9, %v1917_v3  ;;  %2086 = vmatprep.subr.bf16.mxu0 %v2020_v56  ;;  %2128 = vmatpush1.bf16.msra.mxu1 %v2021_v53  ;;  %v2041_v8 = vpack.c.bf16 %v2011_v34, %v2011_v34 }
 0x212   : > { %4182 = vmatprep.subr.msk.bf16.mxu1 %vm526_vm4, %v2042_v7  ;;  %v2013_v40 = vsel %vm8623_vm15, %v4718_v12, %v4784_v57  ;;  %v2034_v37 = vpack.c.bf16 %v1993_v0, %v1968_v2  ;;  %v4779_v12 = vunpack.i.h.bf16 %v6728_v54  ;;  %vm8760_vm15 = vcmp.lt.s32.totalorder %v5647_v38, 107 }
 0x213   : > { %v4787_v63 = vpop.permute.xlu0 %4786  ;;  %2087 = vmatpush1.bf16.msra.mxu0 %v2019_v5  ;;  %v2039_v42 = vpack.c.bf16 %v2013_v40, %v2013_v40  ;;  %v2067_v59 = vsel %vm526_vm4, %v2041_v8, 0  ;;  %v1986_v50 = vsel %vm1985_vm5, %v4793_v6, %v4754_v33  ;;  %v1987_v58 = vsel %vm1985_vm5, %v4794_v52, %v4793_v6 }
 0x214   : > { %v4802_v19 = vpop.permute.xlu1 %4801  ;;  %v4789_v14 = vunpack.i.h.bf16 %v4787_v63  ;;  %v4788_v43 = vunpack.i.l.bf16 %v4787_v63  ;;  %4179 = vmatmul.mubr.msk.bf16.vlgmr.msra.gmra.mxu1 %vm811_vm10, %v4175_v44  ;;  %4180 = vmatprep.subr.msk.bf16.mxu0 %vm526_vm4, %v2040_v17  ;;  %v1988_v41 = vsel %vm1985_vm5, %v4734_v47, %v4794_v52  ;;  %v1918_v39 = vsel %vm8601_vm6, %v4779_v12, %v4778_v26 }
 0x215   : > { %v4803_v27 = vunpack.i.l.bf16 %v4802_v19  ;;  %2206 = vmatpush1.bf16.msra.mxu1 %v2067_v59  ;;  %2227 = vmatprep.mubr.bf16.mxu1 %v8649_v18  ;;  %v2061_v33 = vsel %vm526_vm4, %v2039_v42, 0 }
 0x216   : > { %v1963_v55 = vsel %vm1960_vm7, %v4729_v31, %v4789_v14  ;;  %v1961_v48 = vsel %vm1960_vm7, %v4788_v43, %v4749_v24  ;;  %4177 = vmatmul.mubr.msk.bf16.vlgmr.msra.gmra.mxu0 %vm811_vm10, %v4175_v44  ;;  %2207 = vmatprep.subr.bf16.mxu1 %v2034_v37  ;;  %v1962_v57 = vsel %vm1960_vm7, %v4789_v14, %v4788_v43  ;;  %v4804_v24 = vunpack.i.h.bf16 %v4802_v19 }
 0x217   : > { %v4797_v28 = vpop.permute.xlu0 %4796  ;;  %2165 = vmatpush1.bf16.msra.mxu0 %v2061_v33  ;;  %v2032_v0 = vpack.c.bf16 %v1987_v58, %v1962_v57  ;;  %v2033_v45 = vpack.c.bf16 %v1986_v50, %v1961_v48  ;;  %2186 = vmatprep.mubr.bf16.mxu0 %v8649_v18  ;;  %v2031_v25 = vpack.c.bf16 %v1988_v41, %v1963_v55 }
 0x218   : > { %v4799_v31 = vunpack.i.h.bf16 %v4797_v28  ;;  %v4798_v4 = vunpack.i.l.bf16 %v4797_v28  ;;  %v1911_v62 = vsel %vm8601_vm6, %v4803_v27, %v4779_v12  ;;  %v1913_v1 = vsel %vm8601_vm6, %v4759_v46, %v4804_v24 }
 0x219   : > { %2166 = vmatprep.subr.bf16.mxu0 %v2032_v0  ;;  %2208 = vmatpush1.bf16.msra.mxu1 %v2033_v45  ;;  %v1912_v26 = vsel %vm8601_vm6, %v4804_v24, %v4803_v27 }
 0x21a   : > { %v1936_v56 = vsel %vm8564_vm9, %v4799_v31, %v4798_v4  ;;  %v1943_v47 = vsel %vm8564_vm9, %v4798_v4, %v1920_v60 }
 0x21b   : > { %2167 = vmatpush1.bf16.msra.mxu0 %v2031_v25  ;;  %v2026_v53 = vpack.c.bf16 %v1943_v47, %v1918_v39  ;;  %v2025_v36 = vpack.c.bf16 %v1936_v56, %v1911_v62 }
 0x21c   : > { %v1930_v13 = vpop.permute.xlu0 %1929 }
 0x21d   : > { %v1937_v3 = vsel %vm8564_vm9, %v1930_v13, %v4799_v31  ;;  %v1938_v54 = vsel %vm8564_vm9, %v4764_v49, %v1930_v13  ;;  %2209 = vmatprep.subr.bf16.mxu1 %v2026_v53  ;;  %vm8690_vm9 = vcmp.lt.s32.totalorder %v5647_v38, 67 }
 0x21e   : > { %v2023_v60 = vpack.c.bf16 %v1938_v54, %v1913_v1  ;;  %2210 = vmatpush1.bf16.msra.mxu1 %v2025_v36  ;;  %v2024_v9 = vpack.c.bf16 %v1937_v3, %v1912_v26 }
 0x220   : > { %2168 = vmatprep.subr.bf16.mxu0 %v2024_v9 }
 0x221   : > { %2169 = vmatpush1.bf16.msra.mxu0 %v2023_v60  ;;  %4183 = vmatmul.mubr.msk.bf16.vlgmr.msra.gmra.mxu1 %vm811_vm10, %v4175_v44 }
 0x222   : > { %2665 = vmatprep.mubr.bf16.mxu1 %v8649_v18 }
 0x224   : > { %4181 = vmatmul.mubr.msk.bf16.vlgmr.msra.gmra.mxu0 %vm811_vm10, %v4175_v44 }
 0x225   : > { %2624 = vmatprep.mubr.bf16.mxu0 %v8649_v18 }
 0x23e   : > { %v914_v61 = vpop.f32.mrf.mxu1 }
 0x240   : > { %v873_v46 = vpop.f32.mrf.mxu0  ;;  %v916_v51 = vpop.f32.mrf.mxu1 }
 0x242   : > { %v875_v49 = vpop.f32.mrf.mxu0  ;;  %v918_v7 = vpop.f32.mrf.mxu1 }
 0x244   : > { %v877_v34 = vpop.f32.mrf.mxu0  ;;  %v919_v52 = vpop.f32.mrf.mxu1 }
 0x246   : > { %v878_v6 = vpop.f32.mrf.mxu0 }
 0x24b   : > { %v996_v5 = vpop.f32.mrf.mxu1 }
 0x24c   : > { %v955_v8 = vpop.f32.mrf.mxu0 }
 0x24d   : > { %v998_v17 = vpop.f32.mrf.mxu1 }
 0x24e   : > { %v957_v40 = vpop.f32.mrf.mxu0 }
 0x24f   : > { %v1000_v63 = vpop.f32.mrf.mxu1 }
 0x250   : > { %v959_v2 = vpop.f32.mrf.mxu0 }
 0x251   : > { %v1001_v42 = vpop.f32.mrf.mxu1 }
 0x252   : > { %v960_v19 = vpop.f32.mrf.mxu0 }
 0x263   : > { %v1105_v14 = vpop.f32.mrf.mxu1  ;;  %v1064_v44 = vpop.f32.mrf.mxu0 }
 0x264   : > { %v1106_v43 = vadd.f32 %v1105_v14, %v914_v61  ;;  %v1065_v59 = vadd.f32 %v1064_v44, %v873_v46 }
 0x265   : > { %v1107_v37 = vpop.f32.mrf.mxu1  ;;  %v1066_v12 = vpop.f32.mrf.mxu0 }
 0x266   : > { %v1108_v50 = vadd.f32 %v1107_v37, %v916_v51  ;;  %v1067_v27 = vadd.f32 %v1066_v12, %v875_v49 }
 0x267   : > { %v1109_v58 = vpop.f32.mrf.mxu1  ;;  %v1068_v55 = vpop.f32.mrf.mxu0 }
 0x269   : > { %v1110_v48 = vpop.f32.mrf.mxu1  ;;  %v1069_v33 = vpop.f32.mrf.mxu0 }
 0x26f   : > { %v1187_v57 = vpop.f32.mrf.mxu1  ;;  %v1146_v28 = vpop.f32.mrf.mxu0 }
 0x270   : > { %v1188_v0 = vadd.f32 %v1187_v57, %v996_v5  ;;  %v1147_v45 = vadd.f32 %v1146_v28, %v955_v8 }
 0x271   : > { %v1189_v41 = vpop.f32.mrf.mxu1  ;;  %v1148_v31 = vpop.f32.mrf.mxu0 }
 0x272   : > { %v1190_v4 = vadd.f32 %v1189_v41, %v998_v17  ;;  %v1149_v24 = vadd.f32 %v1148_v31, %v957_v40  ;;  %v2248_v41 = vpop.permute.xlu1 %2247 }
 0x273   : > { %v1191_v25 = vpop.f32.mrf.mxu1  ;;  %v1150_v62 = vpop.f32.mrf.mxu0 }
 0x275   : > { %v1192_v56 = vpop.f32.mrf.mxu1  ;;  %v1151_v39 = vpop.f32.mrf.mxu0 }
 0x284   : > { %v1447_v47 = vpop.f32.mrf.mxu1 }
 0x285   : > { %v1538_v53 = vadd.f32 %v1447_v47, %v1106_v43 }
 0x286   : > { %v1449_v36 = vpop.f32.mrf.mxu1 }
 0x287   : > { %v1539_v13 = vadd.f32 %v1449_v36, %v1108_v50 }
 0x288   : > { %v1406_v1 = vpop.f32.mrf.mxu0  ;;  %v1451_v3 = vpop.f32.mrf.mxu1 }
 0x289   : > { %v1536_v54 = vadd.f32 %v1406_v1, %v1065_v59 }
 0x28a   : > { %v1408_v26 = vpop.f32.mrf.mxu0  ;;  %v1452_v60 = vpop.f32.mrf.mxu1 }
 0x28b   : > { %v1537_v9 = vadd.f32 %v1408_v26, %v1067_v27 }
 0x28c   : > { %v1410_v61 = vpop.f32.mrf.mxu0 }
 0x28e   : > { %v1411_v46 = vpop.f32.mrf.mxu0 }
 0x290   : > { %v1529_v51 = vpop.f32.mrf.mxu1 }
 0x291   : > { %v1542_v49 = vadd.f32 %v1529_v51, %v1188_v0 }
 0x292   : > { %v1531_v7 = vpop.f32.mrf.mxu1 }
 0x293   : > { %v1543_v34 = vadd.f32 %v1531_v7, %v1190_v4 }
 0x294   : > { %v1488_v52 = vpop.f32.mrf.mxu0  ;;  %v1533_v6 = vpop.f32.mrf.mxu1 }
 0x295   : > { %v1540_v5 = vadd.f32 %v1488_v52, %v1147_v45 }
 0x296   : > { %v1490_v8 = vpop.f32.mrf.mxu0  ;;  %v1534_v17 = vpop.f32.mrf.mxu1 }
 0x297   : > { %v1541_v40 = vadd.f32 %v1490_v8, %v1149_v24 }
 0x298   : > { %v1492_v63 = vpop.f32.mrf.mxu0 }
 0x29a   : > { %v1493_v2 = vpop.f32.mrf.mxu0 }
 0x2ac   : > { %v1797_v42 = vpop.f32.mrf.mxu1 }
 0x2ad   : > { %v1888_v0 = vadd.f32 %v1797_v42, %v1538_v53 }
 0x2ae   : > { %v1799_v19 = vpop.f32.mrf.mxu1 }
 0x2af   : > { %v1889_v31 = vadd.f32 %v1799_v19, %v1539_v13 }
 0x2b0   : > { %v1756_v14 = vpop.f32.mrf.mxu0  ;;  %v1801_v44 = vpop.f32.mrf.mxu1 }
 0x2b1   : > { %v1886_v4 = vadd.f32 %v1756_v14, %v1536_v54 }
 0x2b2   : > { %v1758_v43 = vpop.f32.mrf.mxu0  ;;  %v1802_v59 = vpop.f32.mrf.mxu1 }
 0x2b3   : > { %v1887_v56 = vadd.f32 %v1758_v43, %v1537_v9 }
 0x2b4   : > { %v1760_v37 = vpop.f32.mrf.mxu0 }
 0x2b6   : > { %v1761_v12 = vpop.f32.mrf.mxu0 }
 0x2b8   : > { %v1879_v50 = vpop.f32.mrf.mxu1 }
 0x2b9   : > { %v1892_v42 = vadd.f32 %v1879_v50, %v1542_v49 }
 0x2ba   : > { %v1881_v27 = vpop.f32.mrf.mxu1 }
 0x2bb   : > { %v1893_v44 = vadd.f32 %v1881_v27, %v1543_v34 }
 0x2bc   : > { %v1838_v58 = vpop.f32.mrf.mxu0  ;;  %v1883_v55 = vpop.f32.mrf.mxu1 }
 0x2bd   : > { %v1890_v59 = vadd.f32 %v1838_v58, %v1540_v5 }
 0x2be   : > { %v1840_v48 = vpop.f32.mrf.mxu0  ;;  %v1884_v33 = vpop.f32.mrf.mxu1 }
 0x2c0   : > { %v1842_v57 = vpop.f32.mrf.mxu0 }
 0x2c2   : > { %v1843_v28 = vpop.f32.mrf.mxu0 }
 0x2d4   : > { %v2147_v45 = vpop.f32.mrf.mxu1 }
 0x2d5   : > { %v2238_v24 = vadd.f32 %v2147_v45, %v1888_v0 }
 0x2d6   : > { %v2106_v25 = vpop.f32.mrf.mxu0  ;;  %v2149_v62 = vpop.f32.mrf.mxu1 }
 0x2d7   : > { %v2252_v39 = vadd.f32 %v2248_v41, %v2238_v24  ;;  %v2236_v47 = vadd.f32 %v2106_v25, %v1886_v4  ;;  %v2239_v36 = vadd.f32 %v2149_v62, %v1889_v31 }
 0x2d8   : > { %v2108_v1 = vpop.f32.mrf.mxu0  ;;  %v2151_v3 = vpop.f32.mrf.mxu1 }
 0x2d9   : > { %v2260_v26 = vmax.f32 %v2252_v39, 0.0  ;;  %v2250_v60 = vadd.f32 %v2248_v41, %v2236_v47  ;;  %v2253_v61 = vadd.f32 %v2248_v41, %v2239_v36  ;;  %v2237_v46 = vadd.f32 %v2108_v1, %v1887_v56 }
 0x2da   : > { %v2110_v51 = vpop.f32.mrf.mxu0  ;;  %v2152_v7 = vpop.f32.mrf.mxu1 }
 0x2db   : > { %v2258_v53 = vmax.f32 %v2250_v60, 0.0  ;;  %v2261_v52 = vmax.f32 %v2253_v61, 0.0  ;;  %v2251_v6 = vadd.f32 %v2248_v41, %v2237_v46  ;;  %v2268_v54 = vmul.f32 %v2260_v26, %v5592_v10 }
 0x2dc   : > { %v2111_v13 = vpop.f32.mrf.mxu0 }
 0x2dd   : > { %v2269_v8 = vmul.f32 %v2261_v52, %v5602_v16  ;;  %v2259_v9 = vmax.f32 %v2251_v6, 0.0  ;;  %v2266_v17 = vmul.f32 %v2258_v53, %v5615_v21  ;;  %v1891_v16 = vadd.f32 %v1840_v48, %v1541_v40 }
 0x2df   : > { %v4810_v63 = vpack.i.bf16 %v2269_v8, %v2268_v54  ;;  %v2267_v2 = vmul.f32 %v2259_v9, %v5594_v11 }
 0x2e1   : > { %v4805_v19 = vpack.i.bf16 %v2267_v2, %v2266_v17  ;;  %v2229_v14 = vpop.f32.mrf.mxu1  ;;  %4811 = vrot.lane.b32.xlu1 %v4810_v63, %s5404_s19 }
 0x2e2   : > { %v2242_v43 = vadd.f32 %v2229_v14, %v1892_v42 }
 0x2e3   : > { %4806 = vrot.lane.b32.xlu0 %v4805_v19, %s5404_s19  ;;  %v2231_v37 = vpop.f32.mrf.mxu1 }
 0x2e4   : > { %v2188_v10 = vpop.f32.mrf.mxu0  ;;  %v2243_v12 = vadd.f32 %v2231_v37, %v1893_v44  ;;  %v2256_v55 = vadd.f32 %v2248_v41, %v2242_v43 }
 0x2e5   : > { %v2240_v33 = vadd.f32 %v2188_v10, %v1890_v59  ;;  %v2233_v21 = vpop.f32.mrf.mxu1 }
 0x2e6   : > { %v2257_v57 = vadd.f32 %v2248_v41, %v2243_v12  ;;  %v2190_v28 = vpop.f32.mrf.mxu0  ;;  %v2264_v31 = vmax.f32 %v2256_v55, 0.0 }
 0x2e7   : > { %v2254_v11 = vadd.f32 %v2248_v41, %v2240_v33  ;;  %v2241_v49 = vadd.f32 %v2190_v28, %v1891_v16  ;;  %v2234_v50 = vpop.f32.mrf.mxu1 }
 0x2e8   : > { %v2265_v0 = vmax.f32 %v2257_v57, 0.0  ;;  %v2192_v45 = vpop.f32.mrf.mxu0  ;;  %v2272_v40 = vmul.f32 %v2264_v31, %v5642_v35 }
 0x2e9   : > { %v2262_v34 = vmax.f32 %v2254_v11, 0.0  ;;  %v2255_v27 = vadd.f32 %v2248_v41, %v2241_v49 }
 0x2ea   : > { %v2273_v5 = vmul.f32 %v2265_v0, %v5608_v20  ;;  %v2193_v58 = vpop.f32.mrf.mxu0 }
 0x2eb   : > { %v2270_v4 = vmul.f32 %v2262_v34, %v5600_v15  ;;  %v2263_v24 = vmax.f32 %v2255_v27, 0.0 }
 0x2ed   : > { %v4815_v48 = vpack.i.bf16 %v2273_v5, %v2270_v4  ;;  %v2271_v25 = vmul.f32 %v2263_v24, %v5633_v30 }
 0x2ef   : > { %v4820_v62 = vpack.i.bf16 %v2272_v40, %v2271_v25  ;;  %4816 = vrot.lane.b32.xlu0 %v4815_v48, %s5404_s19 }
 0x2f1   : > { %4821 = vrot.lane.b32.xlu1 %v4820_v62, %s5404_s19  ;;  %s8653_s19 = smov 88  }
 0x353   : > { %v4812_v56 = vpop.permute.xlu1 %4811 }
 0x354   : > { %v4814_v39 = vunpack.i.h.bf16 %v4812_v56  ;;  %v4813_v47 = vunpack.i.l.bf16 %v4812_v56 }
 0x355   : > { %v4807_v41 = vpop.permute.xlu0 %4806 }
 0x356   : > { %v4809_v36 = vunpack.i.h.bf16 %v4807_v41  ;;  %v4808_v20 = vunpack.i.l.bf16 %v4807_v41  ;;  %v6844_v15 = vsel %vm380_vm0, %v4813_v47, %v4814_v39 }
 0x358   : > { %v6848_v35 = vsel %vm380_vm0, %v4809_v36, %v4813_v47  ;;  %v6854_v1 = vsel %vm380_vm0, %v4808_v20, %v4809_v36 }
 0x359   : > { %v4870_v30 = vpack.i.bf16 %v6844_v15, %v6848_v35  ;;  %v6860_v3 = vpack.i.bf16 %v6848_v35, %v6854_v1 }
 0x35b   : > { %4871 = vrot.lane.b32.xlu1 %v4870_v30, %s8541_s15  ;;  %4826 = vrot.lane.b32.xlu0 %v4870_v30, %s8545_s21  ;;  %s8658_s15 = smov 124   ;;  %s8660_s21 = smov 126  }
 0x35f   : > { %4876 = vrot.lane.b32.xlu1 %v6860_v3, %s8553_s16  ;;  %4831 = vrot.lane.b32.xlu0 %v6860_v3, %s8549_s9  ;;  %s8662_s9 = smov 125   ;;  %s8664_s16 = smov 127  }
 0x361   : > { %v4817_v26 = vpop.permute.xlu0 %4816 }
 0x362   : > { %v4818_v60 = vunpack.i.l.bf16 %v4817_v26  ;;  %v4819_v51 = vunpack.i.h.bf16 %v4817_v26 }
 0x363   : > { %4881 = vrot.lane.b32.xlu1 %v6860_v3, %s8551_s18  ;;  %4836 = vrot.lane.b32.xlu0 %v6860_v3, %s8547_s11  ;;  %s8661_s11 = smov 65   ;;  %s8663_s18 = smov 68   ;;  %v4822_v7 = vpop.permute.xlu1 %4821 }
 0x364   : > { %v6890_v61 = vsel %vm380_vm0, %v4814_v39, %v4818_v60  ;;  %v6928_v53 = vsel %vm380_vm0, %v4819_v51, %v4808_v20  ;;  %v4823_v52 = vunpack.i.l.bf16 %v4822_v7  ;;  %v4824_v9 = vunpack.i.h.bf16 %v4822_v7 }
 0x365   : > { %v6897_v46 = vpack.i.bf16 %v6890_v61, %v6844_v15  ;;  %v6936_v6 = vpack.i.bf16 %v6854_v1, %v6928_v53 }
 0x366   : > { %v6940_v13 = vsel %vm380_vm0, %v4818_v60, %v4823_v52  ;;  %v6960_v17 = vsel %vm380_vm0, %v4824_v9, %v4819_v51  ;;  %v6964_v63 = vsel %vm380_vm0, %v4823_v52, %v4824_v9  ;;  %vm8688_vm0 = vcmp.lt.s32.totalorder %v5647_v38, 68 }
 0x367   : > { %4886 = vrot.lane.b32.xlu1 %v6860_v3, %s8653_s19  ;;  %4841 = vrot.lane.b32.xlu0 %v6860_v3, %s8654_s12  ;;  %v6948_v54 = vpack.i.bf16 %v6940_v13, %v6890_v61  ;;  %v6952_v8 = vpack.i.bf16 %v6940_v13, %v6928_v53  ;;  %v6972_v2 = vpack.i.bf16 %v6960_v17, %v6964_v63 }
 0x36b   : > { %4891 = vrot.lane.b32.xlu1 %v6860_v3, %s8655_s22  ;;  %4846 = vrot.lane.b32.xlu0 %v6860_v3, %s8656_s29 }
 0x36f   : > { %4896 = vrot.lane.b32.xlu1 %v4870_v30, %s8657_s20  ;;  %4851 = vrot.lane.b32.xlu0 %v4870_v30, %s8658_s15 }
 0x373   : > { %4901 = vrot.lane.b32.xlu1 %v6860_v3, %s8659_s17  ;;  %4856 = vrot.lane.b32.xlu0 %v6860_v3, %s8660_s21 }
 0x377   : > { %4906 = vrot.lane.b32.xlu1 %v6860_v3, %s8661_s11  ;;  %4861 = vrot.lane.b32.xlu0 %v6860_v3, %s8662_s9 }
 0x37b   : > { %4911 = vrot.lane.b32.xlu1 %v6860_v3, %s8663_s18  ;;  %4866 = vrot.lane.b32.xlu0 %v4870_v30, %s8664_s16 }
 0x37f   : > { %4916 = vrot.lane.b32.xlu1 %v6860_v3, %s8665_s0  ;;  %4956 = vrot.lane.b32.xlu0 %v6897_v46, %s8666_s1 }
 0x383   : > { %4921 = vrot.lane.b32.xlu1 %v4870_v30, %s8667_s2  ;;  %4961 = vrot.lane.b32.xlu0 %v6897_v46, %s8668_s3 }
 0x387   : > { %4926 = vrot.lane.b32.xlu1 %v6897_v46, %s8669_s4  ;;  %4966 = vrot.lane.b32.xlu0 %v6897_v46, %s8653_s19 }
 0x38b   : > { %4931 = vrot.lane.b32.xlu1 %v6897_v46, %s8670_s10  ;;  %4971 = vrot.lane.b32.xlu0 %v6897_v46, %s8655_s22 }
 0x38f   : > { %4936 = vrot.lane.b32.xlu1 %v6897_v46, %s8654_s12  ;;  %4976 = vrot.lane.b32.xlu0 %v6897_v46, %s8659_s17 }
 0x393   : > { %4941 = vrot.lane.b32.xlu1 %v6897_v46, %s8656_s29  ;;  %4981 = vrot.lane.b32.xlu0 %v6897_v46, %s8661_s11 }
 0x397   : > { %4946 = vrot.lane.b32.xlu1 %v6897_v46, %s8660_s21  ;;  %4986 = vrot.lane.b32.xlu0 %v6897_v46, %s8663_s18 }
 0x39b   : > { %4951 = vrot.lane.b32.xlu1 %v6897_v46, %s8662_s9  ;;  %4991 = vrot.lane.b32.xlu0 %v6897_v46, %s8665_s0 }
 0x39f   : > { %5001 = vrot.lane.b32.xlu1 %v6936_v6, %s8671_s26  ;;  %4996 = vrot.lane.b32.xlu0 %v6936_v6, %s8664_s16 }
 0x3a3   : > { %5006 = vrot.lane.b32.xlu1 %v6948_v54, %s8671_s26  ;;  %5011 = vrot.lane.b32.xlu0 %v6952_v8, %s8669_s4 }
 0x3a7   : > { %5016 = vrot.lane.b32.xlu1 %v6952_v8, %s8670_s10  ;;  %5021 = vrot.lane.b32.xlu0 %v6952_v8, %s8654_s12 }
 0x3ab   : > { %5026 = vrot.lane.b32.xlu1 %v6952_v8, %s8656_s29  ;;  %5031 = vrot.lane.b32.xlu0 %v6972_v2, %s8671_s26  ;;  %s8672_s26 = smov 46  }
 0x3af   : > { %5036 = vrot.lane.b32.xlu1 %v6972_v2, %s8669_s4  ;;  %5041 = vrot.lane.b32.xlu0 %v6972_v2, %s8670_s10  ;;  %s8673_s4 = smov 45   ;;  %s8674_s10 = smov 84  }
 0x3b3   : > { %5046 = vrot.lane.b32.xlu1 %v6972_v2, %s8654_s12  ;;  %5051 = vrot.lane.b32.xlu0 %v6972_v2, %s8656_s29  ;;  %s8925_s12 = sshll.u32 %s5568_s8, 5 }
 0x3b7   : > { %5056 = vrot.lane.b32.xlu1 %v6936_v6, %s8658_s15  ;;  %5066 = vrot.lane.b32.xlu0 %v6952_v8, %s8660_s21 }
 0x3bb   : > { %5061 = vrot.lane.b32.xlu1 %v6948_v54, %s8658_s15  ;;  %5086 = vrot.lane.b32.xlu0 %v6897_v46, %s8672_s26 }
 0x3bf   : > { %5071 = vrot.lane.b32.xlu1 %v6952_v8, %s8662_s9  ;;  %5091 = vrot.lane.b32.xlu0 %v6972_v2, %s8658_s15 }
 0x3c3   : > { %5076 = vrot.lane.b32.xlu1 %v6948_v54, %s8664_s16  ;;  %5101 = vrot.lane.b32.xlu0 %v6972_v2, %s8662_s9 }
 0x3c7   : > { %5081 = vrot.lane.b32.xlu1 %v6860_v3, %s8672_s26  ;;  %5116 = vrot.lane.b32.xlu0 %v6897_v46, %s8673_s4 }
 0x3cb   : > { %5096 = vrot.lane.b32.xlu1 %v6972_v2, %s8660_s21  ;;  %5121 = vrot.lane.b32.xlu0 %v6936_v6, %s8674_s10 }
 0x3cd   : > { %v7010_v42 = vpop.permute.xlu1 %4871  ;;  %v7012_v19 = vpop.permute.xlu0 %4826 }
 0x3cf   : > { %5106 = vrot.lane.b32.xlu1 %v6972_v2, %s8664_s16  ;;  %5126 = vrot.lane.b32.xlu0 %v6948_v54, %s8674_s10 }
 0x3d1   : > { %v7018_v14 = vpop.permute.xlu1 %4876  ;;  %v7020_v44 = vpop.permute.xlu0 %4831 }
 0x3d2   : > { %v4879_v43 = vunpack.i.h.bf16 %v7018_v14  ;;  %v8560_v59 = vunpack.i.l.bf16 %v7018_v14 }
 0x3d3   : > { %5111 = vrot.lane.b32.xlu1 %v6860_v3, %s8673_s4  ;;  %5136 = vrot.lane.b32.xlu0 %v6952_v8, %s8668_s3 }
 0x3d4   : > { %v7044_v55 = vsel %vm1260_vm1, %v8560_v59, %v4879_v43 }
 0x3d5   : > { %v7028_v37 = vpop.permute.xlu1 %4881  ;;  %v7030_v10 = vpop.permute.xlu0 %4836 }
 0x3d6   : > { %v4884_v12 = vunpack.i.h.bf16 %v7028_v37  ;;  %v8561_v16 = vunpack.i.l.bf16 %v7028_v37 }
 0x3d7   : > { %5131 = vrot.lane.b32.xlu1 %v6952_v8, %s8666_s1  ;;  %5146 = vrot.lane.b32.xlu0 %v6952_v8, %s8655_s22 }
 0x3d8   : > { %v7052_v33 = vsel %vm1285_vm2, %v8561_v16, %v4884_v12 }
 0x3d9   : > { %v7054_v21 = vpop.permute.xlu1 %4886  ;;  %v7056_v57 = vpop.permute.xlu0 %4841 }
 0x3da   : > { %8675 = vst [vmem:[#allocation14_spill] sm:$0xff] %v7054_v21  ;;  %v8574_v11 = vunpack.i.h.bf16 %v7054_v21  ;;  %v8556_v49 = vunpack.i.l.bf16 %v7054_v21 }
 0x3db   : > { %5141 = vrot.lane.b32.xlu1 %v6952_v8, %s8653_s19  ;;  %5156 = vrot.lane.b32.xlu0 %v6972_v2, %s8666_s1  ;;  %s8680_s1 = smov 48  }
 0x3dc   : > { %v7082_v34 = vsel %vm1210_vm3, %v8556_v49, %v8574_v11 }
 0x3dd   : > { %v7066_v50 = vpop.permute.xlu1 %4891  ;;  %v7068_v0 = vpop.permute.xlu0 %4846  ;;  %8677 = vst [vmem:[#allocation16_spill] sm:$0xff] %v7082_v34 }
 0x3de   : > { %8676 = vst [vmem:[#allocation15_spill] sm:$0xff] %v7066_v50  ;;  %v8573_v45 = vunpack.i.h.bf16 %v7066_v50  ;;  %v8559_v31 = vunpack.i.l.bf16 %v7066_v50 }
 0x3df   : > { %5151 = vrot.lane.b32.xlu1 %v6972_v2, %s8674_s10  ;;  %5166 = vrot.lane.b32.xlu0 %v6972_v2, %s8653_s19 }
 0x3e0   : > { %v7090_v27 = vsel %vm1235_vm14, %v8559_v31, %v8573_v45 }
 0x3e1   : > { %8678 = vst [vmem:[#allocation17_spill] sm:$0xff] %v7090_v27  ;;  %v7092_v5 = vpop.permute.xlu1 %4896  ;;  %v7094_v58 = vpop.permute.xlu0 %4851 }
 0x3e2   : > { %8679 = vst [vmem:[#allocation18_spill] sm:$0xff] %v7092_v5 }
 0x3e3   : > { %5161 = vrot.lane.b32.xlu1 %v6972_v2, %s8668_s3  ;;  %5181 = vrot.lane.b32.xlu0 %v6897_v46, %s8680_s1  ;;  %s8700_s3 = smov 47  }
 0x3e5   : > { %v7102_v24 = vpop.permute.xlu1 %4901  ;;  %v7104_v40 = vpop.permute.xlu0 %4856 }
 0x3e6   : > { %8681 = vst [vmem:[#allocation19_spill] sm:$0xff] %v7102_v24  ;;  %v8568_v48 = vunpack.i.h.bf16 %v7102_v24  ;;  %v8557_v25 = vunpack.i.l.bf16 %v7102_v24  ;;  %v8566_v62 = vunpack.i.h.bf16 %v7104_v40  ;;  %v8563_v56 = vunpack.i.l.bf16 %v7104_v40 }
 0x3e7   : > { %5171 = vrot.lane.b32.xlu1 %v6972_v2, %s8655_s22  ;;  %5186 = vrot.lane.b32.xlu0 %v6936_v6, %s8657_s20  ;;  %s8428_s22 = scalar_lea.vmem [#allocation5], %s8925_s12 }
 0x3e8   : > { %v7132_v26 = vsel %vm576_vm12, %v8563_v56, %v8566_v62  ;;  %v7148_v51 = vsel %vm1610_vm11, %v8557_v25, %v8568_v48 }
 0x3e9   : > { %v7114_v39 = vpop.permute.xlu1 %4906  ;;  %v7116_v47 = vpop.permute.xlu0 %4861  ;;  %8683 = vst [vmem:[#allocation21_spill] sm:$0xff] %v7148_v51 }
 0x3ea   : > { %8682 = vst [vmem:[#allocation20_spill] sm:$0xff] %v7114_v39  ;;  %v8567_v41 = vunpack.i.h.bf16 %v7114_v39  ;;  %v8558_v36 = vunpack.i.l.bf16 %v7114_v39  ;;  %v8565_v20 = vunpack.i.h.bf16 %v7116_v47  ;;  %v8562_v30 = vunpack.i.l.bf16 %v7116_v47 }
 0x3eb   : > { %5176 = vrot.lane.b32.xlu1 %v6860_v3, %s8680_s1  ;;  %5191 = vrot.lane.b32.xlu0 %v6948_v54, %s8657_s20 }
 0x3ec   : > { %v7140_v60 = vsel %vm601_vm13, %v8562_v30, %v8565_v20  ;;  %v7156_v7 = vsel %vm8624_vm8, %v8558_v36, %v8567_v41 }
 0x3ed   : > { %8684 = vst [vmem:[#allocation22_spill] sm:$0xff] %v7156_v7  ;;  %v7158_v52 = vpop.permute.xlu1 %4911  ;;  %v7160_v9 = vpop.permute.xlu0 %4866 }
 0x3ee   : > { %8685 = vst [vmem:[#allocation23_spill] sm:$0xff] %v7158_v52  ;;  %v8572_v25 = vunpack.i.h.bf16 %v7158_v52  ;;  %v8569_v36 = vunpack.i.l.bf16 %v7158_v52 }
 0x3ef   : > { %5196 = vrot.lane.b32.xlu1 %v6952_v8, %s8659_s17  ;;  %5201 = vrot.lane.b32.xlu0 %v6952_v8, %s8661_s11 }
 0x3f0   : > { %v7196_v56 = vsel %vm8688_vm0, %v8569_v36, %v8572_v25 }
 0x3f1   : > { %v7172_v31 = vpop.permute.xlu1 %4916  ;;  %v7174_v28 = vpop.permute.xlu0 %4956  ;;  %8689 = vst [vmem:[#allocation26_spill] sm:$0xff] %v7196_v56 }
 0x3f2   : > { %8686 = vst [vmem:[#allocation24_spill] sm:$0xff] %v7172_v31  ;;  %v8571_v59 = vunpack.i.h.bf16 %v7172_v31  ;;  %v8570_v16 = vunpack.i.l.bf16 %v7172_v31  ;;  %v4958_v49 = vunpack.i.l.bf16 %v7174_v28  ;;  %v8576_v4 = vunpack.i.h.bf16 %v7174_v28 }
 0x3f3   : > { %5206 = vrot.lane.b32.xlu1 %v6952_v8, %s8663_s18  ;;  %5211 = vrot.lane.b32.xlu0 %v6952_v8, %s8665_s0 }
 0x3f4   : > { %v7188_v30 = vsel %vm1260_vm1, %v4879_v43, %v4958_v49  ;;  %v7204_v20 = vsel %vm8690_vm9, %v8570_v16, %v8571_v59  ;;  %v7228_v41 = vsel %vm1260_vm1, %v4958_v49, %v8576_v4  ;;  %v8701_v49 = vunpack.i.h.bf16 %v7066_v50  ;;  %vm8716_vm9 = vmmov %vm8688_vm0 }
 0x3f5   : > { %8687 = vst [vmem:[#allocation25_spill] sm:$0xff] %v7188_v30  ;;  %8691 = vst [vmem:[#allocation27_spill] sm:$0xff] %v7204_v20  ;;  %v7206_v62 = vpop.permute.xlu1 %4921  ;;  %v7208_v43 = vpop.permute.xlu0 %4961  ;;  %vm8723_vm0 = vcmp.lt.s32.totalorder %v5647_v38, 67 }
 0x3f6   : > { %8692 = vst [vmem:[#allocation28_spill] sm:$0xff] %v7206_v62  ;;  %v8577_v48 = vunpack.i.h.bf16 %v7208_v43  ;;  %v4963_v36 = vunpack.i.l.bf16 %v7208_v43  ;;  %8694 = vst [vmem:[#allocation30_spill] sm:$0xff] %v7228_v41 }
 0x3f7   : > { %5216 = vrot.lane.b32.xlu1 %v6972_v2, %s8657_s20  ;;  %5221 = vrot.lane.b32.xlu0 %v6972_v2, %s8659_s17  ;;  %vm8728_vm6 = vmmov %vm8723_vm0 }
 0x3f8   : > { %v7222_v16 = vsel %vm1285_vm2, %v4884_v12, %v4963_v36  ;;  %v7234_v59 = vsel %vm1285_vm2, %v4963_v36, %v8577_v48  ;;  %v8697_v36 = vunpack.i.h.bf16 %v7054_v21 }
 0x3f9   : > { %8693 = vst [vmem:[#allocation29_spill] sm:$0xff] %v7222_v16  ;;  %8695 = vst [vmem:[#allocation31_spill] sm:$0xff] %v7234_v59  ;;  %v7238_v45 = vpop.permute.xlu1 %4926  ;;  %v7240_v11 = vpop.permute.xlu0 %4966 }
 0x3fa   : > { %8696 = vst [vmem:[#allocation32_spill] sm:$0xff] %v7240_v11  ;;  %v4968_v29 = vunpack.i.l.bf16 %v7240_v11  ;;  %v8703_v22 = vunpack.i.h.bf16 %v7240_v11 }
 0x3fb   : > { %5226 = vrot.lane.b32.xlu1 %v6972_v2, %s8661_s11  ;;  %5231 = vrot.lane.b32.xlu0 %v6972_v2, %s8663_s18 }
 0x3fc   : > { %v7254_v25 = vsel %vm1210_vm3, %v8697_v36, %v4968_v29  ;;  %v7276_v23 = vsel %vm1210_vm3, %v4968_v29, %v8703_v22  ;;  %v8707_v29 = vunpack.i.h.bf16 %v7102_v24 }
 0x3fd   : > { %8698 = vst [vmem:[#allocation33_spill] sm:$0xff] %v7254_v25  ;;  %v7256_v4 = vpop.permute.xlu1 %4931  ;;  %v7258_v48 = vpop.permute.xlu0 %4971  ;;  %8704 = vst [vmem:[#allocation36_spill] sm:$0xff] %v7276_v23 }
 0x3fe   : > { %8699 = vst [vmem:[#allocation34_spill] sm:$0xff] %v7258_v48  ;;  %v8585_v12 = vunpack.i.h.bf16 %v7258_v48  ;;  %v4973_v32 = vunpack.i.l.bf16 %v7258_v48 }
 0x3ff   : > { %5236 = vrot.lane.b32.xlu1 %v6972_v2, %s8665_s0  ;;  %5246 = vrot.lane.b32.xlu0 %v6897_v46, %s8700_s3  ;;  %s4033_s0 = scalar_lea.sflag [#allocation4], %s5568_s8 }
 0x400   : > { %v7270_v36 = vsel %vm1235_vm14, %v8701_v49, %v4973_v32  ;;  %v7282_v62 = vsel %vm1235_vm14, %v4973_v32, %v8585_v12 }
 0x401   : > { %8702 = vst [vmem:[#allocation35_spill] sm:$0xff] %v7270_v36  ;;  %8705 = vst [vmem:[#allocation37_spill] sm:$0xff] %v7282_v62  ;;  %v7286_v56 = vpop.permute.xlu1 %4936  ;;  %v7288_v20 = vpop.permute.xlu0 %4976  ;;  %v4843_v62 = vunpack.i.l.bf16 %v7056_v57 }
 0x402   : > { %8706 = vst [vmem:[#allocation38_spill] sm:$0xff] %v7288_v20  ;;  %v4978_v51 = vunpack.i.l.bf16 %v7288_v20  ;;  %v8592_v22 = vunpack.i.h.bf16 %v7288_v20 }
 0x403   : > { %5241 = vrot.lane.b32.xlu1 %v6860_v3, %s8700_s3  ;;  %5251 = vrot.lane.b32.xlu0 %v6936_v6, %s8667_s2  ;;  %v8710_v3 = vunpack.i.h.bf16 %v7114_v39 }
 0x404   : > { %v7302_v32 = vsel %vm1610_vm11, %v8707_v29, %v4978_v51  ;;  %v7324_v29 = vsel %vm1610_vm11, %v4978_v51, %v8592_v22  ;;  %v4828_v22 = vunpack.i.l.bf16 %v7012_v19 }
 0x405   : > { %8708 = vst [vmem:[#allocation39_spill] sm:$0xff] %v7302_v32  ;;  %v7304_v46 = vpop.permute.xlu1 %4941  ;;  %v7306_v12 = vpop.permute.xlu0 %4981  ;;  %8712 = vst [vmem:[#allocation42_spill] sm:$0xff] %v7324_v29 }
 0x406   : > { %8709 = vst [vmem:[#allocation40_spill] sm:$0xff] %v7306_v12  ;;  %v8591_v49 = vunpack.i.h.bf16 %v7306_v12  ;;  %v4983_v7 = vunpack.i.l.bf16 %v7306_v12  ;;  %v4943_v11 = vunpack.i.l.bf16 %v7304_v46 }
 0x407   : > { %5261 = vrot.lane.b32.xlu1 %v6952_v8, %s8672_s26  ;;  %5256 = vrot.lane.b32.xlu0 %v6948_v54, %s8667_s2  ;;  %v8715_v54 = vunpack.i.h.bf16 %v7158_v52  ;;  %v5295_v52 = vpack.i.bf16 %v6964_v63, %v6940_v13 }
 0x408   : > { %v7318_v6 = vsel %vm8624_vm8, %v8710_v3, %v4983_v7  ;;  %v7330_v24 = vsel %vm8624_vm8, %v4983_v7, %v8591_v49  ;;  %v4829_v3 = vunpack.i.h.bf16 %v7012_v19  ;;  %v8720_v19 = vunpack.i.h.bf16 %v7104_v40 }
 0x409   : > { %8711 = vst [vmem:[#allocation41_spill] sm:$0xff] %v7318_v6  ;;  %8713 = vst [vmem:[#allocation43_spill] sm:$0xff] %v7330_v24  ;;  %v7334_v39 = vpop.permute.xlu1 %4946  ;;  %v7336_v5 = vpop.permute.xlu0 %4986 }
 0x40a   : > { %8714 = vst [vmem:[#allocation44_spill] sm:$0xff] %v7336_v5  ;;  %v4988_v20 = vunpack.i.l.bf16 %v7336_v5  ;;  %v8719_v24 = vunpack.i.l.bf16 %v7334_v39 }
 0x40b   : > { %5271 = vrot.lane.b32.xlu1 %v6952_v8, %s8680_s1  ;;  %5266 = vrot.lane.b32.xlu0 %v6952_v8, %s8673_s4  ;;  %v8722_v8 = vunpack.i.h.bf16 %v7172_v31 }
 0x40c   : > { %v7351_v49 = vsel %vm8716_vm9, %v8715_v54, %v4988_v20  ;;  %v7372_v12 = vsel %vm576_vm12, %v8720_v19, %v8719_v24  ;;  %v8721_v54 = vunpack.i.h.bf16 %v7116_v47  ;;  %v8725_v19 = vunpack.i.h.bf16 %v7336_v5 }
 0x40d   : > { %8717 = vst [vmem:[#allocation45_spill] sm:$0xff] %v7351_v49  ;;  %v7355_v32 = vpop.permute.xlu1 %4951  ;;  %v7357_v51 = vpop.permute.xlu0 %4991  ;;  %v4933_v5 = vunpack.i.l.bf16 %v7256_v4  ;;  %v8733_v49 = vunpack.i.h.bf16 %v7030_v10 }
 0x40e   : > { %8718 = vst [vmem:[#allocation46_spill] sm:$0xff] %v7357_v51  ;;  %v8603_v6 = vunpack.i.l.bf16 %v7355_v32  ;;  %v4993_v7 = vunpack.i.l.bf16 %v7357_v51  ;;  %v7396_v25 = vsel %vm8716_vm9, %v4988_v20, %v8725_v19  ;;  %v8727_v36 = vunpack.i.h.bf16 %v7357_v51 }
 0x40f   : > { %5276 = vrot.lane.b32.xlu1 %v6972_v2, %s8667_s2  ;;  %3661 = vrot.lane.b32.xlu0 %v6928_v53, %s8700_s3  ;;  %8726 = vst [vmem:[#allocation48_spill] sm:$0xff] %v7396_v25  ;;  %v4834_v51 = vunpack.i.h.bf16 %v7020_v44 }
 0x410   : > { %v7384_v29 = vsel %vm601_vm13, %v8721_v54, %v8603_v6  ;;  %v7390_v24 = vsel %vm8723_vm0, %v8722_v8, %v4993_v7  ;;  %v7402_v23 = vsel %vm8728_vm6, %v4993_v7, %v8727_v36  ;;  %vm8730_vm0 = vcmp.lt.s32.totalorder %v5647_v38, 104 }
 0x411   : > { %8724 = vst [vmem:[#allocation47_spill] sm:$0xff] %v7390_v24  ;;  %8729 = vst [vmem:[#allocation49_spill] sm:$0xff] %v7402_v23  ;;  %v7408_v8 = vpop.permute.xlu1 %5001  ;;  %v7410_v31 = vpop.permute.xlu0 %4996  ;;  %v2535_v20 = vsel %vm8730_vm0, %v4828_v22, %v4829_v3  ;;  %v4833_v36 = vunpack.i.l.bf16 %v7020_v44  ;;  %v8734_v6 = vunpack.i.l.bf16 %v7030_v10  ;;  %v4844_v23 = vunpack.i.h.bf16 %v7056_v57 }
 0x412   : > { %v5004_v7 = vunpack.i.h.bf16 %v7408_v8  ;;  %v8616_v54 = vunpack.i.l.bf16 %v7408_v8  ;;  %vm8731_vm6 = vmmov %vm8730_vm0  ;;  %v2557_v25 = vpack.c.bf16 %v2535_v20, %v2535_v20 }
 0x413   : > { %5286 = vrot.lane.b32.xlu1 %v6972_v2, %s8673_s4  ;;  %5281 = vrot.lane.b32.xlu0 %v6972_v2, %s8672_s26  ;;  %vm8732_vm9 = vmmov %vm8730_vm0  ;;  %vm8735_vm0 = vcmp.lt.s32.totalorder %v5647_v38, 105  ;;  %s4235_s26 = sshll.u32 %s5491_s28, 9  ;;  %s4047_s4 = sshll.u32 %s8428_s22, 4  ;;  %s4048_s4 = int_to_ptr.vmem [resolvable:$true] %s4047_s4 }
 0x414   : > { %v2536_v44 = vsel %vm8731_vm6, %v5004_v7, %v4828_v22  ;;  %v2537_v19 = vsel %vm8732_vm9, %v8616_v54, %v5004_v7  ;;  %v2512_v24 = vsel %vm8735_vm0, %v8734_v6, %v8733_v49  ;;  %v4928_v7 = vunpack.i.l.bf16 %v7238_v45  ;;  %vm8738_vm9 = vmmov %vm8735_vm0  ;;  %s5336_s2 = scalar_lea.vmem %s4048_s4, 512  ;;  %s5429_s28 = smov [#allocation5]  }
 0x415   : > { %v2556_v30 = vpack.c.bf16 %v2536_v44, %v2536_v44  ;;  %v5007_v16 = vpop.permute.xlu1 %5006  ;;  %v7442_v22 = vpop.permute.xlu0 %5011  ;;  %v2555_v34 = vpack.c.bf16 %v2537_v19, %v2537_v19  ;;  %vm8736_vm6 = vcmp.lt.s32.totalorder %v5647_v38, 106  ;;  %v8737_v6 = vunpack.i.h.bf16 %v7256_v4  ;;  %p5337_p12 = scmp.ne.s32.totalorder %s4048_s4, %s5336_s2 }
 0x416   : > { %v5008_v54 = vunpack.i.l.bf16 %v5007_v16  ;;  %v2488_v21 = vsel %vm8736_vm6, %v4833_v36, %v4834_v51  ;;  %v8739_v19 = vunpack.i.h.bf16 %v7068_v0  ;;  %v8740_v44 = vunpack.i.l.bf16 %v7068_v0 }
 0x417   : > { %5296 = vrot.lane.b32.xlu1 %v5295_v52, %s8700_s3  ;;  %5291 = vrot.lane.b32.xlu0 %v6972_v2, %s8680_s1  ;;  %v2569_v57 = vsel %vm526_vm4, %v2555_v34, 0  ;;  %v2548_v49 = vpack.c.bf16 %v2512_v24, %v2488_v21  ;;  %v2510_v20 = vsel %vm8738_vm9, %v4933_v5, %v8737_v6  ;;  %vm8741_vm0 = vcmp.lt.s32.totalorder %v5647_v38, 107  ;;  %v3982_v34 = vld [vmem:[%s8486_s6] sm:$0xf]  ;;  %p5338_p1 = pnand %p5337_p12, %p8928_p13 }
 0x418   : > { %v2464_v27 = vsel %vm8741_vm0, %v8740_v44, %v8739_v19  ;;  %vm8742_vm6 = vcmp.lt.s32.totalorder %v5647_v38, 104  ;;  %4185 = vmatprep.subr.msk.bf16.mxu0 %vm526_vm4, %v2556_v30  ;;  %v5009_v24 = vunpack.i.h.bf16 %v5007_v16  ;;  %vm8743_vm9 = vcmp.lt.s32.totalorder %v5647_v38, 108 }
 0x419   : > { %v2534_v2 = vsel %vm8742_vm6, %v4829_v3, %v5008_v54  ;;  %2603 = vmatpush1.bf16.msra.mxu0 %v2569_v57  ;;  %v7471_v50 = vpop.permute.xlu1 %5016  ;;  %v7473_v19 = vpop.permute.xlu0 %5021  ;;  %v2440_v44 = vsel %vm8743_vm9, %v4843_v62, %v4844_v23  ;;  %v4938_v52 = vunpack.i.l.bf16 %v7286_v56  ;;  %v8744_v21 = vunpack.i.h.bf16 %v7238_v45  ;;  %p5339_p3 = pneg %p5338_p1 }
 0x41a   : > { %v2558_v6 = vpack.c.bf16 %v2534_v2, %v2534_v2  ;;  %2604 = vmatprep.subr.bf16.mxu0 %v2548_v49  ;;  %vm8745_vm0 = vcmp.lt.s32.totalorder %v5647_v38, 106  ;;  %v8746_v57 = vunpack.i.h.bf16 %v7030_v10  ;;  %vm8747_vm6 = vcmp.lt.s32.totalorder %v5647_v38, 105 }
 0x41b   : > { %v2486_v16 = vsel %vm8745_vm0, %v4928_v7, %v8744_v21  ;;  %3985 = vperm.xlu1 %4309, %v3982_v34   ;;  %3675 = vrot.lane.b32.xlu0 %v6960_v17, %s8700_s3  ;;  %v2575_v3 = vsel %vm526_vm4, %v2557_v25, 0  ;;  %v2540_v41 = vpack.c.bf16 %v2464_v27, %v2440_v44  ;;  %v8748_v49 = vunpack.i.l.bf16 %v7442_v22  ;;  %vm8749_vm9 = vmmov %vm8745_vm0  ;;  %s8441_s3 = scalar_lea.hbm %s8487_s7, %s4235_s26 }
 0x41c   : > { %v2511_v2 = vsel %vm8747_vm6, %v8746_v57, %v4933_v5  ;;  %v2550_v48 = vpack.c.bf16 %v2510_v20, %v2486_v16  ;;  %v8750_v21 = vunpack.i.l.bf16 %v7030_v10  ;;  %v8751_v59 = vunpack.i.l.bf16 %v7471_v50  ;;  %vm8752_vm0 = vmmov %vm8747_vm6  ;;  %4187 = vmatprep.subr.msk.bf16.mxu1 %vm526_vm4, %v2558_v6 }
 0x41d   : > { %v2489_v30 = vsel %vm8749_vm9, %v8748_v49, %v4833_v36  ;;  %v5023_v34 = vunpack.i.l.bf16 %v7473_v19  ;;  %v8753_v25 = vunpack.i.h.bf16 %v7304_v46  ;;  %vm8754_vm6 = vcmp.lt.s32.totalorder %v5647_v38, 107  ;;  %2644 = vmatpush1.bf16.msra.mxu1 %v2575_v3  ;;  %v7510_v44 = vpop.permute.xlu1 %5026  ;;  %v5032_v16 = vpop.permute.xlu0 %5031 }
 0x41e   : > { %v2513_v5 = vsel %vm8752_vm0, %v8751_v59, %v8750_v21  ;;  %v2487_v36 = vsel %vm8749_vm9, %v4834_v51, %v4928_v7  ;;  %vm8755_vm0 = vcmp.lt.s32.totalorder %v5647_v38, 104  ;;  %v5028_v6 = vunpack.i.l.bf16 %v7510_v44  ;;  %2645 = vmatprep.subr.bf16.mxu1 %v2550_v48 }
 0x41f   : > { %v2462_v27 = vsel %vm8754_vm6, %v4943_v11, %v8753_v25  ;;  %v2547_v10 = vpack.c.bf16 %v2513_v5, %v2489_v30  ;;  %v2533_v59 = vsel %vm8755_vm0, %v5008_v54, %v5009_v24  ;;  %v5034_v57 = vunpack.i.h.bf16 %v5032_v16 }
 0x420   : > { %v5033_v49 = vunpack.i.l.bf16 %v5032_v16  ;;  %v8756_v21 = vunpack.i.h.bf16 %v7286_v56  ;;  %vm8757_vm6 = vcmp.lt.s32.totalorder %v5647_v38, 108  ;;  %v2549_v20 = vpack.c.bf16 %v2511_v2, %v2487_v36 }
 0x421   : > { %vm8758_vm9 = vmmov %vm8757_vm6  ;;  %v8759_v7 = vunpack.i.h.bf16 %v7068_v0  ;;  %2605 = vmatpush1.bf16.msra.mxu0 %v2547_v10  ;;  %v8762_v30 = vunpack.i.l.bf16 %v7068_v0  ;;  %v5037_v0 = vpop.permute.xlu1 %5036  ;;  %v5042_v10 = vpop.permute.xlu0 %5041  ;;  %v5014_v16 = vunpack.i.h.bf16 %v7442_v22 }
 0x422   : > { %v2438_v25 = vsel %vm8757_vm6, %v4938_v52, %v8756_v21  ;;  %v2439_v51 = vsel %vm8758_vm9, %v4844_v23, %v4938_v52  ;;  %vm8761_vm0 = vmmov %vm8757_vm6  ;;  %vm8764_vm9 = vcmp.lt.s32.totalorder %v5647_v38, 104  ;;  %2606 = vmatprep.subr.bf16.mxu0 %v2540_v41  ;;  %v2559_v52 = vpack.c.bf16 %v2533_v59, %v2533_v59  ;;  %2646 = vmatpush1.bf16.msra.mxu1 %v2549_v20 }
 0x423   : > { %v2463_v3 = vsel %vm8760_vm15, %v8759_v7, %v4943_v11  ;;  %v2542_v54 = vpack.c.bf16 %v2462_v27, %v2438_v25  ;;  %v2441_v48 = vsel %vm8761_vm0, %v5023_v34, %v4843_v62  ;;  %vm8763_vm6 = vmmov %vm8760_vm15  ;;  %v2532_v23 = vsel %vm8764_vm9, %v5009_v24, %v5033_v49 }
 0x424   : > { %v2465_v2 = vsel %vm8763_vm6, %v5028_v6, %v8762_v30  ;;  %v5019_v11 = vunpack.i.h.bf16 %v7471_v50  ;;  %v8765_v27 = vunpack.i.l.bf16 %v7408_v8  ;;  %vm8766_vm15 = vmmov %vm8764_vm9  ;;  %v2560_v36 = vpack.c.bf16 %v2532_v23, %v2532_v23  ;;  %v7547_v8 = vld [vmem:[%s8485_s5 + $0x2] sm:$0x3] }
 0x425   : > { %v2539_v5 = vpack.c.bf16 %v2465_v2, %v2441_v48  ;;  %v5039_v21 = vunpack.i.h.bf16 %v5037_v0  ;;  %v5038_v25 = vunpack.i.l.bf16 %v5037_v0  ;;  %v5043_v7 = vunpack.i.l.bf16 %v5042_v10  ;;  %2647 = vmatprep.subr.bf16.mxu1 %v2542_v54  ;;  %vm8767_vm0 = vmmov %vm8764_vm9  ;;  %v5047_v23 = vpop.permute.xlu1 %5046 }
 0x426   : > { %v2538_v62 = vsel %vm8766_vm15, %v5034_v57, %v8765_v27  ;;  %v4853_v41 = vunpack.i.l.bf16 %v7094_v58  ;;  %v2541_v24 = vpack.c.bf16 %v2463_v3, %v2439_v51  ;;  %v5044_v59 = vunpack.i.h.bf16 %v5042_v10 }
 0x427   : > { %2607 = vmatpush1.bf16.msra.mxu0 %v2539_v5  ;;  %v2531_v20 = vsel %vm8767_vm0, %v5033_v49, %v5034_v57  ;;  %v2562_v48 = vpack.c.bf16 %v2538_v62, %v2538_v62  ;;  %v2581_v30 = vsel %vm526_vm4, %v2559_v52, 0  ;;  %vm8768_vm6 = vcmp.lt.s32.totalorder %v5647_v38, 106  ;;  %v5052_v5 = vpop.permute.xlu0 %5051 }
 0x428   : > { %4189 = vmatprep.subr.msk.bf16.mxu0 %vm526_vm4, %v2560_v36  ;;  %v2484_v54 = vsel %vm8768_vm6, %v5014_v16, %v5038_v25  ;;  %vm8769_vm9 = vcmp.lt.s32.totalorder %v5647_v38, 105  ;;  %v8770_v3 = vunpack.i.h.bf16 %v7256_v4  ;;  %2648 = vmatpush1.bf16.msra.mxu1 %v2541_v24  ;;  %v2561_v49 = vpack.c.bf16 %v2531_v20, %v2531_v20  ;;  %vm8773_vm0 = vmmov %vm8768_vm6 }
 0x429   : > { %v2508_v51 = vsel %vm8769_vm9, %v5019_v11, %v5043_v7  ;;  %vm8771_vm15 = vmmov %vm8769_vm9  ;;  %v8772_v27 = vunpack.i.l.bf16 %v7442_v22  ;;  %v5029_v62 = vunpack.i.h.bf16 %v7510_v44  ;;  %v5049_v36 = vunpack.i.h.bf16 %v5047_v23  ;;  %4191 = vmatprep.subr.msk.bf16.mxu1 %vm526_vm4, %v2562_v48 }
 0x42a   : > { %v2509_v2 = vsel %vm8771_vm15, %v8770_v3, %v5019_v11  ;;  %v2552_v57 = vpack.c.bf16 %v2508_v51, %v2484_v54  ;;  %v5048_v0 = vunpack.i.l.bf16 %v5047_v23  ;;  %v5053_v10 = vunpack.i.l.bf16 %v5052_v5  ;;  %4186 = vmatmul.mubr.msk.bf16.vlgmr.msra.gmra.mxu0 %vm811_vm10, %v7547_v8  ;;  %vm8775_vm6 = vmmov %vm8773_vm0 }
 0x42b   : > { %v2490_v52 = vsel %vm8773_vm0, %v5039_v21, %v8772_v27  ;;  %v8774_v4 = vunpack.i.h.bf16 %v7238_v45  ;;  %v5024_v22 = vunpack.i.h.bf16 %v7473_v19  ;;  %v5054_v24 = vunpack.i.h.bf16 %v5052_v5  ;;  %2685 = vmatpush1.bf16.msra.mxu0 %v2581_v30  ;;  %2706 = vmatprep.mubr.bf16.mxu0 %v8649_v18  ;;  %vm8777_vm15 = vmmov %vm8773_vm0  ;;  %v7588_v3 = vpop.permute.xlu0 %5066 }
 0x42c   : > { %v8776_v20 = vunpack.i.l.bf16 %v7471_v50  ;;  %v2483_v48 = vsel %vm8777_vm15, %v5038_v25, %v5039_v21  ;;  %vm8778_vm0 = vmmov %vm8769_vm9  ;;  %4188 = vmatmul.mubr.msk.bf16.vlgmr.msra.gmra.mxu1 %vm811_vm10, %v7547_v8  ;;  %2686 = vmatprep.subr.bf16.mxu0 %v2552_v57  ;;  %v7586_v50 = vpop.permute.xlu1 %5056  ;;  %v8784_v57 = vunpack.i.h.bf16 %v7094_v58 }
 0x42d   : > { %v2485_v11 = vsel %vm8775_vm6, %v8774_v4, %v5014_v16  ;;  %v2507_v45 = vsel %vm8778_vm0, %v5043_v7, %v5044_v59  ;;  %v2587_v16 = vsel %vm526_vm4, %v2561_v49, 0  ;;  %vm8779_vm6 = vcmp.lt.s32.totalorder %v5647_v38, 108  ;;  %2747 = vmatprep.mubr.bf16.mxu1 %v8649_v18 }
 0x42e   : > { %v2514_v54 = vsel %vm8769_vm9, %v5044_v59, %v8776_v20  ;;  %v2551_v51 = vpack.c.bf16 %v2509_v2, %v2485_v11  ;;  %2726 = vmatpush1.bf16.msra.mxu1 %v2587_v16  ;;  %v2436_v23 = vsel %vm8779_vm6, %v5024_v22, %v5048_v0  ;;  %vm8780_vm9 = vcmp.lt.s32.totalorder %v5647_v38, 107  ;;  %vm8781_vm15 = vmmov %vm8779_vm6 }
 0x42f   : > { %v2554_v30 = vpack.c.bf16 %v2514_v54, %v2490_v52  ;;  %v2460_v21 = vsel %vm8780_vm9, %v5029_v62, %v5053_v10  ;;  %v2442_v25 = vsel %vm8781_vm15, %v5049_v36, %v5023_v34  ;;  %v8782_v7 = vunpack.i.h.bf16 %v7304_v46  ;;  %vm8783_vm0 = vmmov %vm8780_vm9 }
 0x430   : > { %v5059_v2 = vunpack.i.h.bf16 %v7586_v50  ;;  %v5058_v5 = vunpack.i.l.bf16 %v7586_v50  ;;  %vm8785_vm6 = vcmp.lt.s32.totalorder %v5647_v38, 124  ;;  %v8786_v49 = vunpack.i.h.bf16 %v7286_v56  ;;  %vm8787_vm9 = vmmov %vm8781_vm15  ;;  %2687 = vmatpush1.bf16.msra.mxu0 %v2551_v51  ;;  %v5062_v54 = vpop.permute.xlu1 %5061 }
 0x431   : > { %v2461_v59 = vsel %vm8783_vm0, %v8782_v7, %v5029_v62  ;;  %2727 = vmatprep.subr.bf16.mxu1 %v2554_v30  ;;  %v2390_v19 = vsel %vm8785_vm6, %v4853_v41, %v8784_v57  ;;  %v2553_v34 = vpack.c.bf16 %v2507_v45, %v2483_v48  ;;  %v2544_v27 = vpack.c.bf16 %v2460_v21, %v2436_v23  ;;  %vm8788_vm15 = vmmov %vm8783_vm0  ;;  %v7623_v48 = vpop.permute.xlu0 %5086 }
 0x432   : > { %v2437_v46 = vsel %vm8787_vm9, %v8786_v49, %v5024_v22  ;;  %v2466_v52 = vsel %vm8788_vm15, %v5054_v24, %v5028_v6  ;;  %vm8789_vm0 = vmmov %vm8787_vm9  ;;  %v2391_v56 = vsel %vm8785_vm6, %v5059_v2, %v4853_v41  ;;  %v4954_v6 = vunpack.i.h.bf16 %v7355_v32 }
 0x433   : > { %v2435_v62 = vsel %vm8789_vm0, %v5048_v0, %v5049_v36  ;;  %vm8790_vm8 = vmmov %vm8788_vm15  ;;  %v2546_v11 = vpack.c.bf16 %v2466_v52, %v2442_v25  ;;  %v2543_v20 = vpack.c.bf16 %v2461_v59, %v2437_v46  ;;  %v2411_v22 = vpack.c.bf16 %v2391_v56, %v2391_v56  ;;  %2688 = vmatprep.subr.bf16.mxu0 %v2544_v27 }
 0x434   : > { %v2459_v4 = vsel %vm8790_vm8, %v5053_v10, %v5054_v24  ;;  %2728 = vmatpush1.bf16.msra.mxu1 %v2553_v34  ;;  %vm8791_vm9 = vmmov %vm8785_vm6  ;;  %v5063_v36 = vunpack.i.l.bf16 %v5062_v54  ;;  %v4999_v0 = vunpack.i.h.bf16 %v7410_v31  ;;  %v4949_v24 = vunpack.i.h.bf16 %v7334_v39  ;;  %v7640_v7 = vpop.permute.xlu1 %5071 }
 0x435   : > { %v2392_v44 = vsel %vm8791_vm9, %v5058_v5, %v5059_v2  ;;  %2729 = vmatprep.subr.bf16.mxu1 %v2546_v11  ;;  %v2545_v41 = vpack.c.bf16 %v2459_v4, %v2435_v62  ;;  %2689 = vmatpush1.bf16.msra.mxu0 %v2543_v20  ;;  %v5068_v45 = vunpack.i.l.bf16 %v7588_v3  ;;  %v8792_v16 = vmov %v8784_v57  ;;  %vm8793_vm8 = vmmov %vm8785_vm6  ;;  %v5092_v59 = vpop.permute.xlu0 %5091 }
 0x436   : > { %v2410_v10 = vpack.c.bf16 %v2392_v44, %v2392_v44  ;;  %v2389_v30 = vsel %vm8793_vm8, %v8792_v16, %v5063_v36  ;;  %4193 = vmatprep.subr.msk.bf16.mxu0 %vm526_vm4, %v2411_v22  ;;  %v2412_v51 = vpack.c.bf16 %v2390_v19, %v2390_v19  ;;  %v4868_v23 = vunpack.i.l.bf16 %v7160_v9  ;;  %vm8802_vm8 = vmmov %vm8785_vm6 }
 0x437   : > { %v4998_v21 = vunpack.i.l.bf16 %v7410_v31  ;;  %v2413_v25 = vpack.c.bf16 %v2389_v30, %v2389_v30  ;;  %v5064_v2 = vunpack.i.h.bf16 %v5062_v54  ;;  %v5073_v57 = vunpack.i.l.bf16 %v7640_v7 }
 0x438   : > { %2730 = vmatpush1.bf16.msra.mxu1 %v2545_v41  ;;  %4190 = vmatmul.mubr.msk.bf16.vlgmr.msra.gmra.mxu0 %vm811_vm10, %v7547_v8  ;;  %v2760_v58 = vsel %vm526_vm4, %v2410_v10, 0  ;;  %v8794_v19 = vunpack.i.l.bf16 %v7355_v32  ;;  %v4869_v46 = vunpack.i.h.bf16 %v7160_v9  ;;  %v5093_v34 = vunpack.i.l.bf16 %v5092_v59 }
 0x439   : > { %2794 = vmatpush1.bf16.msra.mxu0 %v2760_v58  ;;  %4195 = vmatprep.subr.msk.bf16.mxu1 %vm526_vm4, %v2413_v25  ;;  %vm8795_vm15 = vcmp.lt.s32.totalorder %v5647_v38, 127  ;;  %v8796_v52 = vunpack.i.l.bf16 %v7104_v40  ;;  %v8797_v4 = vunpack.i.l.bf16 %v7116_v47  ;;  %v2766_v56 = vsel %vm526_vm4, %v2412_v51, 0  ;;  %v7686_v44 = vpop.permute.xlu0 %5101 }
 0x43a   : > { %v2365_v49 = vsel %vm601_vm13, %v8794_v19, %v4954_v6  ;;  %v2319_v27 = vsel %vm8795_vm15, %v4999_v0, %v4868_v23  ;;  %v8798_v40 = vunpack.i.l.bf16 %v7334_v39  ;;  %vm8799_vm0 = vmmov %vm8795_vm15  ;;  %v5094_v22 = vunpack.i.h.bf16 %v5092_v59  ;;  %2815 = vmatprep.mubr.bf16.mxu0 %v8649_v18 }
 0x43b   : > { %v2344_v62 = vsel %vm576_vm12, %v5068_v45, %v8796_v52  ;;  %v2368_v9 = vsel %vm601_vm13, %v5073_v57, %v8797_v4  ;;  %4192 = vmatmul.mubr.msk.bf16.vlgmr.msra.gmra.mxu1 %vm811_vm10, %v7547_v8  ;;  %v2320_v47 = vsel %vm8799_vm0, %v4998_v21, %v4999_v0  ;;  %v8800_v54 = vpack.c.bf16 %v7140_v60, %v7132_v26  ;;  %v7684_v8 = vpop.permute.xlu1 %5076  ;;  %vm8801_vm9 = vmmov %vm8799_vm0 }
 0x43c   : > { %v2341_v11 = vsel %vm576_vm12, %v8798_v40, %v4949_v24  ;;  %v2402_v20 = vpack.c.bf16 %v2368_v9, %v2344_v62  ;;  %2835 = vmatpush1.bf16.msra.mxu1 %v2766_v56  ;;  %v5078_v10 = vunpack.i.l.bf16 %v7684_v8  ;;  %v2395_v16 = vpack.c.bf16 %v2319_v27, %v6854_v1  ;;  %vm8803_vm15 = vmmov %vm8799_vm0  ;;  %2856 = vmatprep.mubr.bf16.mxu1 %v8649_v18 }
 0x43d   : > { %2795 = vmatprep.subr.bf16.mxu0 %v8800_v54  ;;  %v2405_v41 = vpack.c.bf16 %v2365_v49, %v2341_v11  ;;  %v2388_v0 = vsel %vm8785_vm6, %v5063_v36, %v5064_v2  ;;  %v2318_v30 = vsel %vm8801_vm9, %v4868_v23, %v4869_v46  ;;  %v5074_v26 = vunpack.i.h.bf16 %v7640_v7  ;;  %vm8804_vm0 = vmmov %vm8785_vm6 }
 0x43e   : > { %v2387_v60 = vsel %vm8802_vm8, %v5064_v2, %v5093_v34  ;;  %2796 = vmatpush1.bf16.msra.mxu0 %v2402_v20  ;;  %v2394_v51 = vpack.c.bf16 %v2320_v47, %v6928_v53  ;;  %v5089_v25 = vunpack.i.h.bf16 %v7623_v48  ;;  %v5088_v1 = vunpack.i.l.bf16 %v7623_v48  ;;  %v7713_v2 = vpop.permute.xlu0 %5116  ;;  %vm8806_vm6 = vmmov %vm8804_vm0 }
 0x43f   : > { %2836 = vmatprep.subr.bf16.mxu1 %v2405_v41  ;;  %2797 = vmatprep.subr.bf16.mxu0 %v2395_v16  ;;  %v2317_v36 = vsel %vm8803_vm15, %v4869_v46, %v5078_v10  ;;  %v5069_v23 = vunpack.i.h.bf16 %v7588_v3  ;;  %v2393_v59 = vsel %vm8804_vm0, %v5094_v22, %v5058_v5  ;;  %v7711_v53 = vpop.permute.xlu1 %5081  ;;  %v2414_v19 = vpack.c.bf16 %v2388_v0, %v2388_v0  ;;  %vm8809_vm8 = vmmov %vm8801_vm9 }
 0x440   : > { %v2397_v58 = vpack.c.bf16 %v2317_v36, %v6844_v15  ;;  %v2415_v49 = vpack.c.bf16 %v2387_v60, %v2387_v60  ;;  %v8805_v46 = vpack.c.bf16 %v7384_v29, %v7372_v12  ;;  %v5119_v27 = vunpack.i.h.bf16 %v7713_v2  ;;  %v7733_v12 = vld [vmem:[%s8485_s5] sm:$0x3]  ;;  %vm8810_vm15 = vmmov %vm8809_vm8 }
 0x441   : > { %v5118_v52 = vunpack.i.l.bf16 %v7713_v2  ;;  %v2386_v50 = vsel %vm8806_vm6, %v5093_v34, %v5094_v22  ;;  %v4874_v5 = vunpack.i.h.bf16 %v7010_v42  ;;  %v2364_v15 = vsel %vm601_vm13, %v4954_v6, %v5074_v26 }
 0x442   : > { %2837 = vmatpush1.bf16.msra.mxu1 %v8805_v46  ;;  %v5104_v62 = vunpack.i.h.bf16 %v7686_v44  ;;  %v5103_v4 = vunpack.i.l.bf16 %v7686_v44  ;;  %2798 = vmatpush1.bf16.msra.mxu0 %v2394_v51  ;;  %v4873_v29 = vunpack.i.l.bf16 %v7010_v42  ;;  %v2396_v34 = vpack.c.bf16 %v2318_v30, %v6848_v35  ;;  %v7758_v40 = vpop.permute.xlu0 %5121 }
 0x443   : > { %2838 = vmatprep.subr.bf16.mxu1 %v2397_v58  ;;  %4197 = vmatprep.subr.msk.bf16.mxu0 %vm526_vm4, %v2415_v49  ;;  %v7744_v32 = vsel %vm1960_vm7, %v5088_v1, %v5089_v25  ;;  %v7752_v6 = vsel %vm1985_vm5, %v5118_v52, %v5119_v27  ;;  %v2340_v35 = vsel %vm576_vm12, %v4949_v24, %v5069_v23  ;;  %v5097_v56 = vpop.permute.xlu1 %5096  ;;  %v2772_v39 = vsel %vm526_vm4, %v2414_v19, 0 }
 0x444   : > { %v2417_v9 = vpack.c.bf16 %v2393_v59, %v2393_v59  ;;  %v2416_v11 = vpack.c.bf16 %v2386_v50, %v2386_v50  ;;  %v3768_v47 = vpack.c.bf16 %v7752_v6, %v7744_v32  ;;  %v2406_v20 = vpack.c.bf16 %v2364_v15, %v2340_v35 }
 0x445   : > { %v5099_v22 = vunpack.i.h.bf16 %v5097_v56  ;;  %v5098_v54 = vunpack.i.l.bf16 %v5097_v56  ;;  %4194 = vmatmul.mubr.msk.bf16.vlgmr.msra.gmra.mxu0 %vm811_vm10, %v7733_v12  ;;  %v5079_v44 = vunpack.i.h.bf16 %v7684_v8  ;;  %v5124_v24 = vunpack.i.h.bf16 %v7758_v40 }
 0x446   : > { %2839 = vmatpush1.bf16.msra.mxu1 %v2396_v34  ;;  %2876 = vmatpush1.bf16.msra.mxu0 %v2772_v39  ;;  %v2363_v41 = vsel %vm601_vm13, %v5074_v26, %v5103_v4  ;;  %v2369_v16 = vsel %vm601_vm13, %v5104_v62, %v5073_v57  ;;  %v5123_v30 = vunpack.i.l.bf16 %v7758_v40  ;;  %v2362_v7 = vsel %vm601_vm13, %v5103_v4, %v5104_v62  ;;  %v7789_v36 = vpop.permute.xlu0 %5126  ;;  %v8844_v40 = vld [vmem:[#allocation33_spill] sm:$0xff] }
 0x447   : > { %4199 = vmatprep.subr.msk.bf16.mxu1 %vm526_vm4, %v2417_v9  ;;  %v2338_v0 = vsel %vm576_vm12, %v5098_v54, %v5099_v22  ;;  %v2339_v60 = vsel %vm576_vm12, %v5069_v23, %v5098_v54  ;;  %v2345_v51 = vsel %vm576_vm12, %v5099_v22, %v5068_v45  ;;  %2897 = vmatprep.mubr.bf16.mxu0 %v8649_v18  ;;  %v2778_v57 = vsel %vm526_vm4, %v2416_v11, 0  ;;  %v5107_v26 = vpop.permute.xlu1 %5106  ;;  %vm8807_vm12 = vmmov %vm8801_vm9 }
 0x448   : > { %v2407_v59 = vpack.c.bf16 %v2363_v41, %v2339_v60  ;;  %v2409_v23 = vpack.c.bf16 %v2369_v16, %v2345_v51  ;;  %v2408_v58 = vpack.c.bf16 %v2362_v7, %v2338_v0  ;;  %v5109_v3 = vunpack.i.h.bf16 %v5107_v26 }
 0x449   : > { %4196 = vmatmul.mubr.msk.bf16.vlgmr.msra.gmra.mxu1 %vm811_vm10, %v7733_v12  ;;  %v5108_v19 = vunpack.i.l.bf16 %v5107_v26  ;;  %v5128_v45 = vunpack.i.l.bf16 %v7789_v36  ;;  %v2316_v49 = vsel %vm8807_vm12, %v5078_v10, %v5079_v44  ;;  %v5084_v46 = vunpack.i.h.bf16 %v7711_v53 }
 0x44a   : > { %2917 = vmatpush1.bf16.msra.mxu1 %v2778_v57  ;;  %2938 = vmatprep.mubr.bf16.mxu1 %v8649_v18  ;;  %vm8808_vm13 = vcmp.lt.s32.totalorder %v5647_v38, 84  ;;  %v2321_v8 = vsel %vm8810_vm15, %v5109_v3, %v4998_v21  ;;  %v7814_v34 = vpop.permute.xlu0 %5136  ;;  %v2398_v21 = vpack.c.bf16 %v2316_v49, %v6890_v61  ;;  %v8814_v41 = vunpack.i.h.bf16 %v7208_v43 }
 0x44b   : > { %v3064_v50 = vsel %vm8808_vm13, %v5124_v24, %v4873_v29  ;;  %2877 = vmatprep.subr.bf16.mxu0 %v2407_v59  ;;  %2918 = vmatprep.subr.bf16.mxu1 %v2409_v23  ;;  %v2314_v15 = vsel %vm8801_vm9, %v5108_v19, %v5109_v3  ;;  %v2315_v62 = vsel %vm8809_vm8, %v5079_v44, %v5108_v19  ;;  %vm8811_vm0 = vmmov %vm8808_vm13  ;;  %v7812_v4 = vpop.permute.xlu1 %5111  ;;  %v5138_v22 = vunpack.i.l.bf16 %v7814_v34 }
 0x44c   : > { %2878 = vmatpush1.bf16.msra.mxu0 %v2406_v20  ;;  %v3065_v10 = vsel %vm8811_vm0, %v5123_v30, %v5124_v24  ;;  %v2399_v35 = vpack.c.bf16 %v2315_v62, %v6940_v13  ;;  %v2401_v9 = vpack.c.bf16 %v2321_v8, %v6960_v17  ;;  %vm8812_vm6 = vmmov %vm8811_vm0  ;;  %v2400_v56 = vpack.c.bf16 %v2314_v15, %v6964_v63  ;;  %v8819_v15 = vld [vmem:[#allocation31_spill] sm:$0xff]  ;;  %v8820_v62 = vld [vmem:[#allocation30_spill] sm:$0xff] }
 0x44d   : > { %v3063_v31 = vsel %vm8812_vm6, %v4873_v29, %v4874_v5  ;;  %vm8813_vm12 = vmmov %vm8811_vm0  ;;  %v5114_v13 = vunpack.i.h.bf16 %v7812_v4  ;;  %v3084_v17 = vpack.c.bf16 %v3064_v50, %v3064_v50  ;;  %v5139_v20 = vunpack.i.h.bf16 %v7814_v34 }
 0x44e   : > { %v3062_v11 = vsel %vm8813_vm12, %v4874_v5, %v5128_v45  ;;  %2919 = vmatpush1.bf16.msra.mxu1 %v2408_v58  ;;  %2879 = vmatprep.subr.bf16.mxu0 %v2399_v35  ;;  %v3083_v61 = vpack.c.bf16 %v3065_v10, %v3065_v10  ;;  %v7839_v63 = vsel %vm1960_vm7, %v5084_v46, %v5088_v1  ;;  %v7853_v39 = vpop.permute.xlu0 %5146  ;;  %v8815_v0 = vunpack.i.l.bf16 %v7028_v37  ;;  %vm8822_vm13 = vmmov %vm8811_vm0  ;;  %v8825_v35 = vld [vmem:[#allocation15_spill] sm:$0xff] }
 0x44f   : > { %2920 = vmatprep.subr.bf16.mxu1 %v2401_v9  ;;  %v7847_v42 = vsel %vm1985_vm5, %v5114_v13, %v5118_v52  ;;  %v3086_v5 = vpack.c.bf16 %v3062_v11, %v3062_v11  ;;  %v7851_v54 = vpop.permute.xlu1 %5131  ;;  %v3085_v1 = vpack.c.bf16 %v3063_v31, %v3063_v31  ;;  %v5129_v52 = vunpack.i.h.bf16 %v7789_v36  ;;  %v8827_v36 = vld [vmem:[#allocation32_spill] sm:$0xff]  ;;  %vm8840_vm9 = vmmov %vm8811_vm0 }
 0x450   : > { %2880 = vmatpush1.bf16.msra.mxu0 %v2398_v21  ;;  %v3767_v29 = vpack.c.bf16 %v7847_v42, %v7839_v63  ;;  %v5134_v44 = vunpack.i.h.bf16 %v7851_v54  ;;  %v5133_v24 = vunpack.i.l.bf16 %v7851_v54  ;;  %v7865_v16 = vsel %vm1285_vm2, %v8814_v41, %v5139_v20  ;;  %vm8841_vm8 = vmmov %vm8811_vm0  ;;  %v4219_v63 = vld [vmem:[%s8485_s5 + $0x8] sm:$0x3] }
 0x451   : > { %4202 = vmatprep.subr.msk.bf16.mxu0 %vm526_vm4, %v3084_v17  ;;  %v3041_v60 = vsel %vm1285_vm2, %v5138_v22, %v8815_v0  ;;  %v3097_v51 = vsel %vm526_vm4, %v3083_v61, 0  ;;  %v8816_v43 = vunpack.i.h.bf16 %v7174_v28  ;;  %v8817_v37 = vunpack.i.l.bf16 %v7018_v14  ;;  %v8831_v0 = vld [vmem:[#allocation17_spill] sm:$0xff]  ;;  %vm8842_vm15 = vmmov %vm8811_vm0 }
 0x452   : > { %2921 = vmatpush1.bf16.msra.mxu1 %v2400_v56  ;;  %v5149_v26 = vunpack.i.h.bf16 %v7853_v39  ;;  %v5148_v59 = vunpack.i.l.bf16 %v7853_v39  ;;  %v3103_v58 = vsel %vm526_vm4, %v3085_v1, 0  ;;  %v5157_v3 = vpop.permute.xlu0 %5156  ;;  %v8818_v19 = vpack.c.bf16 %v7052_v33, %v7044_v55  ;;  %v8823_v55 = vld [vmem:[#allocation34_spill] sm:$0xff] }
 0x453   : > { %4204 = vmatprep.subr.msk.bf16.mxu1 %vm526_vm4, %v3086_v5  ;;  %4198 = vmatmul.mubr.msk.bf16.vlgmr.msra.gmra.mxu0 %vm811_vm10, %v7733_v12  ;;  %v7881_v7 = vsel %vm1260_vm1, %v8816_v43, %v5134_v44  ;;  %v3017_v57 = vsel %vm1260_vm1, %v5133_v24, %v8817_v37  ;;  %v7896_v14 = vpop.permute.xlu1 %5141  ;;  %v8821_v8 = vpack.c.bf16 %v8819_v15, %v8820_v62  ;;  %v8824_v33 = vunpack.i.h.bf16 %v8823_v55  ;;  %v8829_v56 = vld [vmem:[#allocation14_spill] sm:$0xff]  ;;  %v8834_v37 = vld [vmem:[#allocation29_spill] sm:$0xff]  ;;  %v8838_v55 = vld [vmem:[#allocation36_spill] sm:$0xff] }
 0x454   : > { %3131 = vmatpush1.bf16.msra.mxu0 %v3097_v51  ;;  %v3075_v23 = vpack.c.bf16 %v3041_v60, %v3017_v57  ;;  %v3079_v28 = vpack.c.bf16 %v7865_v16, %v7881_v7  ;;  %v5144_v49 = vunpack.i.h.bf16 %v7896_v14  ;;  %v5143_v50 = vunpack.i.l.bf16 %v7896_v14  ;;  %3152 = vmatprep.mubr.bf16.mxu0 %v8649_v18  ;;  %v8832_v60 = vld [vmem:[#allocation16_spill] sm:$0xff]  ;;  %v8835_v57 = vld [vmem:[#allocation25_spill] sm:$0xff] }
 0x455   : > { %4200 = vmatmul.mubr.msk.bf16.vlgmr.msra.gmra.mxu1 %vm811_vm10, %v7733_v12  ;;  %3132 = vmatprep.subr.bf16.mxu0 %v8818_v19  ;;  %v3061_v12 = vsel %vm8822_vm13, %v5128_v45, %v5129_v52  ;;  %v7918_v10 = vsel %vm1235_vm14, %v8824_v33, %v5149_v26  ;;  %v8826_v9 = vunpack.i.l.bf16 %v8825_v35  ;;  %v8828_v21 = vunpack.i.h.bf16 %v8827_v36 }
 0x456   : > { %3172 = vmatpush1.bf16.msra.mxu1 %v3103_v58  ;;  %3193 = vmatprep.mubr.bf16.mxu1 %v8649_v18  ;;  %v8830_v11 = vunpack.i.l.bf16 %v8829_v56  ;;  %v5167_v41 = vpop.permute.xlu0 %5166  ;;  %v8833_v51 = vpack.c.bf16 %v8831_v0, %v8832_v60  ;;  %v5158_v43 = vunpack.i.l.bf16 %v5157_v3  ;;  %v8836_v58 = vpack.c.bf16 %v8834_v37, %v8835_v57 }
 0x457   : > { %3173 = vmatprep.subr.bf16.mxu1 %v8821_v8  ;;  %v2993_v31 = vsel %vm1235_vm14, %v5148_v59, %v8826_v9  ;;  %v7932_v45 = vsel %vm1210_vm3, %v8828_v21, %v5144_v49  ;;  %v5152_v1 = vpop.permute.xlu1 %5151  ;;  %v3087_v62 = vpack.c.bf16 %v3061_v12, %v3061_v12  ;;  %v5159_v8 = vunpack.i.h.bf16 %v5157_v3 }
 0x458   : > { %v2969_v17 = vsel %vm1210_vm3, %v5143_v50, %v8830_v11  ;;  %3133 = vmatpush1.bf16.msra.mxu0 %v3075_v23  ;;  %v3071_v5 = vpack.c.bf16 %v7918_v10, %v7932_v45  ;;  %v5154_v19 = vunpack.i.h.bf16 %v5152_v1  ;;  %v5153_v15 = vunpack.i.l.bf16 %v5152_v1  ;;  %v8837_v23 = vld [vmem:[#allocation37_spill] sm:$0xff]  ;;  %v8843_v11 = vld [vmem:[#allocation35_spill] sm:$0xff] }
 0x459   : > { %v3067_v61 = vpack.c.bf16 %v2993_v31, %v2969_v17  ;;  %3134 = vmatprep.subr.bf16.mxu0 %v8833_v51  ;;  %v8839_v33 = vpack.c.bf16 %v8837_v23, %v8838_v55  ;;  %v7960_v31 = vld [vmem:[%s8485_s5 + $0x4] sm:$0x3]  ;;  %v8845_v17 = vpack.c.bf16 %v8843_v11, %v8844_v40  ;;  %v3109_v1 = vsel %vm526_vm4, %v3087_v62, 0 }
 0x45a   : > { %3174 = vmatpush1.bf16.msra.mxu1 %v8836_v58  ;;  %v3060_v35 = vsel %vm8840_vm9, %v5129_v52, %v5153_v15  ;;  %v3066_v9 = vsel %vm8841_vm8, %v5154_v19, %v5123_v30  ;;  %v3059_v3 = vsel %vm8842_vm15, %v5153_v15, %v5154_v19  ;;  %v7964_v56 = vpop.permute.xlu0 %5181  ;;  %v3012_v0 = vsel %vm1260_vm1, %v5134_v44, %v5158_v43  ;;  %v8846_v58 = vld [vmem:[#allocation18_spill] sm:$0xff] }
 0x45b   : > { %3175 = vmatprep.subr.bf16.mxu1 %v8839_v33  ;;  %v3088_v12 = vpack.c.bf16 %v3060_v35, %v3060_v35  ;;  %v3090_v36 = vpack.c.bf16 %v3066_v9, %v3066_v9  ;;  %v5162_v21 = vpop.permute.xlu1 %5161  ;;  %v3089_v52 = vpack.c.bf16 %v3059_v3, %v3059_v3  ;;  %v5169_v60 = vunpack.i.h.bf16 %v5167_v41 }
 0x45c   : > { %3135 = vmatpush1.bf16.msra.mxu0 %v3067_v61  ;;  %v5164_v30 = vunpack.i.h.bf16 %v5162_v21  ;;  %v5163_v61 = vunpack.i.l.bf16 %v5162_v21  ;;  %v5168_v51 = vunpack.i.l.bf16 %v5167_v41  ;;  %v3018_v57 = vsel %vm1260_vm1, %v5159_v8, %v5133_v24 }
 0x45d   : > { %4206 = vmatprep.subr.msk.bf16.mxu0 %vm526_vm4, %v3088_v12  ;;  %v3115_v37 = vsel %vm526_vm4, %v3089_v52, 0  ;;  %v4899_v19 = vunpack.i.h.bf16 %v8846_v58  ;;  %v4898_v24 = vunpack.i.l.bf16 %v8846_v58  ;;  %v3011_v41 = vsel %vm1260_vm1, %v5158_v43, %v5159_v8 }
 0x45e   : > { %3176 = vmatpush1.bf16.msra.mxu1 %v8845_v17  ;;  %v3035_v15 = vsel %vm1285_vm2, %v5163_v61, %v5164_v30  ;;  %v3036_v44 = vsel %vm1285_vm2, %v5139_v20, %v5163_v61  ;;  %v3042_v54 = vsel %vm1285_vm2, %v5164_v30, %v5138_v22  ;;  %v7997_v23 = vpop.permute.xlu0 %5186  ;;  %v2964_v8 = vsel %vm1210_vm3, %v5144_v49, %v5168_v51 }
 0x45f   : > { %4203 = vmatmul.mubr.msk.bf16.vlgmr.msra.gmra.mxu0 %vm811_vm10, %v7960_v31  ;;  %4208 = vmatprep.subr.msk.bf16.mxu1 %vm526_vm4, %v3090_v36  ;;  %v5172_v62 = vpop.permute.xlu1 %5171  ;;  %v3080_v55 = vpack.c.bf16 %v3036_v44, %v3012_v0  ;;  %v3082_v33 = vpack.c.bf16 %v3042_v54, %v3018_v57  ;;  %v3081_v20 = vpack.c.bf16 %v3035_v15, %v3011_v41  ;;  %v5189_v22 = vunpack.i.h.bf16 %v7997_v23  ;;  %v8855_v54 = vld [vmem:[#allocation40_spill] sm:$0xff] }
 0x460   : > { %3213 = vmatpush1.bf16.msra.mxu0 %v3109_v1  ;;  %3234 = vmatprep.mubr.bf16.mxu0 %v8649_v18  ;;  %v5174_v34 = vunpack.i.h.bf16 %v5172_v62  ;;  %v5173_v35 = vunpack.i.l.bf16 %v5172_v62  ;;  %v5188_v43 = vunpack.i.l.bf16 %v7997_v23  ;;  %v2970_v9 = vsel %vm1210_vm3, %v5169_v60, %v5143_v50  ;;  %v8858_v62 = vld [vmem:[#allocation20_spill] sm:$0xff] }
 0x461   : > { %4205 = vmatmul.mubr.msk.bf16.vlgmr.msra.gmra.mxu1 %vm811_vm10, %v7960_v31  ;;  %3214 = vmatprep.subr.bf16.mxu0 %v3080_v55  ;;  %vm8847_vm1 = vcmp.lt.s32.totalorder %v5647_v38, 64  ;;  %v2963_v50 = vsel %vm1210_vm3, %v5168_v51, %v5169_v60  ;;  %vm8857_vm0 = vcmp.lt.s32.totalorder %v5647_v38, 65  ;;  %v8859_v55 = vunpack.i.l.bf16 %v8858_v62  ;;  %v8880_v62 = vld [vmem:[#allocation27_spill] sm:$0xff]  ;;  %v8891_v23 = vld [vmem:[#allocation28_spill] sm:$0xff] }
 0x462   : > { %3254 = vmatpush1.bf16.msra.mxu1 %v3115_v37  ;;  %3275 = vmatprep.mubr.bf16.mxu1 %v8649_v18  ;;  %v2987_v3 = vsel %vm1235_vm14, %v5173_v35, %v5174_v34  ;;  %v3409_v12 = vsel %vm8847_vm1, %v5189_v22, %v4898_v24  ;;  %v2988_v49 = vsel %vm1235_vm14, %v5149_v26, %v5173_v35  ;;  %v8030_v21 = vpop.permute.xlu0 %5191  ;;  %vm8848_vm2 = vmmov %vm8847_vm1  ;;  %vm8870_vm13 = vcmp.lt.s32.totalorder %v5647_v38, 68 }
 0x463   : > { %3255 = vmatprep.subr.bf16.mxu1 %v3082_v33  ;;  %v2994_v14 = vsel %vm1235_vm14, %v5174_v34, %v5148_v59  ;;  %v8028_v36 = vpop.permute.xlu1 %5176  ;;  %v3072_v52 = vpack.c.bf16 %v2988_v49, %v2964_v8  ;;  %v3073_v7 = vpack.c.bf16 %v2987_v3, %v2963_v50  ;;  %v3408_v26 = vsel %vm8848_vm2, %v4898_v24, %v4899_v19  ;;  %vm8849_vm14 = vmmov %vm8847_vm1  ;;  %v8862_v3 = vld [vmem:[#allocation21_spill] sm:$0xff] }
 0x464   : > { %3215 = vmatpush1.bf16.msra.mxu0 %v3079_v28  ;;  %v3074_v16 = vpack.c.bf16 %v2994_v14, %v2970_v9  ;;  %v5193_v28 = vunpack.i.l.bf16 %v8030_v21  ;;  %v3429_v39 = vpack.c.bf16 %v3409_v12, %v3409_v12  ;;  %v3410_v59 = vsel %vm8849_vm14, %v5188_v43, %v5189_v22  ;;  %vm8850_vm3 = vmmov %vm8847_vm1  ;;  %v8861_v9 = vld [vmem:[#allocation22_spill] sm:$0xff] }
 0x465   : > { %3216 = vmatprep.subr.bf16.mxu0 %v3072_v52  ;;  %v3428_v40 = vpack.c.bf16 %v3410_v59, %v3410_v59  ;;  %v3430_v1 = vpack.c.bf16 %v3408_v26, %v3408_v26  ;;  %v5194_v10 = vunpack.i.h.bf16 %v8030_v21  ;;  %v8856_v24 = vunpack.i.h.bf16 %v8855_v54  ;;  %vm8860_vm6 = vmmov %vm8857_vm0  ;;  %v8865_v52 = vld [vmem:[#allocation42_spill] sm:$0xff]  ;;  %v8868_v26 = vld [vmem:[#allocation44_spill] sm:$0xff] }
 0x466   : > { %3256 = vmatpush1.bf16.msra.mxu1 %v3081_v20  ;;  %v3407_v11 = vsel %vm8850_vm3, %v4899_v19, %v5193_v28  ;;  %v8046_v61 = vpop.permute.xlu0 %5201  ;;  %v8853_v19 = vld [vmem:[#allocation19_spill] sm:$0xff]  ;;  %v8863_v12 = vpack.c.bf16 %v8861_v9, %v8862_v3  ;;  %vm8867_vm12 = vmmov %vm8847_vm1  ;;  %vm8876_vm8 = vcmp.lt.s32.totalorder %v5647_v38, 67 }
 0x467   : > { %3257 = vmatprep.subr.bf16.mxu1 %v3074_v16  ;;  %v3431_v17 = vpack.c.bf16 %v3407_v11, %v3407_v11  ;;  %v8044_v30 = vpop.permute.xlu1 %5196  ;;  %v5204_v51 = vunpack.i.h.bf16 %v8046_v61  ;;  %v5203_v37 = vunpack.i.l.bf16 %v8046_v61  ;;  %v3442_v45 = vsel %vm526_vm4, %v3428_v40, 0  ;;  %v8871_v11 = vld [vmem:[#allocation23_spill] sm:$0xff]  ;;  %vm8873_vm9 = vmmov %vm8870_vm13 }
 0x468   : > { %3217 = vmatpush1.bf16.msra.mxu0 %v3071_v5  ;;  %v5199_v0 = vunpack.i.h.bf16 %v8044_v30  ;;  %v5198_v60 = vunpack.i.l.bf16 %v8044_v30  ;;  %v8851_v5 = vld [vmem:[#allocation38_spill] sm:$0xff]  ;;  %v8854_v15 = vunpack.i.l.bf16 %v8853_v19  ;;  %v3448_v35 = vsel %vm526_vm4, %v3430_v1, 0  ;;  %vm8879_vm15 = vmmov %vm8876_vm8  ;;  %v8884_v9 = vld [vmem:[#allocation39_spill] sm:$0xff] }
 0x469   : > { %4211 = vmatprep.subr.msk.bf16.mxu0 %vm526_vm4, %v3429_v39  ;;  %v8852_v57 = vunpack.i.h.bf16 %v8851_v5  ;;  %v8078_v41 = vsel %vm8857_vm0, %v8856_v24, %v5204_v51  ;;  %v3386_v33 = vsel %vm8860_vm6, %v5203_v37, %v8859_v55  ;;  %v8869_v39 = vunpack.i.h.bf16 %v8868_v26  ;;  %v8874_v1 = vld [vmem:[#allocation46_spill] sm:$0xff]  ;;  %v8877_v5 = vld [vmem:[#allocation24_spill] sm:$0xff]  ;;  %vm8889_vm2 = vmmov %vm8847_vm1 }
 0x46a   : > { %3258 = vmatpush1.bf16.msra.mxu1 %v3073_v7  ;;  %v3362_v44 = vsel %vm1610_vm11, %v5198_v60, %v8854_v15  ;;  %v8093_v8 = vpop.permute.xlu0 %5211  ;;  %v3406_v7 = vsel %vm8867_vm12, %v5193_v28, %v5194_v10  ;;  %v8872_v40 = vunpack.i.l.bf16 %v8871_v11  ;;  %v8881_v55 = vld [vmem:[#allocation26_spill] sm:$0xff]  ;;  %vm8890_vm14 = vmmov %vm8847_vm1 }
 0x46b   : > { %4207 = vmatmul.mubr.msk.bf16.vlgmr.msra.gmra.mxu0 %vm811_vm10, %v7960_v31  ;;  %4213 = vmatprep.subr.msk.bf16.mxu1 %vm526_vm4, %v3431_v17  ;;  %v8064_v58 = vsel %vm1610_vm11, %v8852_v57, %v5199_v0  ;;  %v3420_v20 = vpack.c.bf16 %v3386_v33, %v3362_v44  ;;  %v8091_v22 = vpop.permute.xlu1 %5206  ;;  %v5214_v50 = vunpack.i.h.bf16 %v8093_v8  ;;  %v5213_v21 = vunpack.i.l.bf16 %v8093_v8  ;;  %vm8895_vm3 = vmmov %vm8857_vm0 }
 0x46c   : > { %3476 = vmatpush1.bf16.msra.mxu0 %v3442_v45  ;;  %v3424_v34 = vpack.c.bf16 %v8078_v41, %v8064_v58  ;;  %v5209_v49 = vunpack.i.h.bf16 %v8091_v22  ;;  %v5208_v14 = vunpack.i.l.bf16 %v8091_v22  ;;  %3497 = vmatprep.mubr.bf16.mxu0 %v8649_v18  ;;  %v8875_v45 = vunpack.i.h.bf16 %v8874_v1  ;;  %vm8896_vm6 = vmmov %vm8857_vm0 }
 0x46d   : > { %4209 = vmatmul.mubr.msk.bf16.vlgmr.msra.gmra.mxu1 %vm811_vm10, %v7960_v31  ;;  %3477 = vmatprep.subr.bf16.mxu0 %v8863_v12  ;;  %v8864_v31 = vld [vmem:[#allocation43_spill] sm:$0xff]  ;;  %v8878_v57 = vunpack.i.l.bf16 %v8877_v5  ;;  %v8882_v33 = vpack.c.bf16 %v8880_v62, %v8881_v55  ;;  %vm8897_vm12 = vmmov %vm8873_vm9 }
 0x46e   : > { %3517 = vmatpush1.bf16.msra.mxu1 %v3448_v35  ;;  %v8866_v16 = vpack.c.bf16 %v8864_v31, %v8865_v52  ;;  %3538 = vmatprep.mubr.bf16.mxu1 %v8649_v18  ;;  %v8115_v59 = vsel %vm8870_vm13, %v8869_v39, %v5209_v49  ;;  %v3314_v17 = vsel %vm8873_vm9, %v5208_v14, %v8872_v40  ;;  %v5222_v24 = vpop.permute.xlu0 %5221  ;;  %v8883_v35 = vld [vmem:[#allocation41_spill] sm:$0xff]  ;;  %v8892_v62 = vld [vmem:[#allocation47_spill] sm:$0xff]  ;;  %vm8898_vm13 = vmmov %vm8876_vm8 }
 0x46f   : > { %v8129_v28 = vsel %vm8876_vm8, %v8875_v45, %v5214_v50  ;;  %v3338_v19 = vsel %vm8879_vm15, %v5213_v21, %v8878_v57  ;;  %v5217_v54 = vpop.permute.xlu1 %5216  ;;  %v8885_v3 = vpack.c.bf16 %v8883_v35, %v8884_v9  ;;  %v8886_v52 = vld [vmem:[#allocation49_spill] sm:$0xff]  ;;  %v5223_v40 = vunpack.i.l.bf16 %v5222_v24  ;;  %vm8900_vm15 = vmmov %vm8873_vm9 }
 0x470   : > { %3518 = vmatprep.subr.bf16.mxu1 %v8866_v16  ;;  %3478 = vmatpush1.bf16.msra.mxu0 %v3420_v20  ;;  %v3412_v15 = vpack.c.bf16 %v3338_v19, %v3314_v17  ;;  %v3416_v44 = vpack.c.bf16 %v8129_v28, %v8115_v59  ;;  %v5219_v12 = vunpack.i.h.bf16 %v5217_v54  ;;  %v5218_v31 = vunpack.i.l.bf16 %v5217_v54  ;;  %v8887_v16 = vld [vmem:[#allocation48_spill] sm:$0xff]  ;;  %v8157_v17 = vld [vmem:[%s8485_s5 + $0x6] sm:$0x3] }
 0x471   : > { %3479 = vmatprep.subr.bf16.mxu0 %v8882_v33  ;;  %v8888_v26 = vpack.c.bf16 %v8886_v52, %v8887_v16  ;;  %v3432_v20 = vpack.c.bf16 %v3406_v7, %v3406_v7  ;;  %v5224_v5 = vunpack.i.h.bf16 %v5222_v24  ;;  %v4924_v54 = vunpack.i.h.bf16 %v8891_v23 }
 0x472   : > { %3519 = vmatpush1.bf16.msra.mxu1 %v8885_v3  ;;  %v3405_v39 = vsel %vm8847_vm1, %v5194_v10, %v5218_v31  ;;  %v3411_v11 = vsel %vm8889_vm2, %v5219_v12, %v5188_v43  ;;  %v3404_v1 = vsel %vm8890_vm14, %v5218_v31, %v5219_v12  ;;  %v5232_v10 = vpop.permute.xlu0 %5231  ;;  %v8893_v43 = vld [vmem:[#allocation45_spill] sm:$0xff]  ;;  %v4923_v35 = vunpack.i.l.bf16 %v8891_v23 }
 0x473   : > { %3520 = vmatprep.subr.bf16.mxu1 %v8888_v26  ;;  %v3433_v45 = vpack.c.bf16 %v3405_v39, %v3405_v39  ;;  %v3435_v7 = vpack.c.bf16 %v3411_v11, %v3411_v11  ;;  %v5227_v57 = vpop.permute.xlu1 %5226  ;;  %v3434_v19 = vpack.c.bf16 %v3404_v1, %v3404_v1  ;;  %v8894_v55 = vpack.c.bf16 %v8892_v62, %v8893_v43 }
 0x474   : > { %3480 = vmatpush1.bf16.msra.mxu0 %v3412_v15  ;;  %v5229_v15 = vunpack.i.h.bf16 %v5227_v57  ;;  %v5228_v33 = vunpack.i.l.bf16 %v5227_v57  ;;  %v5233_v9 = vunpack.i.l.bf16 %v5232_v10  ;;  %v3454_v24 = vsel %vm526_vm4, %v3432_v20, 0 }
 0x475   : > { %4215 = vmatprep.subr.msk.bf16.mxu0 %vm526_vm4, %v3433_v45  ;;  %v3460_v3 = vsel %vm526_vm4, %v3434_v19, 0  ;;  %v5234_v31 = vunpack.i.h.bf16 %v5232_v10  ;;  %v3357_v52 = vsel %vm1610_vm11, %v5199_v0, %v5223_v40  ;;  %v5113_v26 = vunpack.i.l.bf16 %v7812_v4 }
 0x476   : > { %3521 = vmatpush1.bf16.msra.mxu1 %v8894_v55  ;;  %v3380_v12 = vsel %vm8895_vm3, %v5228_v33, %v5229_v15  ;;  %v3381_v16 = vsel %vm8857_vm0, %v5204_v51, %v5228_v33  ;;  %v3356_v20 = vsel %vm1610_vm11, %v5223_v40, %v5224_v5  ;;  %v8187_v11 = vpop.permute.xlu0 %5246  ;;  %v3387_v0 = vsel %vm8896_vm6, %v5229_v15, %v5203_v37 }
 0x477   : > { %4212 = vmatmul.mubr.msk.bf16.vlgmr.msra.gmra.mxu0 %vm811_vm10, %v8157_v17  ;;  %4217 = vmatprep.subr.msk.bf16.mxu1 %vm526_vm4, %v3435_v7  ;;  %v5237_v39 = vpop.permute.xlu1 %5236  ;;  %v3425_v1 = vpack.c.bf16 %v3381_v16, %v3357_v52  ;;  %v3426_v45 = vpack.c.bf16 %v3380_v12, %v3356_v20  ;;  %v3363_v40 = vsel %vm1610_vm11, %v5224_v5, %v5198_v60  ;;  %v5083_v57 = vunpack.i.l.bf16 %v7711_v53  ;;  %vm8899_vm11 = vmmov %vm8876_vm8 }
 0x478   : > { %3558 = vmatpush1.bf16.msra.mxu0 %v3454_v24  ;;  %v5239_v51 = vunpack.i.h.bf16 %v5237_v39  ;;  %v5238_v7 = vunpack.i.l.bf16 %v5237_v39  ;;  %3579 = vmatprep.mubr.bf16.mxu0 %v8649_v18  ;;  %v3427_v10 = vpack.c.bf16 %v3387_v0, %v3363_v40  ;;  %v3309_v61 = vsel %vm8897_vm12, %v5209_v49, %v5233_v9 }
 0x479   : > { %4214 = vmatmul.mubr.msk.bf16.vlgmr.msra.gmra.mxu1 %vm811_vm10, %v8157_v17  ;;  %3559 = vmatprep.subr.bf16.mxu0 %v3425_v1  ;;  %v3315_v60 = vsel %vm8873_vm9, %v5234_v31, %v5208_v14  ;;  %v3308_v5 = vsel %vm8900_vm15, %v5233_v9, %v5234_v31  ;;  %vm8901_vm1 = vcmp.lt.s32.totalorder %v5647_v38, 44  ;;  %v3730_v19 = vsel %vm1985_vm5, %v5113_v26, %v5114_v13 }
 0x47a   : > { %3599 = vmatpush1.bf16.msra.mxu1 %v3460_v3  ;;  %3620 = vmatprep.mubr.bf16.mxu1 %v8649_v18  ;;  %v3332_v37 = vsel %vm8898_vm13, %v5238_v7, %v5239_v51  ;;  %v3333_v30 = vsel %vm8899_vm11, %v5214_v50, %v5238_v7  ;;  %v3339_v49 = vsel %vm8876_vm8, %v5239_v51, %v5213_v21  ;;  %v8225_v41 = vpop.permute.xlu0 %5251  ;;  %vm8902_vm2 = vmmov %vm8901_vm1  ;;  %v5184_v15 = vunpack.i.h.bf16 %v7964_v56 }
 0x47b   : > { %3600 = vmatprep.subr.bf16.mxu1 %v3427_v10  ;;  %v8223_v58 = vpop.permute.xlu1 %5241  ;;  %v3419_v50 = vpack.c.bf16 %v3339_v49, %v3315_v60  ;;  %v3753_v22 = vsel %vm8901_vm1, %v4923_v35, %v4924_v54  ;;  %v3418_v14 = vpack.c.bf16 %v3332_v37, %v3308_v5  ;;  %v5254_v8 = vunpack.i.h.bf16 %v8225_v41  ;;  %vm8903_vm14 = vmmov %vm8901_vm1 }
 0x47c   : > { %3560 = vmatpush1.bf16.msra.mxu0 %v3424_v34  ;;  %v3417_v34 = vpack.c.bf16 %v3333_v30, %v3309_v61  ;;  %v5253_v21 = vunpack.i.l.bf16 %v8225_v41  ;;  %v3706_v13 = vsel %vm1960_vm7, %v5083_v57, %v5084_v46  ;;  %v3775_v55 = vpack.c.bf16 %v3753_v22, %v3753_v22  ;;  %vm8904_vm3 = vmmov %vm8901_vm1 }
 0x47d   : > { %v3754_v62 = vsel %vm8902_vm2, %v5254_v8, %v4923_v35  ;;  %v5183_v9 = vunpack.i.l.bf16 %v7964_v56  ;;  %v5249_v24 = vunpack.i.h.bf16 %v8187_v11  ;;  %v5248_v3 = vunpack.i.l.bf16 %v8187_v11  ;;  %vm8908_vm13 = vmmov %vm8901_vm1 }
 0x47e   : > { %3601 = vmatpush1.bf16.msra.mxu1 %v3426_v45  ;;  %3561 = vmatprep.subr.bf16.mxu0 %v3417_v34  ;;  %v3755_v43 = vsel %vm8903_vm14, %v5253_v21, %v5254_v8  ;;  %v3774_v33 = vpack.c.bf16 %v3754_v62, %v3754_v62  ;;  %v5257_v59 = vpop.permute.xlu0 %5256  ;;  %v5244_v31 = vunpack.i.h.bf16 %v8223_v58  ;;  %v5243_v46 = vunpack.i.l.bf16 %v8223_v58  ;;  %vm8914_vm14 = vmmov %vm8902_vm2 }
 0x47f   : > { %3602 = vmatprep.subr.bf16.mxu1 %v3419_v50  ;;  %v8255_v35 = vpop.permute.xlu1 %5261  ;;  %v3773_v28 = vpack.c.bf16 %v3755_v43, %v3755_v43  ;;  %v5258_v12 = vunpack.i.l.bf16 %v5257_v59  ;;  %v5259_v39 = vunpack.i.h.bf16 %v5257_v59  ;;  %v5179_v0 = vunpack.i.h.bf16 %v8028_v36 }
 0x480   : > { %3562 = vmatpush1.bf16.msra.mxu0 %v3416_v44  ;;  %v3766_v44 = vpack.c.bf16 %v3730_v19, %v3706_v13  ;;  %v5264_v52 = vunpack.i.h.bf16 %v8255_v35  ;;  %v5263_v20 = vunpack.i.l.bf16 %v8255_v35  ;;  %v5178_v45 = vunpack.i.l.bf16 %v8028_v36 }
 0x481   : > { %4220 = vmatprep.subr.msk.bf16.mxu0 %vm526_vm4, %v3774_v33  ;;  %v3787_v16 = vsel %vm526_vm4, %v3773_v28, 0  ;;  %v3752_v1 = vsel %vm8904_vm3, %v4924_v54, %v5258_v12  ;;  %v3793_v10 = vsel %vm526_vm4, %v3775_v55, 0  ;;  %vm8905_vm0 = vcmp.lt.s32.totalorder %v5647_v38, 48  ;;  %vm8915_vm3 = vmmov %vm8902_vm2 }
 0x482   : > { %3603 = vmatpush1.bf16.msra.mxu1 %v3418_v14  ;;  %v3776_v51 = vpack.c.bf16 %v3752_v1, %v3752_v1  ;;  %v8279_v40 = vpop.permute.xlu0 %5266  ;;  %v3656_v36 = vsel %vm8905_vm0, %v5183_v9, %v5184_v15  ;;  %vm8906_vm6 = vcmp.lt.s32.totalorder %v5647_v38, 47  ;;  %v3707_v48 = vsel %vm1960_vm7, %v5263_v20, %v5083_v57  ;;  %vm8910_vm9 = vmmov %vm8905_vm0 }
 0x483   : > { %4216 = vmatmul.mubr.msk.bf16.vlgmr.msra.gmra.mxu0 %vm811_vm10, %v8157_v17  ;;  %v8277_v7 = vpop.permute.xlu1 %5271  ;;  %v5269_v23 = vunpack.i.h.bf16 %v8279_v40  ;;  %v5268_v54 = vunpack.i.l.bf16 %v8279_v40  ;;  %v3682_v37 = vsel %vm8906_vm6, %v5243_v46, %v5244_v31  ;;  %vm8907_vm12 = vmmov %vm8906_vm6  ;;  %v3751_v53 = vsel %vm8908_vm13, %v5258_v12, %v5259_v39 }
 0x484   : > { %3821 = vmatpush1.bf16.msra.mxu0 %v3787_v16  ;;  %3842 = vmatprep.mubr.bf16.mxu0 %v8649_v18  ;;  %v5273_v61 = vunpack.i.l.bf16 %v8277_v7  ;;  %v3680_v30 = vsel %vm8907_vm12, %v5248_v3, %v5249_v24  ;;  %vm8909_vm11 = vmmov %vm8906_vm6  ;;  %v3777_v6 = vpack.c.bf16 %v3751_v53, %v3751_v53 }
 0x485   : > { %4218 = vmatmul.mubr.msk.bf16.vlgmr.msra.gmra.mxu1 %vm811_vm10, %v8157_v17  ;;  %3822 = vmatprep.subr.bf16.mxu0 %v3766_v44  ;;  %v8295_v17 = vsel %vm1960_vm7, %v5089_v25, %v5264_v52  ;;  %v8315_v25 = vsel %vm1985_vm5, %v5119_v27, %v5269_v23  ;;  %v3731_v60 = vsel %vm1985_vm5, %v5268_v54, %v5113_v26  ;;  %vm8911_vm8 = vmmov %vm8906_vm6 }
 0x486   : > { %3883 = vmatprep.mubr.bf16.mxu1 %v8649_v18  ;;  %4222 = vmatprep.subr.msk.bf16.mxu1 %vm526_vm4, %v3776_v51  ;;  %v3681_v49 = vsel %vm8909_vm11, %v5244_v31, %v5248_v3  ;;  %v3765_v5 = vpack.c.bf16 %v3731_v60, %v3707_v48  ;;  %v3769_v2 = vpack.c.bf16 %v8315_v25, %v8295_v17  ;;  %v8327_v58 = vpop.permute.xlu0 %3661  ;;  %vm8912_vm15 = vmmov %vm8905_vm0  ;;  %v3799_v3 = vsel %vm526_vm4, %v3777_v6, 0 }
 0x487   : > { %3862 = vmatpush1.bf16.msra.mxu1 %v3793_v10  ;;  %v5277_v57 = vpop.permute.xlu1 %5276  ;;  %v3658_v27 = vsel %vm8910_vm9, %v5178_v45, %v5179_v0  ;;  %v3683_v34 = vsel %vm8911_vm8, %v8327_v58, %v5243_v46  ;;  %v3657_v22 = vsel %vm8912_vm15, %v5179_v0, %v5183_v9  ;;  %vm8913_vm1 = vmmov %vm8905_vm0  ;;  %v3760_v32 = vpack.c.bf16 %v3680_v30, %v3656_v36 }
 0x488   : > { %3863 = vmatprep.subr.bf16.mxu1 %v3768_v47  ;;  %v5279_v4 = vunpack.i.h.bf16 %v5277_v57  ;;  %v5278_v26 = vunpack.i.l.bf16 %v5277_v57  ;;  %v3758_v50 = vpack.c.bf16 %v3682_v37, %v3658_v27  ;;  %v3659_v14 = vsel %vm8913_vm1, %v5273_v61, %v5178_v45  ;;  %3823 = vmatpush1.bf16.msra.mxu0 %v3765_v5  ;;  %vm8921_vm13 = vmmov %vm8905_vm0 }
 0x489   : > { %v3759_v62 = vpack.c.bf16 %v3681_v49, %v3657_v22  ;;  %v3757_v13 = vpack.c.bf16 %v3683_v34, %v3659_v14  ;;  %vm8922_vm11 = vmmov %vm8905_vm0 }
 0x48a   : > { %v3750_v47 = vsel %vm8902_vm2, %v5259_v39, %v5278_v26  ;;  %v3756_v8 = vsel %vm8914_vm14, %v5279_v4, %v5253_v21  ;;  %3824 = vmatprep.subr.bf16.mxu0 %v3758_v50  ;;  %v3749_v19 = vsel %vm8915_vm3, %v5278_v26, %v5279_v4  ;;  %v5282_v33 = vpop.permute.xlu0 %5281 }
 0x48b   : > { %3864 = vmatpush1.bf16.msra.mxu1 %v3767_v29  ;;  %v3778_v43 = vpack.c.bf16 %v3750_v47, %v3750_v47  ;;  %v5287_v55 = vpop.permute.xlu1 %5286  ;;  %v5284_v41 = vunpack.i.h.bf16 %v5282_v33  ;;  %v5283_v44 = vunpack.i.l.bf16 %v5282_v33  ;;  %v3780_v9 = vpack.c.bf16 %v3756_v8, %v3756_v8 }
 0x48c   : > { %3865 = vmatprep.subr.bf16.mxu1 %v3760_v32  ;;  %v5289_v59 = vunpack.i.h.bf16 %v5287_v55  ;;  %v5288_v28 = vunpack.i.l.bf16 %v5287_v55  ;;  %3825 = vmatpush1.bf16.msra.mxu0 %v3757_v13  ;;  %v3779_v42 = vpack.c.bf16 %v3749_v19, %v3749_v19  ;;  %v5274_v29 = vunpack.i.h.bf16 %v8277_v7 }
 0x48d   : > { %4224 = vmatprep.subr.msk.bf16.mxu0 %vm526_vm4, %v3778_v43  ;;  %v3702_v12 = vsel %vm1960_vm7, %v5264_v52, %v5283_v44  ;;  %v3701_v31 = vsel %vm1960_vm7, %v5283_v44, %v5284_v41  ;;  %v3708_v1 = vsel %vm1960_vm7, %v5284_v41, %v5263_v20 }
 0x48e   : > { %v3725_v21 = vsel %vm1985_vm5, %v5288_v28, %v5289_v59  ;;  %v5292_v16 = vpop.permute.xlu0 %5291  ;;  %v3726_v39 = vsel %vm1985_vm5, %v5269_v23, %v5288_v28  ;;  %v3732_v0 = vsel %vm1985_vm5, %v5289_v59, %v5268_v54  ;;  %v3805_v23 = vsel %vm526_vm4, %v3779_v42, 0  ;;  %vm8916_vm5 = vmmov %vm8906_vm6 }
 0x48f   : > { %3866 = vmatpush1.bf16.msra.mxu1 %v3759_v62  ;;  %v5297_v46 = vpop.permute.xlu1 %5296  ;;  %v5294_v51 = vunpack.i.h.bf16 %v5292_v16  ;;  %v5293_v40 = vunpack.i.l.bf16 %v5292_v16  ;;  %4221 = vmatmul.mubr.msk.bf16.vlgmr.msra.gmra.mxu0 %vm811_vm10, %v4219_v63  ;;  %v3770_v10 = vpack.c.bf16 %v3726_v39, %v3702_v12  ;;  %v3772_v36 = vpack.c.bf16 %v3732_v0, %v3708_v1  ;;  %vm8917_vm7 = vmmov %vm8916_vm5 }
 0x490   : > { %4226 = vmatprep.subr.msk.bf16.mxu1 %vm526_vm4, %v3780_v9  ;;  %v5299_v45 = vunpack.i.h.bf16 %v5297_v46  ;;  %v5298_v52 = vunpack.i.l.bf16 %v5297_v46  ;;  %3903 = vmatpush1.bf16.msra.mxu0 %v3799_v3  ;;  %v3771_v20 = vpack.c.bf16 %v3725_v21, %v3701_v31  ;;  %vm8918_vm4 = vmmov %vm8905_vm0  ;;  %v3655_v7 = vsel %vm8921_vm13, %v5184_v15, %v5274_v29 }
 0x491   : > { %v3654_v35 = vsel %vm8905_vm0, %v5274_v29, %v5293_v40  ;;  %3904 = vmatprep.subr.bf16.mxu0 %v3770_v10  ;;  %v3660_v48 = vsel %vm8918_vm4, %v5294_v51, %v5273_v61  ;;  %vm8919_vm6 = vmmov %vm8916_vm5  ;;  %3924 = vmatprep.mubr.bf16.mxu0 %v8649_v18  ;;  %v3653_v49 = vsel %vm8922_vm11, %v5293_v40, %v5294_v51 }
 0x492   : > { %4223 = vmatmul.mubr.msk.bf16.vlgmr.msra.gmra.mxu1 %vm811_vm10, %v4219_v63  ;;  %v3679_v54 = vsel %vm8916_vm5, %v5249_v24, %v5298_v52  ;;  %v3676_v37 = vpop.permute.xlu0 %3675  ;;  %v3678_v30 = vsel %vm8917_vm7, %v5298_v52, %v5299_v45  ;;  %vm8920_vm12 = vmmov %vm8916_vm5 }
 0x493   : > { %3944 = vmatpush1.bf16.msra.mxu1 %v3805_v23  ;;  %v3684_v60 = vsel %vm8919_vm6, %v3676_v37, %v8327_v58  ;;  %v3762_v53 = vpack.c.bf16 %v3678_v30, %v3654_v35  ;;  %3965 = vmatprep.mubr.bf16.mxu1 %v8649_v18  ;;  %v3677_v11 = vsel %vm8920_vm12, %v5299_v45, %v3676_v37 }
 0x494   : > { %3945 = vmatprep.subr.bf16.mxu1 %v3772_v36  ;;  %v3764_v24 = vpack.c.bf16 %v3684_v60, %v3660_v48  ;;  %3905 = vmatpush1.bf16.msra.mxu0 %v3769_v2  ;;  %v3761_v61 = vpack.c.bf16 %v3679_v54, %v3655_v7  ;;  %v3763_v18 = vpack.c.bf16 %v3677_v11, %v3653_v49 }
 0x495   : > { %3906 = vmatprep.subr.bf16.mxu0 %v3762_v53 }
 0x497   : > { %3946 = vmatpush1.bf16.msra.mxu1 %v3771_v20 }
 0x498   : > { %3947 = vmatprep.subr.bf16.mxu1 %v3764_v24  ;;  %3907 = vmatpush1.bf16.msra.mxu0 %v3761_v61 }
 0x49b   : > { %3948 = vmatpush1.bf16.msra.mxu1 %v3763_v18  ;;  %4225 = vmatmul.mubr.msk.bf16.vlgmr.msra.gmra.mxu0 %vm811_vm10, %v4219_v63 }
 0x49e   : > { %4227 = vmatmul.mubr.msk.bf16.vlgmr.msra.gmra.mxu1 %vm811_vm10, %v4219_v63 }
 0x4ea   : > { %v2626_v17 = vpop.f32.mrf.mxu0 }
 0x4ec   : > { %v2667_v25 = vpop.f32.mrf.mxu1  ;;  %v2628_v56 = vpop.f32.mrf.mxu0 }
 0x4ee   : > { %v2669_v5 = vpop.f32.mrf.mxu1  ;;  %v2630_v2 = vpop.f32.mrf.mxu0 }
 0x4f0   : > { %v2671_v15 = vpop.f32.mrf.mxu1  ;;  %v2631_v57 = vpop.f32.mrf.mxu0 }
 0x4f2   : > { %v2672_v58 = vpop.f32.mrf.mxu1 }
 0x4f8   : > { %v2708_v27 = vpop.f32.mrf.mxu0 }
 0x4fa   : > { %v2710_v38 = vpop.f32.mrf.mxu0 }
 0x4fb   : > { %v2749_v4 = vpop.f32.mrf.mxu1 }
 0x4fc   : > { %v2712_v34 = vpop.f32.mrf.mxu0 }
 0x4fd   : > { %v2751_v26 = vpop.f32.mrf.mxu1 }
 0x4fe   : > { %v2713_v22 = vpop.f32.mrf.mxu0 }
 0x4ff   : > { %v2753_v50 = vpop.f32.mrf.mxu1 }
 0x501   : > { %v2754_v14 = vpop.f32.mrf.mxu1 }
 0x505   : > { %v2817_v32 = vpop.f32.mrf.mxu0 }
 0x506   : > { %v2818_v6 = vadd.f32 %v2817_v32, %v2626_v17 }
 0x507   : > { %v2819_v47 = vpop.f32.mrf.mxu0 }
 0x508   : > { %v2820_v19 = vadd.f32 %v2819_v47, %v2628_v56 }
 0x509   : > { %v2858_v8 = vpop.f32.mrf.mxu1  ;;  %v2821_v43 = vpop.f32.mrf.mxu0 }
 0x50a   : > { %v2859_v62 = vadd.f32 %v2858_v8, %v2667_v25  ;;  %v3986_v8 = vpop.permute.xlu1 %3985 }
 0x50b   : > { %v2860_v13 = vpop.f32.mrf.mxu1  ;;  %v2822_v33 = vpop.f32.mrf.mxu0 }
 0x50c   : > { %v2861_v55 = vadd.f32 %v2860_v13, %v2669_v5 }
 0x50d   : > { %v2862_v59 = vpop.f32.mrf.mxu1 }
 0x50f   : > { %v2863_v28 = vpop.f32.mrf.mxu1 }
 0x513   : > { %v2899_v41 = vpop.f32.mrf.mxu0 }
 0x514   : > { %v8410_v44 = vadd.f32 %v2899_v41, %v2708_v27 }
 0x515   : > { %v2940_v9 = vpop.f32.mrf.mxu1  ;;  %v2901_v63 = vpop.f32.mrf.mxu0 }
 0x516   : > { %v8412_v42 = vadd.f32 %v2940_v9, %v2749_v4  ;;  %v8414_v29 = vadd.f32 %v2901_v63, %v2710_v38 }
 0x517   : > { %v2942_v21 = vpop.f32.mrf.mxu1  ;;  %v2903_v3 = vpop.f32.mrf.mxu0 }
 0x518   : > { %v8416_v12 = vadd.f32 %v2942_v21, %v2751_v26 }
 0x519   : > { %v2944_v31 = vpop.f32.mrf.mxu1  ;;  %v2904_v46 = vpop.f32.mrf.mxu0 }
 0x51b   : > { %v2945_v16 = vpop.f32.mrf.mxu1 }
 0x51f   : > { %v3154_v39 = vpop.f32.mrf.mxu0 }
 0x520   : > { %v3284_v27 = vadd.f32 %v3154_v39, %v2818_v6 }
 0x521   : > { %v3195_v1 = vpop.f32.mrf.mxu1  ;;  %v3156_v0 = vpop.f32.mrf.mxu0 }
 0x522   : > { %v3286_v4 = vadd.f32 %v3195_v1, %v2859_v62  ;;  %v3285_v38 = vadd.f32 %v3156_v0, %v2820_v19  ;;  %v5304_v0 = vld [vmem:[%s5574_s23] sm:$0xff] }
 0x523   : > { %v3197_v45 = vpop.f32.mrf.mxu1  ;;  %v3158_v52 = vpop.f32.mrf.mxu0 }
 0x524   : > { %v3287_v34 = vadd.f32 %v3197_v45, %v2861_v55  ;;  %v8923_v52 = vld [vmem:[#allocation11_spill] sm:$0xff] }
 0x525   : > { %v3199_v51 = vpop.f32.mrf.mxu1  ;;  %v3159_v40 = vpop.f32.mrf.mxu0 }
 0x527   : > { %v3200_v10 = vpop.f32.mrf.mxu1 }
 0x528   : > { %v5305_v10 = vld [vmem:[%s5574_s23 + $0x8] sm:$0xff] }
 0x52b   : > { %v3236_v23 = vpop.f32.mrf.mxu0 }
 0x52c   : > { %v3288_v1 = vadd.f32 %v3236_v23, %v8410_v44 }
 0x52d   : > { %v3277_v36 = vpop.f32.mrf.mxu1  ;;  %v3238_v35 = vpop.f32.mrf.mxu0 }
 0x52e   : > { %v3290_v40 = vadd.f32 %v3277_v36, %v8412_v42 }
 0x52f   : > { %v3279_v20 = vpop.f32.mrf.mxu1  ;;  %v3240_v54 = vpop.f32.mrf.mxu0 }
 0x531   : > { %v3281_v37 = vpop.f32.mrf.mxu1  ;;  %v3241_v30 = vpop.f32.mrf.mxu0 }
 0x532   : > { %v8924_v37 = vld [vmem:[#allocation10_spill] sm:$0xff] }
 0x533   : > { %v3282_v48 = vpop.f32.mrf.mxu1 }
 0x534   : > { %v3289_v48 = vadd.f32 %v3238_v35, %v8414_v29 }
 0x537   : > { %v3499_v60 = vpop.f32.mrf.mxu0 }
 0x538   : > { %v3629_v26 = vadd.f32 %v3499_v60, %v3284_v27 }
 0x539   : > { %v3540_v53 = vpop.f32.mrf.mxu1  ;;  %v3501_v11 = vpop.f32.mrf.mxu0 }
 0x53a   : > { %v3631_v50 = vadd.f32 %v3540_v53, %v3286_v4  ;;  %v3630_v14 = vadd.f32 %v3501_v11, %v3285_v38  ;;  %v3291_v11 = vadd.f32 %v3279_v20, %v8416_v12 }
 0x53b   : > { %v3542_v24 = vpop.f32.mrf.mxu1  ;;  %v3503_v7 = vpop.f32.mrf.mxu0 }
 0x53c   : > { %v3632_v43 = vadd.f32 %v3542_v24, %v3287_v34 }
 0x53d   : > { %v3544_v61 = vpop.f32.mrf.mxu1  ;;  %v3504_v49 = vpop.f32.mrf.mxu0 }
 0x53f   : > { %v3545_v18 = vpop.f32.mrf.mxu1 }
 0x543   : > { %v3581_v17 = vpop.f32.mrf.mxu0 }
 0x544   : > { %v3633_v60 = vadd.f32 %v3581_v17, %v3288_v1 }
 0x545   : > { %v3622_v25 = vpop.f32.mrf.mxu1  ;;  %v3583_v56 = vpop.f32.mrf.mxu0 }
 0x546   : > { %v3635_v24 = vadd.f32 %v3622_v25, %v3290_v40  ;;  %v3634_v23 = vadd.f32 %v3583_v56, %v3289_v48 }
 0x547   : > { %v3624_v5 = vpop.f32.mrf.mxu1  ;;  %v3585_v2 = vpop.f32.mrf.mxu0 }
 0x548   : > { %v3636_v61 = vadd.f32 %v3624_v5, %v3291_v11 }
 0x549   : > { %v3626_v15 = vpop.f32.mrf.mxu1  ;;  %v3586_v57 = vpop.f32.mrf.mxu0 }
 0x54b   : > { %v3627_v58 = vpop.f32.mrf.mxu1 }
 0x54f   : > { %v3844_v22 = vpop.f32.mrf.mxu0 }
 0x550   : > { %v3974_v32 = vadd.f32 %v3844_v22, %v3629_v26  ;;  %v5306_v26 = vld [vmem:[%s5574_s23 + $0x10] sm:$0xff] }
 0x551   : > { %v3846_v33 = vpop.f32.mrf.mxu0 }
 0x552   : > { %v3885_v47 = vpop.f32.mrf.mxu1  ;;  %v3988_v59 = vadd.f32 %v3986_v8, %v3974_v32  ;;  %v3975_v28 = vadd.f32 %v3846_v33, %v3630_v14  ;;  %v5307_v14 = vld [vmem:[%s5574_s23 + $0x18] sm:$0xff]  ;;  %s5340_s23 = sshll.u32 %s5429_s28, 4  ;;  %s5341_s23 = int_to_ptr.vmem [resolvable:$false] %s5340_s23 }
 0x553   : > { %v3976_v13 = vadd.f32 %v3885_v47, %v3631_v50  ;;  %v3848_v6 = vpop.f32.mrf.mxu0  ;;  %v8926_v50 = vld [vmem:[#allocation13_spill] sm:$0xff]  ;;  %v8927_v47 = vld [vmem:[#allocation12_spill] sm:$0xff]  ;;  %s5342_s16 = scalar_lea.vmem %s5341_s23, 1024  ;;  %p5343_p5 = scmp.lt.s32.totalorder %s4048_s4, %s5341_s23 }
 0x554   : > { %v3887_v41 = vpop.f32.mrf.mxu1  ;;  %v3996_v19 = vmax.f32 %v3988_v59, 0.0  ;;  %v3989_v62 = vadd.f32 %v3986_v8, %v3975_v28  ;;  %p5344_p8 = scmp.lt.s32.totalorder %s5342_s16, %s5336_s2 }
 0x555   : > { %v3990_v9 = vadd.f32 %v3986_v8, %v3976_v13  ;;  %v3977_v63 = vadd.f32 %v3887_v41, %v3632_v43  ;;  %v3849_v31 = vpop.f32.mrf.mxu0 }
 0x556   : > { %v3889_v55 = vpop.f32.mrf.mxu1  ;;  %v3997_v46 = vmax.f32 %v3989_v62, 0.0  ;;  %v4004_v45 = vadd.f32 %v5304_v0, %v3996_v19  ;;  %p5345_p10 = por %p5344_p8, %p5343_p5 }
 0x557   : > { %v3998_v21 = vmax.f32 %v3990_v9, 0.0  ;;  %v3991_v3 = vadd.f32 %v3986_v8, %v3977_v63 }
 0x558   : > { %v3890_v16 = vpop.f32.mrf.mxu1  ;;  %v4005_v51 = vadd.f32 %v3997_v46, %v8923_v52  ;;  %p5346_p2 = pnand %p5345_p10, %p5339_p3 }
 0x559   : > { %v3999_v39 = vmax.f32 %v3991_v3, 0.0  ;;  %v4006_v54 = vadd.f32 %v5305_v10, %v3998_v21 }
 0x55a   : > { %v4020_v53 = vcombine.low %v4004_v45, %v4005_v51 }
 0x55b   : > { %v4007_v30 = vadd.f32 %v3999_v39, %v8924_v37  ;;  %v3926_v44 = vpop.f32.mrf.mxu0 }
 0x55c   : > { %4028 = vst [vmem:[%s8428_s22] sm:$0xff] %v4020_v53  ;;  %v3978_v42 = vadd.f32 %v3926_v44, %v3633_v60 }
 0x55d   : > { %v4021_v7 = vcombine.low %v4006_v54, %v4007_v30  ;;  %v3928_v29 = vpop.f32.mrf.mxu0 }
 0x55e   : > { %v3967_v36 = vpop.f32.mrf.mxu1  ;;  %v3992_v35 = vadd.f32 %v3986_v8, %v3978_v42  ;;  %v3979_v18 = vadd.f32 %v3928_v29, %v3634_v23 }
 0x55f   : > { %4029 = vst [vmem:[%s8428_s22 + $0x8] sm:$0xff] %v4021_v7  ;;  %v3980_v49 = vadd.f32 %v3967_v36, %v3635_v24  ;;  %v3930_v25 = vpop.f32.mrf.mxu0 }
 0x560   : > { %v3969_v12 = vpop.f32.mrf.mxu1  ;;  %v4000_v56 = vmax.f32 %v3992_v35, 0.0  ;;  %v3993_v2 = vadd.f32 %v3986_v8, %v3979_v18 }
 0x561   : > { %v3994_v20 = vadd.f32 %v3986_v8, %v3980_v49  ;;  %v3981_v17 = vadd.f32 %v3969_v12, %v3636_v61  ;;  %v3931_v27 = vpop.f32.mrf.mxu0 }
 0x562   : > { %v3971_v15 = vpop.f32.mrf.mxu1  ;;  %v4001_v5 = vmax.f32 %v3993_v2, 0.0  ;;  %v4008_v34 = vadd.f32 %v5306_v26, %v4000_v56 }
 0x563   : > { %v4002_v57 = vmax.f32 %v3994_v20, 0.0  ;;  %v3995_v58 = vadd.f32 %v3986_v8, %v3981_v17 }
 0x564   : > { %v3972_v4 = vpop.f32.mrf.mxu1  ;;  %v4009_v22 = vadd.f32 %v4001_v5, %v8926_v50 }
 0x565   : > { %v4003_v38 = vmax.f32 %v3995_v58, 0.0  ;;  %v4010_v32 = vadd.f32 %v5307_v14, %v4002_v57 }
 0x566   : > { %v4022_v13 = vcombine.low %v4008_v34, %v4009_v22 }
 0x567   : > { %v4011_v43 = vadd.f32 %v4003_v38, %v8927_v47 }
 0x568   : > { %4030 = vst [vmem:[%s8428_s22 + $0x10] sm:$0xff] %v4022_v13 }
 0x569   : > { %v4023_v8 = vcombine.low %v4010_v32, %v4011_v43 }
 0x56b   : > { %4031 = vst [vmem:[%s8428_s22 + $0x18] sm:$0xff] %v4023_v8 }
 0x56c   : > { %5349 = shalt.err (!%p5346_p2)
}
 0x56d   : > { %s5350_s21 = scalar_lea.hbm %s8441_s3, 512  ;;  %s5354_s11 = scalar_lea.hbm %s8487_s7, 1024 }
 0x56e   : > { %p5351_p4 = scmp.ne.s32.totalorder %s8441_s3, %s5350_s21  ;;  %p5355_p0 = scmp.lt.s32.totalorder %s8441_s3, %s8487_s7 }
 0x56f   : > { %p5356_p6 = scmp.lt.s32.totalorder %s5354_s11, %s5350_s21 }
 0x570   : > { %p5352_p9 = pnand %p5351_p4, %p8928_p13 }
 0x571   : > { %p5357_p11 = por %p5356_p6, %p5355_p0 }
 0x572   : > { %p5353_p7 = pneg %p5352_p9 }
 0x574   : > { %p5358_p12 = pnand %p5357_p11, %p5353_p7 }
 0x576   : > { %5361 = shalt.err (!%p5358_p12)
}
 0x577   : > { %4238 = dma.vmem_to_hbm [thread:$0]  (%p8928_p13), %s4048_s4, 512, %s8441_s3, %s4033_s0  }
 0x578 PF: > { %s4059_s18 = sand.u32 1, %s5388_s24   ;;  %p8929_p1 = scmp.ne.s32.totalorder %s8635_s14, 0 }
 0x579   : > { %p8930_p3 = scmp.ge.s32.totalorder %s5400_s27, 2  ;;  %s4060_s15 = scalar_lea.sflag [#allocation4], %s4059_s18 }
 0x57b   : > { %p4245_p5 = pnand %p8930_p3, %p8929_p1 }
 0x57d   : > { %p4246_p8 = pneg %p4245_p5 }
 0x57f   : > { %5383 = dma.done.wait (%p4246_p8), %s4060_s15, 512  }
 0x580   : > { %5385 = vsyncadd (%p4246_p8), %s4060_s15, 4294966784  ;;  %s8931_s17 = sld [smem:[#allocation8_spill]]  ;;  %p20_p10 = scmp.ge.s32.totalorder %s5495_s30, 4  }
 0x581   : > { %s8932_s26 = sld [smem:[#allocation9_spill]]  ;;  %s8933_s24 = smov %s5392_s25 }
 0x582   : > { %s8935_s27 = smov %s5495_s30  ;;  %22 = sbr.rel (!%p20_p10) target bundleno = 11 (0xb), region = 104 }
 0x586   : > { %s8934_s25 = smov %s8931_s17 }
 0x587   :  { %4065 = vsyncpa [#allocation3], 1 }
 0x588   :  { %4067 = vsyncpa [#allocation3 + $0x1], 1 }
 0x589   :  { %4068 = vsyncpa [#allocation4], 1 }
 0x58a   :  { %4070 = vsyncpa [#allocation4 + $0x1], 1 }

</bundles_post_ra>
